<compile_context>
chip_gen: v7x
topology: tpu7x:2x2x1
jax: 0.10.0
libtpu: 0.0.40
codegen_flags: <defaults>
</compile_context>

<pallas_src>
import math
from functools import partial

import jax
import jax.numpy as jnp
from jax.experimental import pallas as pl
from jax.experimental.pallas import tpu as pltpu


# ----------------------------------------------------------------------------
# helpers
# ----------------------------------------------------------------------------
def _pick_t_tile(T, max_tile=512):
    """Largest T-tile (multiple of 8, <= max_tile) dividing T; falls back to full T."""
    for c in (512, 256, 128, 64, 32, 16, 8):
        if c <= max_tile and T % c == 0:
            return c
    return T


_VMEM_LIMIT = 48 * 1024 * 1024   # explicit scoped-VMEM budget (safe on v7x's 64 MiB)


# ----------------------------------------------------------------------------
# Kernel 1a: input_proj matmul (Conv1d k=1) + GroupNorm stats accumulation
# ----------------------------------------------------------------------------
def _proj_stats_kernel(src_ref, w_ref, b_ref, gmat_ref, y_ref, stats_ref):
    t = pl.program_id(0)

    @pl.when(t == 0)
    def _():
        stats_ref[...] = jnp.zeros_like(stats_ref)

    src = src_ref[...]                                   # [B, Tt, Cin] bf16
    B, Tt, Cin = src.shape
    D = w_ref.shape[1]

    # Conv1d(k=1) == channel matmul; flatten (B, Tt) into rows (tile-aligned collapse,
    # Tt is a multiple of 8) so the MXU sees one large-M matmul instead of B small ones.
    y = jnp.dot(src.reshape(B * Tt, Cin), w_ref[...],
                preferred_element_type=jnp.float32) + b_ref[...]     # [B*Tt, D] f32
    y3 = y.reshape(B, Tt, D)
    y_ref[...] = y3

    # per-(batch, group) partial sums for GroupNorm; accumulated into the resident
    # stats output block across T tiles (XLU reductions + tiny MXU matmuls).
    s1 = jnp.sum(y3, axis=1)                             # [B, D]
    s2 = jnp.sum(y3 * y3, axis=1)                        # [B, D]
    gmat = gmat_ref[...]                                 # [D, G] one-hot group membership
    stats_ref[0] += jnp.dot(s1, gmat, preferred_element_type=jnp.float32)
    stats_ref[1] += jnp.dot(s2, gmat, preferred_element_type=jnp.float32)


def proj_matmul_stats(src_bf16, w_bf16, b, gmat, *, t_tile):
    B, T, Cin = src_bf16.shape
    D = w_bf16.shape[1]
    G = gmat.shape[1]
    nT = T // t_tile
    flops = 2 * B * T * Cin * D
    bytes_accessed = B * T * Cin * 2 + Cin * D * 2 + B * T * D * 4 + 2 * B * G * 4
    return pl.pallas_call(
        _proj_stats_kernel,
        out_shape=(jax.ShapeDtypeStruct((B, T, D), jnp.float32),
                   jax.ShapeDtypeStruct((2, B, G), jnp.float32)),
        grid=(nT,),
        in_specs=[
            pl.BlockSpec((B, t_tile, Cin), lambda t: (0, t, 0)),
            pl.BlockSpec((Cin, D), lambda t: (0, 0)),
            pl.BlockSpec((1, D), lambda t: (0, 0)),
            pl.BlockSpec((D, G), lambda t: (0, 0)),
        ],
        out_specs=(pl.BlockSpec((B, t_tile, D), lambda t: (0, t, 0)),
                   pl.BlockSpec((2, B, G), lambda t: (0, 0, 0))),   # resident accumulator
        compiler_params=pltpu.CompilerParams(
            dimension_semantics=("arbitrary",),
            vmem_limit_bytes=_VMEM_LIMIT),
        cost_estimate=pl.CostEstimate(flops=flops, transcendentals=0,
                                      bytes_accessed=bytes_accessed),
    )(src_bf16, w_bf16, b, gmat)


# ----------------------------------------------------------------------------
# Kernel 1b: GroupNorm normalize + affine + fused positional-embedding add
# ----------------------------------------------------------------------------
def _gn_apply_kernel(y_ref, stats_ref, gmatT_ref, gamma_ref, beta_ref, pos_ref,
                     out_ref, *, inv_cnt):
    y = y_ref[...]                                       # [B, Tt, D] f32
    stats = stats_ref[...]                               # [2, B, G]
    mean_g = stats[0] * inv_cnt                          # [B, G]
    msq_g = stats[1] * inv_cnt
    var_g = jnp.maximum(msq_g - mean_g * mean_g, 0.0)    # guard f32 cancellation -> no NaN
    inv_g = jax.lax.rsqrt(var_g + 1e-5)                  # [B, G]

    gmatT = gmatT_ref[...]                               # [G, D]
    mean_c = jnp.dot(mean_g, gmatT, preferred_element_type=jnp.float32)   # [B, D]
    inv_c = jnp.dot(inv_g, gmatT, preferred_element_type=jnp.float32)     # [B, D]

    yn = (y - mean_c[:, None, :]) * inv_c[:, None, :]
    # fused: GroupNorm affine + sinusoidal position add (saves a full HBM round trip)
    out_ref[...] = yn * gamma_ref[...] + beta_ref[...] + pos_ref[...]


def gn_apply_add_pos(y, stats, gmat_t, gamma, beta, pos, *, t_tile):
    B, T, D = y.shape
    G = gmat_t.shape[0]
    nT = T // t_tile
    inv_cnt = 1.0 / float(T * (D // G))
    return pl.pallas_call(
        partial(_gn_apply_kernel, inv_cnt=inv_cnt),
        out_shape=jax.ShapeDtypeStruct((B, T, D), jnp.float32),
        grid=(nT,),
        in_specs=[
            pl.BlockSpec((B, t_tile, D), lambda t: (0, t, 0)),
            pl.BlockSpec((2, B, G), lambda t: (0, 0, 0)),
            pl.BlockSpec((G, D), lambda t: (0, 0)),
            pl.BlockSpec((1, D), lambda t: (0, 0)),
            pl.BlockSpec((1, D), lambda t: (0, 0)),
            pl.BlockSpec((t_tile, D), lambda t: (t, 0)),
        ],
        out_specs=pl.BlockSpec((B, t_tile, D), lambda t: (0, t, 0)),
        compiler_params=pltpu.CompilerParams(
            dimension_semantics=("parallel",),        # independent tiles -> 2 TCs on v7x
            vmem_limit_bytes=_VMEM_LIMIT),
    )(y, stats, gmat_t, gamma, beta, pos)


# ----------------------------------------------------------------------------
# Kernel 2: fused decoder stack (stand-in cross-attention, all layers in one call)
# ----------------------------------------------------------------------------
def _decoder_stack_kernel(tgt0_ref, qpos_ref, mem_ref, hs_ref, tgt_acc):
    l = pl.program_id(0)

    @pl.when(l == 0)
    def _():
        tgt_acc[...] = tgt0_ref[...]

    tgt = tgt_acc[...]                                   # [B, Q, D] f32 (carried in VMEM)
    D = tgt.shape[-1]
    q_b = (tgt + qpos_ref[...]).astype(jnp.bfloat16)
    mem_b = mem_ref[...]                                 # [B, T, D] bf16, resident across layers

    scale = 1.0 / math.sqrt(D)
    scores = jnp.einsum("bqd,btd->bqt", q_b, mem_b,
                        preferred_element_type=jnp.float32) * scale
    scores = scores - jnp.max(scores, axis=-1, keepdims=True)
    p = jnp.exp(scores)
    denom = jnp.sum(p, axis=-1, keepdims=True)
    p = p * pl.reciprocal(denom, approx=True)            # EUP slot, VALU stays free
    attn = jnp.einsum("bqt,btd->bqd", p.astype(jnp.bfloat16), mem_b,
                      preferred_element_type=jnp.float32)

    new_tgt = tgt + attn
    tgt_acc[...] = new_tgt
    hs_ref[0] = new_tgt


def decoder_stack(tgt0, qpos, mem_bf16, num_layers):
    B, Q, D = tgt0.shape
    T = mem_bf16.shape[1]
    L = num_layers
    flops = 4 * L * B * Q * T * D
    bytes_accessed = B * T * D * 2 + 2 * B * Q * D * 4 + L * B * Q * D * 4
    return pl.pallas_call(
        _decoder_stack_kernel,
        out_shape=jax.ShapeDtypeStruct((L, B, Q, D), jnp.float32),
        grid=(L,),
        in_specs=[
            pl.BlockSpec((B, Q, D), lambda l: (0, 0, 0)),
            pl.BlockSpec((B, Q, D), lambda l: (0, 0, 0)),
            pl.BlockSpec((B, T, D), lambda l: (0, 0, 0)),   # memory loaded ONCE, resident
        ],
        out_specs=pl.BlockSpec((1, B, Q, D), lambda l: (l, 0, 0, 0)),
        scratch_shapes=[pltpu.VMEM((B, Q, D), jnp.float32)],
        compiler_params=pltpu.CompilerParams(
            dimension_semantics=("arbitrary",),              # sequential carry of tgt
            vmem_limit_bytes=_VMEM_LIMIT),
        cost_estimate=pl.CostEstimate(flops=flops, transcendentals=L * B * Q * T,
                                      bytes_accessed=bytes_accessed),
    )(tgt0, qpos, mem_bf16)


# ----------------------------------------------------------------------------
# Kernel 3: detection heads over ALL decoder levels at once
#   class_embed Linear + segment_embed MLP(D->D->D->2) + inverse_sigmoid(ref) + sigmoid
#   (levels/batch/queries flattened to rows in the wrapper -> pure 2-D MXU matmuls)
# ----------------------------------------------------------------------------
def _head_kernel(x_ref, ref_ref, wc_ref, bc_ref, w1_ref, b1_ref, w2_ref, b2_ref,
                 w3_ref, b3_ref, logits_ref, coords_ref):
    x = x_ref[...]                                       # [N, D] rows (N = L*B*Q)

    # classification head
    logits = jnp.dot(x, wc_ref[...], preferred_element_type=jnp.float32) + bc_ref[...]

    # segment MLP (3 linear layers, ReLU between)
    h1 = jax.nn.relu(jnp.dot(x, w1_ref[...], preferred_element_type=jnp.float32) + b1_ref[...])
    h2 = jax.nn.relu(jnp.dot(h1, w2_ref[...], preferred_element_type=jnp.float32) + b2_ref[...])
    tmp = jnp.dot(h2, w3_ref[...], preferred_element_type=jnp.float32) + b3_ref[...]   # [N, 2]

    # inverse_sigmoid(reference), eps = 1e-5 (matches the TadTR util)
    eps = 1e-5
    r = jnp.clip(ref_ref[...], 0.0, 1.0)                 # [N, 1]
    inv_sig = jnp.log(jnp.maximum(r, eps)) - jnp.log(jnp.maximum(1.0 - r, eps))

    # reference has last dim 1 -> added only to the center coordinate (index 0)
    lane = jax.lax.broadcasted_iota(jnp.int32, tmp.shape, 1)
    tmp = tmp + jnp.where(lane == 0, inv_sig, 0.0)

    logits_ref[...] = logits
    coords_ref[...] = jax.nn.sigmoid(tmp)


def detection_heads(hs, refs, params):
    L, B, Q, D = hs.shape
    C = params["cls_w"].shape[1]
    N = L * B * Q
    x2 = hs.reshape(N, D)                                # free XLA reshapes in the wrapper
    r2 = refs.reshape(N, 1)
    logits, coords = pl.pallas_call(
        _head_kernel,
        out_shape=(jax.ShapeDtypeStruct((N, C), jnp.float32),
                   jax.ShapeDtypeStruct((N, 2), jnp.float32)),
        compiler_params=pltpu.CompilerParams(vmem_limit_bytes=_VMEM_LIMIT),
    )(x2, r2, params["cls_w"], params["cls_b"], params["seg_w1"], params["seg_b1"],
      params["seg_w2"], params["seg_b2"], params["seg_w3"], params["seg_b3"])
    return logits.reshape(L, B, Q, C), coords.reshape(L, B, Q, 2)


# ----------------------------------------------------------------------------
# Parameter init (deterministic, mirrors shapes / special inits in TadTR.__init__)
# ----------------------------------------------------------------------------
def init_params(key, *, c_in, hidden_dim, num_classes, num_queries):
    ks = jax.random.split(key, 8)
    D = hidden_dim
    p = {}

    # input_proj: Conv1d(2048, D, 1) xavier_uniform weight, zero bias
    limit = math.sqrt(6.0 / (c_in + D))
    p["proj_w"] = jax.random.uniform(ks[0], (c_in, D), jnp.float32, -limit, limit)
    p["proj_b"] = jnp.zeros((1, D), jnp.float32)
    # GroupNorm(32, D) affine params
    p["gn_gamma"] = jnp.ones((1, D), jnp.float32)
    p["gn_beta"] = jnp.zeros((1, D), jnp.float32)
    # one-hot group membership matrix [D, 32] (channel c -> group c // (D//32))
    num_groups = 32
    gmat = (jnp.arange(D)[:, None] // (D // num_groups)
            == jnp.arange(num_groups)[None, :]).astype(jnp.float32)
    p["gn_group_mat"] = gmat
    p["gn_group_mat_t"] = gmat.T

    # query_embed: nn.Embedding(num_queries, 2*D)
    p["query_embed"] = jax.random.normal(ks[1], (num_queries, 2 * D), jnp.float32)

    # reference-point projection (part of the transformer stand-in): D -> 1, sigmoid
    p["ref_w"] = jax.random.normal(ks[2], (D, 1), jnp.float32) * 0.02
    p["ref_b"] = jnp.zeros((1,), jnp.float32)

    # class_embed: Linear(D, num_classes), bias = -log((1 - 0.01) / 0.01)
    k = 1.0 / math.sqrt(D)
    p["cls_w"] = jax.random.uniform(ks[3], (D, num_classes), jnp.float32, -k, k)
    bias_value = -math.log((1.0 - 0.01) / 0.01)
    p["cls_b"] = jnp.full((1, num_classes), bias_value, jnp.float32)

    # segment_embed: MLP(D, D, 2, num_layers=3)
    p["seg_w1"] = jax.random.uniform(ks[4], (D, D), jnp.float32, -k, k)
    p["seg_b1"] = jax.random.uniform(ks[5], (1, D), jnp.float32, -k, k)
    p["seg_w2"] = jax.random.uniform(ks[6], (D, D), jnp.float32, -k, k)
    p["seg_b2"] = jax.random.uniform(ks[7], (1, D), jnp.float32, -k, k)
    # last layer: weight = 0, bias = [0, -2]  (constant_ 0 then bias[1:] = -2)
    p["seg_w3"] = jnp.zeros((D, 2), jnp.float32)
    p["seg_b3"] = jnp.array([[0.0, -2.0]], jnp.float32)
    return p


# ----------------------------------------------------------------------------
# Glue: positional embedding stand-in + full forward
# ----------------------------------------------------------------------------
def sine_pos_embed(T, D):
    pos = jnp.arange(T, dtype=jnp.float32)[:, None]
    dim_t = jnp.arange(D, dtype=jnp.float32)
    dim_t = 10000.0 ** (2.0 * (dim_t // 2) / D)
    angles = pos / dim_t
    return jnp.where(jnp.arange(D) % 2 == 0, jnp.sin(angles), jnp.cos(angles))   # [T, D]


def tadtr_forward(params, samples, *, num_decoder_layers):
    src, mask = samples                                   # src: [B, 2048, T]; mask unused (no padding)
    B, C_in, T = src.shape
    Q, twoD = params["query_embed"].shape
    D = twoD // 2

    t_tile = _pick_t_tile(T)

    # glue: NCW -> channel-last; bf16 for the big MXU contraction (f32 accumulation)
    src_t = jnp.transpose(src, (0, 2, 1)).astype(jnp.bfloat16)       # [B, T, C_in]
    w_b = params["proj_w"].astype(jnp.bfloat16)

    # input_proj[0]: Conv1d(k=1) + GroupNorm(32, D), two-pass over T tiles
    y, stats = proj_matmul_stats(src_t, w_b, params["proj_b"],
                                 params["gn_group_mat"], t_tile=t_tile)
    pos = sine_pos_embed(T, D)                            # [T, D] (external module stand-in)
    mem_pos = gn_apply_add_pos(y, stats, params["gn_group_mat_t"],
                               params["gn_gamma"], params["gn_beta"], pos,
                               t_tile=t_tile)             # memory + pos, fused

    # transformer stand-in: split query_embed into (query_pos, tgt), project reference points
    qpos, tgt = jnp.split(params["query_embed"], 2, axis=1)
    qpos = jnp.broadcast_to(qpos[None], (B, Q, D))
    tgt0 = jnp.broadcast_to(tgt[None], (B, Q, D))
    init_reference = jax.nn.sigmoid(qpos @ params["ref_w"] + params["ref_b"])   # [B, Q, 1]

    # fused decoder stack (Pallas kernel 2: one call for all L layers)
    mem_b = mem_pos.astype(jnp.bfloat16)                  # cast once in the wrapper
    hs = decoder_stack(tgt0, qpos, mem_b, num_decoder_layers)        # [L, B, Q, D]

    # with_segment_refine=False -> every decoder level uses init_reference
    L = num_decoder_layers
    refs = jnp.broadcast_to(init_reference[None], (L, B, Q, 1))

    # heads (Pallas kernel 3, all levels flattened into one call)
    outputs_class, outputs_coord = detection_heads(hs, refs, params)

    out = {"pred_logits": outputs_class[-1], "pred_segments": outputs_coord[-1]}
    # aux_loss=True
    out["aux_outputs"] = [{"pred_logits": outputs_class[l], "pred_segments": outputs_coord[l]}
                          for l in range(L - 1)]
    return out


if __name__ == "__main__":
    key = jax.random.PRNGKey(0)
    B, C_in, T = 2, 2048, 768
    hidden_dim, num_classes, num_queries, num_decoder_layers = 64, 8, 10, 2

    k_in, k_par = jax.random.split(key)
    src = jax.random.normal(k_in, (B, C_in, T), jnp.float32)
    mask = jnp.zeros((B, T), dtype=bool)

    params = init_params(k_par, c_in=C_in, hidden_dim=hidden_dim,
                         num_classes=num_classes, num_queries=num_queries)

    out = tadtr_forward(params, (src, mask), num_decoder_layers=num_decoder_layers)
    out = jax.block_until_ready(out)

    assert out["pred_logits"].shape == (B, num_queries, num_classes)
    assert out["pred_segments"].shape == (B, num_queries, 2)
    assert len(out["aux_outputs"]) == num_decoder_layers - 1
    assert bool(jnp.all(jnp.isfinite(out["pred_logits"])))
    assert bool(jnp.all((out["pred_segments"] >= 0.0) & (out["pred_segments"] <= 1.0)))
    print("KERNEL_OK")
</pallas_src>

<mosaic_0001>
module attributes {stable_mosaic.version = 11 : i64} {
  func.func @_proj_stats_kernel(%arg0: i32, %arg1: memref<2x256x2048xbf16, #tpu.memory_space<vmem>>, %arg2: memref<2048x64xbf16, #tpu.memory_space<vmem>>, %arg3: memref<1x64xf32, #tpu.memory_space<vmem>>, %arg4: memref<64x32xf32, #tpu.memory_space<vmem>>, %arg5: memref<2x256x64xf32, #tpu.memory_space<vmem>>, %arg6: memref<2x2x32xf32, #tpu.memory_space<vmem>>) attributes {dimension_semantics = [#tpu.dimension_semantics<arbitrary>], iteration_bounds = array<i64: 3>, scalar_prefetch = 0 : i64, scratch_operands = 0 : i64, tpu.core_type = #tpu.core_type<tc>, window_params = [{transform_indices = @transform_0, window_bounds = array<i64: 2, 256, 2048>}, {pipeline_mode = #tpu.pipeline_mode<synchronous>, transform_indices = @transform_1, window_bounds = array<i64: 2048, 64>}, {pipeline_mode = #tpu.pipeline_mode<synchronous>, transform_indices = @transform_2, window_bounds = array<i64: 1, 64>}, {pipeline_mode = #tpu.pipeline_mode<synchronous>, transform_indices = @transform_3, window_bounds = array<i64: 64, 32>}, {transform_indices = @transform_4, window_bounds = array<i64: 2, 256, 64>}, {pipeline_mode = #tpu.pipeline_mode<synchronous>, transform_indices = @transform_5, window_bounds = array<i64: 2, 2, 32>}]} {
    %c0_i32 = arith.constant 0 : i32
    %0 = arith.cmpi eq, %arg0, %c0_i32 : i32
    %1 = arith.extui %0 : i1 to i32
    %c0_i32_0 = arith.constant 0 : i32
    %2 = arith.cmpi ne, %1, %c0_i32_0 : i32
    scf.if %2 {
      %cst_27 = arith.constant 0.000000e+00 : f32
      %30 = vector.broadcast %cst_27 : f32 to vector<2x2x32xf32>
      %c0_28 = arith.constant 0 : index
      %c0_29 = arith.constant 0 : index
      %c0_30 = arith.constant 0 : index
      %31 = vector.load %arg6[%c0_28, %c0_29, %c0_30] : memref<2x2x32xf32, #tpu.memory_space<vmem>>, vector<2x2x32xf32>
      tpu.vector_store %arg6[%c0_28, %c0_29, %c0_30], %30 {strides = array<i32>} : memref<2x2x32xf32, #tpu.memory_space<vmem>>, vector<2x2x32xf32>,
    } else {
    }
    %c0 = arith.constant 0 : index
    %c0_1 = arith.constant 0 : index
    %c0_2 = arith.constant 0 : index
    %3 = vector.load %arg1[%c0, %c0_1, %c0_2] : memref<2x256x2048xbf16, #tpu.memory_space<vmem>>, vector<2x256x2048xbf16>
    %4 = vector.shape_cast %3 : vector<2x256x2048xbf16> to vector<512x2048xbf16>
    %c0_3 = arith.constant 0 : index
    %c0_4 = arith.constant 0 : index
    %5 = vector.load %arg2[%c0_3, %c0_4] : memref<2048x64xbf16, #tpu.memory_space<vmem>>, vector<2048x64xbf16>
    %cst = arith.constant dense<0.000000e+00> : vector<512x64xf32>
    %6 = tpu.matmul %4, %5, %cst {dimension_numbers = #tpu.dot_dimension_numbers<[1], [0], [0], [1], [0, 0, 1, 1], [], []>} : vector<512x2048xbf16>, vector<2048x64xbf16>, vector<512x64xf32> -> vector<512x64xf32>
    %c0_5 = arith.constant 0 : index
    %c0_6 = arith.constant 0 : index
    %7 = vector.load %arg3[%c0_5, %c0_6] : memref<1x64xf32, #tpu.memory_space<vmem>>, vector<1x64xf32>
    %8 = vector.broadcast %7 : vector<1x64xf32> to vector<512x64xf32>
    %9 = arith.addf %6, %8 : vector<512x64xf32>
    %10 = vector.shape_cast %9 : vector<512x64xf32> to vector<2x256x64xf32>
    %c0_7 = arith.constant 0 : index
    %c0_8 = arith.constant 0 : index
    %c0_9 = arith.constant 0 : index
    %11 = vector.load %arg5[%c0_7, %c0_8, %c0_9] : memref<2x256x64xf32, #tpu.memory_space<vmem>>, vector<2x256x64xf32>
    tpu.vector_store %arg5[%c0_7, %c0_8, %c0_9], %10 {strides = array<i32>} : memref<2x256x64xf32, #tpu.memory_space<vmem>>, vector<2x256x64xf32>,
    %cst_10 = arith.constant dense<0.000000e+00> : vector<2x64xf32>
    %12 = vector.multi_reduction <add>, %10, %cst_10 [1] : vector<2x256x64xf32> to vector<2x64xf32>
    %13 = arith.mulf %10, %10 : vector<2x256x64xf32>
    %cst_11 = arith.constant dense<0.000000e+00> : vector<2x64xf32>
    %14 = vector.multi_reduction <add>, %13, %cst_11 [1] : vector<2x256x64xf32> to vector<2x64xf32>
    %c0_12 = arith.constant 0 : index
    %c0_13 = arith.constant 0 : index
    %15 = vector.load %arg4[%c0_12, %c0_13] : memref<64x32xf32, #tpu.memory_space<vmem>>, vector<64x32xf32>
    %c0_14 = arith.constant 0 : index
    %c0_15 = arith.constant 0 : index
    %c0_16 = arith.constant 0 : index
    %16 = vector.load %arg6[%c0_14, %c0_15, %c0_16] : memref<2x2x32xf32, #tpu.memory_space<vmem>>, vector<1x2x32xf32>
    %17 = vector.shape_cast %16 : vector<1x2x32xf32> to vector<2x32xf32>
    %cst_17 = arith.constant dense<0.000000e+00> : vector<2x32xf32>
    %18 = tpu.matmul %12, %15, %cst_17 {dimension_numbers = #tpu.dot_dimension_numbers<[1], [0], [0], [1], [0, 0, 1, 1], [], []>} : vector<2x64xf32>, vector<64x32xf32>, vector<2x32xf32> -> vector<2x32xf32>
    %19 = arith.addf %17, %18 : vector<2x32xf32>
    %c0_18 = arith.constant 0 : index
    %c0_19 = arith.constant 0 : index
    %c0_20 = arith.constant 0 : index
    %20 = vector.load %arg6[%c0_18, %c0_19, %c0_20] : memref<2x2x32xf32, #tpu.memory_space<vmem>>, vector<1x2x32xf32>
    %21 = vector.shape_cast %20 : vector<1x2x32xf32> to vector<2x32xf32>
    %22 = vector.shape_cast %19 : vector<2x32xf32> to vector<1x2x32xf32>
    tpu.vector_store %arg6[%c0_18, %c0_19, %c0_20], %22 {strides = array<i32>} : memref<2x2x32xf32, #tpu.memory_space<vmem>>, vector<1x2x32xf32>,
    %c1 = arith.constant 1 : index
    %c0_21 = arith.constant 0 : index
    %c0_22 = arith.constant 0 : index
    %23 = vector.load %arg6[%c1, %c0_21, %c0_22] : memref<2x2x32xf32, #tpu.memory_space<vmem>>, vector<1x2x32xf32>
    %24 = vector.shape_cast %23 : vector<1x2x32xf32> to vector<2x32xf32>
    %cst_23 = arith.constant dense<0.000000e+00> : vector<2x32xf32>
    %25 = tpu.matmul %14, %15, %cst_23 {dimension_numbers = #tpu.dot_dimension_numbers<[1], [0], [0], [1], [0, 0, 1, 1], [], []>} : vector<2x64xf32>, vector<64x32xf32>, vector<2x32xf32> -> vector<2x32xf32>
    %26 = arith.addf %24, %25 : vector<2x32xf32>
    %c1_24 = arith.constant 1 : index
    %c0_25 = arith.constant 0 : index
    %c0_26 = arith.constant 0 : index
    %27 = vector.load %arg6[%c1_24, %c0_25, %c0_26] : memref<2x2x32xf32, #tpu.memory_space<vmem>>, vector<1x2x32xf32>
    %28 = vector.shape_cast %27 : vector<1x2x32xf32> to vector<2x32xf32>
    %29 = vector.shape_cast %26 : vector<2x32xf32> to vector<1x2x32xf32>
    tpu.vector_store %arg6[%c1_24, %c0_25, %c0_26], %29 {strides = array<i32>} : memref<2x2x32xf32, #tpu.memory_space<vmem>>, vector<1x2x32xf32>,
    return
  }
  func.func @transform_0(%arg0: i32) -> (i32, i32, i32) {
    %c0_i32 = arith.constant 0 : i32
    %c0_i32_0 = arith.constant 0 : i32
    %c0_i32_1 = arith.constant 0 : i32
    return %c0_i32, %arg0, %c0_i32_0 : i32, i32, i32
  }
  func.func @transform_1(%arg0: i32) -> (i32, i32) {
    %c0_i32 = arith.constant 0 : i32
    %c0_i32_0 = arith.constant 0 : i32
    %c0_i32_1 = arith.constant 0 : i32
    return %c0_i32, %c0_i32_0 : i32, i32
  }
  func.func @transform_2(%arg0: i32) -> (i32, i32) {
    %c0_i32 = arith.constant 0 : i32
    %c0_i32_0 = arith.constant 0 : i32
    %c0_i32_1 = arith.constant 0 : i32
    return %c0_i32, %c0_i32_0 : i32, i32
  }
  func.func @transform_3(%arg0: i32) -> (i32, i32) {
    %c0_i32 = arith.constant 0 : i32
    %c0_i32_0 = arith.constant 0 : i32
    %c0_i32_1 = arith.constant 0 : i32
    return %c0_i32, %c0_i32_0 : i32, i32
  }
  func.func @transform_4(%arg0: i32) -> (i32, i32, i32) {
    %c0_i32 = arith.constant 0 : i32
    %c0_i32_0 = arith.constant 0 : i32
    %c0_i32_1 = arith.constant 0 : i32
    return %c0_i32, %arg0, %c0_i32_0 : i32, i32, i32
  }
  func.func @transform_5(%arg0: i32) -> (i32, i32, i32) {
    %c0_i32 = arith.constant 0 : i32
    %c0_i32_0 = arith.constant 0 : i32
    %c0_i32_1 = arith.constant 0 : i32
    %c0_i32_2 = arith.constant 0 : i32
    return %c0_i32, %c0_i32_0, %c0_i32_1 : i32, i32, i32
  }
}

</mosaic_0001>

<bundles_post_ra>
// kernel: tpu_custom_call.1
= control target key start
LH: loop header
LB: loop body
LE: loop exit
PB: predicated region body
PF: predicated region fallthrough
CT: control target
= control target key end

     0   :  { %11 = vsyncpa [#allocation3], 0  ;;  %s11791_s0 = inlined_call_operand.hbm [shape: bf16[2,768,2048], index: 0, kind: input, shape index: {}]   ;;  %s11792_s1 = inlined_call_operand.vmem [shape: bf16[2048,64], index: 1, kind: input, shape index: {}]   ;;  %s11793_s2 = inlined_call_operand.hbm [shape: f32[1,64], index: 2, kind: input, shape index: {}]   ;;  %s11794_s3 = inlined_call_operand.vmem [shape: f32[64,32], index: 3, kind: input, shape index: {}]   ;;  %s11795_s4 = inlined_call_operand.vmem [shape: f32[2,768,64], index: 4, kind: output, shape index: {0}]   ;;  %s11796_s5 = inlined_call_operand.hbm [shape: f32[2,2,32], index: 5, kind: output, shape index: {1}]  }
   0x1   :  { %13 = vsyncpa [#allocation3 + $0x1], 0 }
   0x2   :  { %14 = vsyncpa [#allocation6], 0 }
   0x3   :  { %15 = vsyncpa [#allocation4], 0  ;;  %s9624_s18 = smov 0   ;;  %s9626_s19 = smov 0  }
   0x4   :  { %s9628_s20 = smov 0   ;;  %s9630_s21 = smov 0  }
   0x5 LB: > { %s9643_s22 = sadd.s32 4294967295, %s9577_s21   ;;  %s9646_s23 = sadd.s32 1, %s9577_s21   ;;  %s9577_s21 = sphi %s9630_s21, %s11888_s21   ;;  %s9573_s20 = sphi %s9628_s20, %s11887_s20   ;;  %s9569_s19 = sphi %s9626_s19, %s11886_s19   ;;  %s9565_s18 = sphi %s9624_s18, %s11885_s18  }
   0x6   : > { %s25_s24 = ssub.s32 %s9577_s21, %s9646_s23  ;;  %s28_s25 = sadd.s32 1, %s9573_s20 }
   0x7   : > { %p26_p0 = scmp.eq.s32.totalorder %s25_s24, 0  ;;  %p35_p1 = scmp.ne.s32.totalorder %s9573_s20, %s9569_s19 }
   0x8   : > { %p36_p2 = scmp.eq.s32.totalorder %s9577_s21, 0  ;;  %p41_p3 = scmp.ne.s32.totalorder %s9569_s19, %s9565_s18 }
   0x9   : > { %s9656_s26 = scalar_select %p26_p0, %s9573_s20, %s28_s25  }
   0xa   : > { %p9658_p4 = por %p36_p2, %p35_p1  ;;  %p11798_p5 = scmp.eq.s32.totalorder %s9643_s22, 0 }
   0xb   : > { %p11797_p6 = scmp.eq.s32.totalorder %s9643_s22, 2  ;;  %p7667_p7 = scmp.ge.s32.totalorder %s9577_s21, 1 }
   0xc   : > { %s11809_s27 = scalar_select %p9658_p4, 1, 0 }
   0xd   : > { %p9667_p8 = por %p11798_p5, %p41_p3  ;;  %p162_p9 = scmp.lt.s32.totalorder %s9577_s21, 4 }
   0xe   : > { %p9674_p10 = por %p11797_p6, %p35_p1  ;;  %s9579_s6 = smov [#allocation5]  }
   0xf   : > { %s11810_s28 = scalar_select %p9667_p8, 1, 0 }
  0x10   : > { %s11811_s29 = scalar_select %p9674_p10, 1, 0 }
  0x11   : > { %p9679_p12 = pnand %p7667_p7, %p162_p9  ;;  %s178_s7 = sshll.u32 %s9579_s6, 4  ;;  %s179_s7 = int_to_ptr.vmem [resolvable:$true] %s178_s7 }
  0x12   : > { %s9481_s11 = scalar_lea.hbm %s11793_s2, 16 }
  0x13   : > { %s11812_s30 = scalar_select %p9679_p12, 1, 0 }
  0x14   : > { %p9297_p13 = pneg %p9679_p12  ;;  %p9482_p1 = scmp.ne.s32.totalorder %s11793_s2, %s9481_s11 }
  0x15   : > { %p9488_p9 = scmp.lt.u32.totalorder %s9481_s11, %s11793_s2 }
  0x16   : > { %p9687_p0 = pnand %p9297_p13, %p11798_p5 }
  0x18   : > { %p9483_p2 = pneg %p9687_p0 }
  0x1a   : > { %p9484_p3 = pnand %p9483_p2, %p9482_p1 }
  0x1c   : > { %p9485_p7 = pneg %p9484_p3 }
  0x1e   : > { %p9490_p13 = pnand %p9488_p9, %p9485_p7 }
  0x20   : > { %9493 = shalt.err (!%p9490_p13)
}
  0x21   : > { %s9494_s16 = scalar_lea.vmem %s179_s7, 16  ;;  %s9501_s17 = scalar_lea.vmem %s179_s7, 32 }
  0x22   : > { %p9495_p6 = scmp.ne.s32.totalorder %s179_s7, %s9494_s16  ;;  %p9502_p10 = scmp.lt.s32.totalorder %s179_s7, %s179_s7 }
  0x23   : > { %p9503_p8 = scmp.lt.s32.totalorder %s9501_s17, %s9494_s16 }
  0x24   : > { %p9497_p11 = pnand %p9495_p6, %p9483_p2 }
  0x25   : > { %p9504_p12 = por %p9503_p8, %p9502_p10 }
  0x26   : > { %p9498_p5 = pneg %p9497_p11 }
  0x28   : > { %p9505_p4 = pnand %p9504_p12, %p9498_p5 }
  0x2a   : > { %9508 = shalt.err (!%p9505_p4)
}
  0x2b   : > { %9300 = dma.hbm_to_vmem [thread:$0]  (!%p9687_p0), %s11793_s2, 16, %s179_s7, [#allocation6]  }
  0x2c   : > { %p7669_p1 = scmp.ge.s32.totalorder %s9577_s21, 3 }
  0x2e   : > { %188 = sbr.rel (%p7669_p1) target bundleno = 68 (0x44), region = 28 }
  0x35   : > { %s192_s25 = sand.u32 1, %s9573_s20   ;;  %s8332_s6 = sshll.u32 %s9577_s21, 15 }
  0x36   : > { %s7670_s9 = sshll.u32 %s192_s25, 12  ;;  %s203_s11 = scalar_lea.hbm %s11791_s0, %s8332_s6 }
  0x37   : > { %p11814_p4 = scmp.ne.s32.totalorder %s11809_s27, 0  ;;  %s196_s12 = scalar_lea.vmem [#allocation2], %s7670_s9 }
  0x38   : > { %s216_s13 = sshll.u32 %s196_s12, 4  ;;  %s9580_s15 = smov 98304   ;;  %s217_s13 = int_to_ptr.vmem [resolvable:$true] %s216_s13 }
  0x39   : > { %s9282_s7 = scalar_select %p11814_p4, [#allocation0], [#allocation11] }
  0x3a   : > { %9283 = sst [smem:[#allocation10]] (%p11814_p4), %s9580_s15  ;;  %s9581_s16 = smov 32768  }
  0x3b   : > { %s208_s14 = sld [smem:[%s9282_s7]]   ;;  %s9582_s21 = smov 32  }
  0x3c   : > { %9284 = sst [smem:[#allocation10 + $0x1]] (%p11814_p4), %s9581_s16  ;;  %s9583_s17 = smov 1024  }
  0x3d   : > { %9285 = sst [smem:[#allocation10 + $0x2]] (%p11814_p4), %s9582_s21  ;;  %s9584_s24 = smov 64  }
  0x3e   : > { %9286 = sst [smem:[#allocation10 + $0x3]] (%p11814_p4), %s9583_s17  ;;  %s193_s9 = scalar_lea.sflag [#allocation3], %s192_s25 }
  0x3f   : > { %9287 = sst [smem:[#allocation10 + $0x4]] (%p11814_p4), %s9583_s17  ;;  %s9585_s10 = smov [#allocation9]  }
  0x40   : > { %9288 = sst [smem:[#allocation10 + $0x5]] (%p11814_p4), %s9584_s24 }
  0x41   : > { %s7674_s18 = sshll.u32 %s208_s14, 26 }
  0x42   : > { %s7675_s6 = sadd.s32 134217728, %s7674_s18 }
  0x43   : > { %9289 = dma.general (%p11814_p4), %s203_s11, 65536, %s217_s13, %s193_s9, %s9585_s10, [#allocation10], %s7675_s6, 0  }
  0x44 PF: > { %p11815_p5 = scmp.ne.s32.totalorder %s11812_s30, 0 }
  0x46   : > { %241 = sbr.rel (%p11815_p5) target bundleno = 1737 (0x6c9), region = 36 }
  0x4d   : > { %s243_s8 = sand.u32 1, %s9569_s19   ;;  %p11816_p6 = scmp.ne.s32.totalorder %s11810_s28, 0 }
  0x4e   : > { %s7677_s7 = sshll.u32 %s243_s8, 12  ;;  %s244_s12 = scalar_lea.sflag [#allocation3], %s243_s8 }
  0x4f   : > { %s9732_s15 = scalar_lea.vmem [#allocation2], %s7677_s7 }
  0x50   : > { %9552 = dma.done.wait (%p11816_p6), %s244_s12, 65536  }
  0x51   : > { %9554 = vsyncadd (%p11816_p6), %s244_s12, 4294901760  ;;  %p11817_p8 = scmp.eq.s32.totalorder %s9643_s22, 0 }
  0x53   : > { %9556 = dma.done.wait (%p11817_p8), [#allocation6], 16   ;;  %p11818_p10 = pmov %p11817_p8 }
  0x54   : > { %s7679_s27 = sshll.u32 %s243_s8, 9  ;;  %p11819_p11 = scmp.ne.s32.totalorder %s9643_s22, 0 }
  0x55   : > { %9558 = vsyncadd (%p11818_p10), [#allocation6], 4294967280  ;;  %s9742_s30 = scalar_lea.vmem [#allocation7], %s7679_s27  ;;  %vm284_vm0 = vcmask (!%p11819_p11), 254976   ;;  %v9586_v0 = vmov (!%p11819_p11), 0.0  }
  0x56   : > { %283 = sbr.rel (%p11819_p11) target bundleno = 93 (0x5d), region = 48  ;;  %285 = vst.msk [vmem:[#allocation8] sm:$0x3] (!%p11819_p11), %vm284_vm0, %v9586_v0  ;;  %286 = vst.msk [vmem:[#allocation8 + $0x2] sm:$0x3] (!%p11819_p11), %vm284_vm0, %v9586_v0 }
  0x5d PF: > { %v9352_v1 = vld [vmem:[%s11792_s1] sm:$0xff]   ;;  %v9587_v2 = vmov 0   ;;  %v9354_v4 = vld [vmem:[%s11792_s1 + $0x8] sm:$0xff]   ;;  %v9356_v6 = vld [vmem:[%s11792_s1 + $0x10] sm:$0xff]   ;;  %vm6702_vm1 = vcmask 523264   ;;  %vm9589_vm2 = vmmov 0  }
  0x5e   : > { %4390 = vmatprep.subr.bf16.mxu1 %v9587_v2  ;;  %5257 = vmatprep.subr.bf16.mxu0 %v9587_v2  ;;  %v9353_v3 = vld [vmem:[%s11792_s1 + $0x180] sm:$0xff]   ;;  %v9355_v5 = vld [vmem:[%s11792_s1 + $0x188] sm:$0xff]   ;;  %v9357_v7 = vld [vmem:[%s11792_s1 + $0x190] sm:$0xff]   ;;  %vm7118_vm3 = vcmask 1041409   ;;  %vm7193_vm4 = vcmask 254976   ;;  %p11879_p12 = scmp.ne.s32.totalorder %s11811_s29, 0 }
  0x5f   : > { %4391 = vmatpush1.bf16.msra.mxu1 %v9352_v1  ;;  %5258 = vmatpush1.bf16.msra.mxu0 %v9353_v3  ;;  %v9358_v8 = vld [vmem:[%s11792_s1 + $0x18] sm:$0xff]   ;;  %v9360_v10 = vld [vmem:[%s11792_s1 + $0x20] sm:$0xff]   ;;  %v9362_v12 = vld [vmem:[%s11792_s1 + $0x28] sm:$0xff]   ;;  %s8333_s27 = sshll.u32 (%p11879_p12), %s9643_s22, 8 }
  0x60   : > { %4392 = vmatprep.subr.bf16.mxu1 %v9587_v2  ;;  %5259 = vmatprep.subr.bf16.mxu0 %v9587_v2  ;;  %v9359_v9 = vld [vmem:[%s11792_s1 + $0x198] sm:$0xff]   ;;  %v9361_v11 = vld [vmem:[%s11792_s1 + $0x1a0] sm:$0xff]   ;;  %v9363_v13 = vld [vmem:[%s11792_s1 + $0x1a8] sm:$0xff]   ;;  %s11629_s11 = scalar_lea.vmem (%p11879_p12), %s11795_s4, %s8333_s27 }
  0x61   : > { %v9364_v14 = vld [vmem:[%s11792_s1 + $0x30] sm:$0xff]   ;;  %v9366_v16 = vld [vmem:[%s11792_s1 + $0x38] sm:$0xff]   ;;  %v9368_v18 = vld [vmem:[%s11792_s1 + $0x40] sm:$0xff]  }
  0x62   : > { %v9365_v15 = vld [vmem:[%s11792_s1 + $0x1b0] sm:$0xff]   ;;  %v9367_v17 = vld [vmem:[%s11792_s1 + $0x1b8] sm:$0xff]   ;;  %v9369_v19 = vld [vmem:[%s11792_s1 + $0x1c0] sm:$0xff]  }
  0x63   : > { %4393 = vmatpush1.bf16.msra.mxu1 %v9354_v4  ;;  %5260 = vmatpush1.bf16.msra.mxu0 %v9355_v5  ;;  %v9819_v20 = vld [vmem:[%s9732_s15] sm:$0xff]  ;;  %v9825_v22 = vld [vmem:[%s9732_s15 + $0x18] sm:$0xff]  ;;  %v9370_v25 = vld [vmem:[%s11792_s1 + $0x48] sm:$0xff]  }
  0x64   : > { %4394 = vmatprep.subr.bf16.mxu1 %v9587_v2  ;;  %5261 = vmatprep.subr.bf16.mxu0 %v9587_v2  ;;  %v9822_v21 = vld [vmem:[%s9732_s15 + $0x40] sm:$0xff]  ;;  %v298_v24 = vld [vmem:[%s9732_s15 + $0x58] sm:$0xff]  ;;  %v9371_v27 = vld [vmem:[%s11792_s1 + $0x1c8] sm:$0xff]  }
  0x65   : > { %v7683_v23 = vcombine.high %v9819_v20, %v9822_v21  ;;  %v7689_v26 = vcombine.high %v9825_v22, %v298_v24  ;;  %v9372_v28 = vld [vmem:[%s11792_s1 + $0x50] sm:$0xff]   ;;  %v9374_v30 = vld [vmem:[%s11792_s1 + $0x58] sm:$0xff]   ;;  %v9376_v32 = vld [vmem:[%s11792_s1 + $0x60] sm:$0xff]   ;;  %v7682_v44 = vcombine.low %v9819_v20, %v9822_v21  ;;  %v7688_v45 = vcombine.low %v9825_v22, %v298_v24 }
  0x66   : > { %v9373_v29 = vld [vmem:[%s11792_s1 + $0x1d0] sm:$0xff]   ;;  %v9375_v31 = vld [vmem:[%s11792_s1 + $0x1d8] sm:$0xff]   ;;  %v9377_v33 = vld [vmem:[%s11792_s1 + $0x1e0] sm:$0xff]  }
  0x67   : > { %4395 = vmatpush1.bf16.msra.mxu1 %v9356_v6  ;;  %5262 = vmatpush1.bf16.msra.mxu0 %v9357_v7  ;;  %v9378_v34 = vld [vmem:[%s11792_s1 + $0x68] sm:$0xff]   ;;  %v9380_v36 = vld [vmem:[%s11792_s1 + $0x70] sm:$0xff]   ;;  %v9382_v38 = vld [vmem:[%s11792_s1 + $0x78] sm:$0xff]  }
  0x68   : > { %4396 = vmatprep.subr.bf16.mxu1 %v9587_v2  ;;  %5263 = vmatprep.subr.bf16.mxu0 %v9587_v2  ;;  %v9379_v35 = vld [vmem:[%s11792_s1 + $0x1e8] sm:$0xff]   ;;  %v9381_v37 = vld [vmem:[%s11792_s1 + $0x1f0] sm:$0xff]   ;;  %v9383_v39 = vld [vmem:[%s11792_s1 + $0x1f8] sm:$0xff]  }
  0x69   : > { %4422 = vmatprep.mubr.bf16.mxu1 %v7683_v23  ;;  %5289 = vmatprep.mubr.bf16.mxu0 %v7689_v26  ;;  %v303_v40 = vld [vmem:[%s9732_s15 + $0x80] sm:$0xff]  ;;  %v306_v42 = vld [vmem:[%s9732_s15 + $0x98] sm:$0xff]  ;;  %v9385_v52 = vld [vmem:[%s11792_s1 + $0x208] sm:$0xff]  }
  0x6a   : > { %v311_v41 = vld [vmem:[%s9732_s15 + $0xc0] sm:$0xff]  ;;  %v314_v43 = vld [vmem:[%s9732_s15 + $0xd8] sm:$0xff]  ;;  %v9391_v55 = vld [vmem:[%s11792_s1 + $0x88] sm:$0xff]  }
  0x6b   : > { %4397 = vmatpush1.bf16.msra.mxu1 %v9358_v8  ;;  %5264 = vmatpush1.bf16.msra.mxu0 %v9359_v9  ;;  %v7699_v46 = vcombine.high %v303_v40, %v311_v41  ;;  %v9384_v47 = vld [vmem:[%s11792_s1 + $0x200] sm:$0xff]   ;;  %v7705_v48 = vcombine.high %v306_v42, %v314_v43  ;;  %v322_v53 = vld [vmem:[%s9732_s15 + $0x118] sm:$0xff]  ;;  %v7698_v56 = vcombine.low %v303_v40, %v311_v41  ;;  %v9386_v57 = vld [vmem:[%s11792_s1 + $0x210] sm:$0xff]  }
  0x6c   : > { %4398 = vmatprep.subr.bf16.mxu1 %v9587_v2  ;;  %5265 = vmatprep.subr.bf16.mxu0 %v9587_v2  ;;  %v9389_v49 = vld [vmem:[%s11792_s1 + $0x80] sm:$0xff]   ;;  %v330_v54 = vld [vmem:[%s9732_s15 + $0x158] sm:$0xff]  ;;  %v7704_v58 = vcombine.low %v306_v42, %v314_v43  ;;  %v9393_v60 = vld [vmem:[%s11792_s1 + $0x90] sm:$0xff]  }
  0x6d   : > { %v319_v50 = vld [vmem:[%s9732_s15 + $0x100] sm:$0xff]  ;;  %v7721_v61 = vcombine.high %v322_v53, %v330_v54  ;;  %v338_v0 = vld [vmem:[%s9732_s15 + $0x198] sm:$0xff]  ;;  %v7720_v7 = vcombine.low %v322_v53, %v330_v54  ;;  %v9399_v24 = vld [vmem:[%s11792_s1 + $0xa8] sm:$0xff]  }
  0x6e   : > { %v327_v51 = vld [vmem:[%s9732_s15 + $0x140] sm:$0xff]  ;;  %v346_v1 = vld [vmem:[%s9732_s15 + $0x1d8] sm:$0xff] }
  0x6f   : > { %4399 = vmatpush1.bf16.msra.mxu1 %v9360_v10  ;;  %5266 = vmatpush1.bf16.msra.mxu0 %v9361_v11  ;;  %v7715_v59 = vcombine.high %v319_v50, %v327_v51  ;;  %v335_v62 = vld [vmem:[%s9732_s15 + $0x180] sm:$0xff]  ;;  %v9387_v3 = vld [vmem:[%s11792_s1 + $0x218] sm:$0xff]   ;;  %v7714_v5 = vcombine.low %v319_v50, %v327_v51  ;;  %v7737_v10 = vcombine.high %v338_v0, %v346_v1 }
  0x70   : > { %4400 = vmatprep.subr.bf16.mxu1 %v9587_v2  ;;  %5267 = vmatprep.subr.bf16.mxu0 %v9587_v2  ;;  %v343_v63 = vld [vmem:[%s9732_s15 + $0x1c0] sm:$0xff]  ;;  %v9395_v4 = vld [vmem:[%s11792_s1 + $0x98] sm:$0xff]  }
  0x71   : > { %v9388_v6 = vld [vmem:[%s11792_s1 + $0x220] sm:$0xff]   ;;  %v7731_v8 = vcombine.high %v335_v62, %v343_v63  ;;  %v370_v23 = vld [vmem:[%s9732_s15 + $0x298] sm:$0xff] }
  0x72   : > { %v9397_v9 = vld [vmem:[%s11792_s1 + $0xa0] sm:$0xff]   ;;  %v9394_v26 = vld [vmem:[%s11792_s1 + $0x238] sm:$0xff]  }
  0x73   : > { %4401 = vmatpush1.bf16.msra.mxu1 %v9362_v12  ;;  %5268 = vmatpush1.bf16.msra.mxu0 %v9363_v13  ;;  %v351_v11 = vld [vmem:[%s9732_s15 + $0x200] sm:$0xff]  ;;  %v354_v13 = vld [vmem:[%s9732_s15 + $0x218] sm:$0xff] }
  0x74   : > { %4402 = vmatprep.subr.bf16.mxu1 %v9587_v2  ;;  %5269 = vmatprep.subr.bf16.mxu0 %v9587_v2  ;;  %v359_v12 = vld [vmem:[%s9732_s15 + $0x240] sm:$0xff]  ;;  %v9402_v53 = vld [vmem:[%s11792_s1 + $0x258] sm:$0xff]  }
  0x75   : > { %v367_v21 = vld [vmem:[%s9732_s15 + $0x280] sm:$0xff]  ;;  %v418_v54 = vld [vmem:[%s9732_s15 + $0x418] sm:$0xff] }
  0x76   : > { %v375_v22 = vld [vmem:[%s9732_s15 + $0x2c0] sm:$0xff] }
  0x77   : > { %4403 = vmatpush1.bf16.msra.mxu1 %v9364_v14  ;;  %5270 = vmatpush1.bf16.msra.mxu0 %v9365_v15  ;;  %v362_v14 = vld [vmem:[%s9732_s15 + $0x258] sm:$0xff]  ;;  %v9390_v15 = vld [vmem:[%s11792_s1 + $0x228] sm:$0xff]   ;;  %v399_v42 = vld [vmem:[%s9732_s15 + $0x380] sm:$0xff] }
  0x78   : > { %4404 = vmatprep.subr.bf16.mxu1 %v9587_v2  ;;  %5271 = vmatprep.subr.bf16.mxu0 %v9587_v2  ;;  %v7753_v20 = vcombine.high %v354_v13, %v362_v14  ;;  %v407_v43 = vld [vmem:[%s9732_s15 + $0x3c0] sm:$0xff] }
  0x79   : > { %v415_v51 = vld [vmem:[%s9732_s15 + $0x400] sm:$0xff] }
  0x7b   : > { %4405 = vmatpush1.bf16.msra.mxu1 %v9366_v16  ;;  %5272 = vmatpush1.bf16.msra.mxu0 %v9367_v17  ;;  %v7730_v16 = vcombine.low %v335_v62, %v343_v63  ;;  %v9392_v17 = vld [vmem:[%s11792_s1 + $0x230] sm:$0xff]   ;;  %v9403_v62 = vld [vmem:[%s11792_s1 + $0xb8] sm:$0xff]  }
  0x7c   : > { %4406 = vmatprep.subr.bf16.mxu1 %v9587_v2  ;;  %5273 = vmatprep.subr.bf16.mxu0 %v9587_v2  ;;  %v434_v63 = vld [vmem:[%s9732_s15 + $0x498] sm:$0xff] }
  0x7f   : > { %4407 = vmatpush1.bf16.msra.mxu1 %v9368_v18  ;;  %5274 = vmatpush1.bf16.msra.mxu0 %v9369_v19  ;;  %v7736_v18 = vcombine.low %v338_v0, %v346_v1  ;;  %v7747_v19 = vcombine.high %v351_v11, %v359_v12  ;;  %v442_v0 = vld [vmem:[%s9732_s15 + $0x4d8] sm:$0xff] }
  0x80   : > { %4408 = vmatprep.subr.bf16.mxu1 %v9587_v2  ;;  %5275 = vmatprep.subr.bf16.mxu0 %v9587_v2 }
  0x83   : > { %4409 = vmatpush1.bf16.msra.mxu1 %v9370_v25  ;;  %5276 = vmatpush1.bf16.msra.mxu0 %v9371_v27  ;;  %v378_v25 = vld [vmem:[%s9732_s15 + $0x2d8] sm:$0xff]  ;;  %v7746_v27 = vcombine.low %v351_v11, %v359_v12  ;;  %v7832_v12 = vcombine.low %v434_v63, %v442_v0 }
  0x84   : > { %4410 = vmatprep.subr.bf16.mxu1 %v9587_v2  ;;  %5277 = vmatprep.subr.bf16.mxu0 %v9587_v2 }
  0x87   : > { %4411 = vmatpush1.bf16.msra.mxu1 %v9372_v28  ;;  %5278 = vmatpush1.bf16.msra.mxu0 %v9373_v29  ;;  %v9396_v28 = vld [vmem:[%s11792_s1 + $0x240] sm:$0xff]   ;;  %v7752_v29 = vcombine.low %v354_v13, %v362_v14 }
  0x88   : > { %4412 = vmatprep.subr.bf16.mxu1 %v9587_v2  ;;  %5279 = vmatprep.subr.bf16.mxu0 %v9587_v2 }
  0x8b   : > { %4413 = vmatpush1.bf16.msra.mxu1 %v9374_v30  ;;  %5280 = vmatpush1.bf16.msra.mxu0 %v9375_v31  ;;  %v7763_v30 = vcombine.high %v367_v21, %v375_v22  ;;  %v7769_v31 = vcombine.high %v370_v23, %v378_v25 }
  0x8c   : > { %4414 = vmatprep.subr.bf16.mxu1 %v9587_v2  ;;  %5281 = vmatprep.subr.bf16.mxu0 %v9587_v2 }
  0x8f   : > { %4415 = vmatpush1.bf16.msra.mxu1 %v9376_v32  ;;  %5282 = vmatpush1.bf16.msra.mxu0 %v9377_v33  ;;  %v383_v32 = vld [vmem:[%s9732_s15 + $0x300] sm:$0xff] }
  0x90   : > { %4416 = vmatprep.subr.bf16.mxu1 %v9587_v2  ;;  %5283 = vmatprep.subr.bf16.mxu0 %v9587_v2  ;;  %v391_v33 = vld [vmem:[%s9732_s15 + $0x340] sm:$0xff] }
  0x91   : > { %v7779_v40 = vcombine.high %v383_v32, %v391_v33 }
  0x93   : > { %4417 = vmatpush1.bf16.msra.mxu1 %v9378_v34  ;;  %5284 = vmatpush1.bf16.msra.mxu0 %v9379_v35  ;;  %v386_v34 = vld [vmem:[%s9732_s15 + $0x318] sm:$0xff] }
  0x94   : > { %4418 = vmatprep.subr.bf16.mxu1 %v9587_v2  ;;  %5285 = vmatprep.subr.bf16.mxu0 %v9587_v2  ;;  %v394_v35 = vld [vmem:[%s9732_s15 + $0x358] sm:$0xff] }
  0x95   : > { %v7785_v41 = vcombine.high %v386_v34, %v394_v35 }
  0x97   : > { %4419 = vmatpush1.bf16.msra.mxu1 %v9380_v36  ;;  %5286 = vmatpush1.bf16.msra.mxu0 %v9381_v37  ;;  %v9398_v36 = vld [vmem:[%s11792_s1 + $0x248] sm:$0xff]   ;;  %v7762_v37 = vcombine.low %v367_v21, %v375_v22 }
  0x98   : > { %4420 = vmatprep.subr.bf16.mxu1 %v9587_v2  ;;  %5287 = vmatprep.subr.bf16.mxu0 %v9587_v2 }
  0x9b   : > { %4421 = vmatpush1.bf16.msra.mxu1 %v9382_v38  ;;  %5288 = vmatpush1.bf16.msra.mxu0 %v9383_v39  ;;  %v9400_v38 = vld [vmem:[%s11792_s1 + $0x250] sm:$0xff]   ;;  %v7768_v39 = vcombine.low %v370_v23, %v378_v25  ;;  %v479_v25 = vld [vmem:[%s9732_s15 + $0x600] sm:$0xff] }
  0x9c   : > { %4679 = vmatprep.subr.bf16.mxu1 %v9587_v2  ;;  %5546 = vmatprep.subr.bf16.mxu0 %v9587_v2 }
  0x9e   : > { %4423 = vmatmul.mubr.bf16.vlgmr.msra.gmra.mrb[0].mxu1 %v7682_v44  ;;  %5290 = vmatmul.mubr.bf16.vlgmr.msra.gmra.mrb[0].mxu0 %v7688_v45  ;;  %v9401_v44 = vld [vmem:[%s11792_s1 + $0xb0] sm:$0xff]   ;;  %v402_v45 = vld [vmem:[%s9732_s15 + $0x398] sm:$0xff] }
  0x9f   : > { %4430 = vmatprep.mubr.bf16.mxu1 %v7699_v46  ;;  %5547 = vmatpush1.bf16.msra.mxu0 %v9384_v47  ;;  %v410_v46 = vld [vmem:[%s9732_s15 + $0x3d8] sm:$0xff]  ;;  %v7778_v47 = vcombine.low %v383_v32, %v391_v33  ;;  %v9407_v33 = vld [vmem:[%s11792_s1 + $0xc8] sm:$0xff]  }
  0xa0   : > { %5297 = vmatprep.mubr.bf16.mxu0 %v7705_v48  ;;  %5548 = vmatprep.subr.bf16.mxu0 %v9587_v2  ;;  %v7784_v48 = vcombine.low %v386_v34, %v394_v35  ;;  %v7801_v50 = vcombine.high %v402_v45, %v410_v46  ;;  %v495_v34 = vld [vmem:[%s9732_s15 + $0x680] sm:$0xff] }
  0xa1   : > { %4680 = vmatpush1.bf16.msra.mxu1 %v9389_v49  ;;  %v7795_v49 = vcombine.high %v399_v42, %v407_v43  ;;  %v503_v35 = vld [vmem:[%s9732_s15 + $0x6c0] sm:$0xff] }
  0xa2   : > { %4681 = vmatprep.subr.bf16.mxu1 %v9587_v2 }
  0xa3   : > { %5549 = vmatpush1.bf16.msra.mxu0 %v9385_v52  ;;  %v423_v52 = vld [vmem:[%s9732_s15 + $0x440] sm:$0xff] }
  0xa4   : > { %5550 = vmatprep.subr.bf16.mxu0 %v9587_v2  ;;  %v7810_v1 = vcombine.low %v415_v51, %v423_v52 }
  0xa5   : > { %4682 = vmatpush1.bf16.msra.mxu1 %v9391_v55  ;;  %v426_v55 = vld [vmem:[%s9732_s15 + $0x458] sm:$0xff] }
  0xa6   : > { %4431 = vmatmul.mubr.bf16.gmra.mrb[4].mxu1 %v7698_v56  ;;  %4683 = vmatprep.subr.bf16.mxu1 %v9587_v2  ;;  %v7794_v56 = vcombine.low %v399_v42, %v407_v43  ;;  %v9408_v42 = vld [vmem:[%s11792_s1 + $0x270] sm:$0xff]   ;;  %v511_v43 = vld [vmem:[%s9732_s15 + $0x700] sm:$0xff] }
  0xa7   : > { %5298 = vmatmul.mubr.bf16.gmra.mrb[4].mxu0 %v7704_v58  ;;  %4438 = vmatprep.mubr.bf16.mxu1 %v7715_v59  ;;  %v7811_v58 = vcombine.high %v415_v51, %v423_v52  ;;  %v7817_v59 = vcombine.high %v418_v54, %v426_v55  ;;  %v9409_v51 = vld [vmem:[%s11792_s1 + $0xd0] sm:$0xff]   ;;  %v527_v52 = vld [vmem:[%s9732_s15 + $0x780] sm:$0xff] }
  0xa8   : > { %5305 = vmatprep.mubr.bf16.mxu0 %v7721_v61  ;;  %5551 = vmatpush1.bf16.msra.mxu0 %v9386_v57  ;;  %v7800_v57 = vcombine.low %v402_v45, %v410_v46  ;;  %v439_v61 = vld [vmem:[%s9732_s15 + $0x4c0] sm:$0xff]  ;;  %v514_v45 = vld [vmem:[%s9732_s15 + $0x718] sm:$0xff] }
  0xa9   : > { %5552 = vmatprep.subr.bf16.mxu0 %v9587_v2  ;;  %4684 = vmatpush1.bf16.msra.mxu1 %v9393_v60  ;;  %v431_v60 = vld [vmem:[%s9732_s15 + $0x480] sm:$0xff]  ;;  %v522_v46 = vld [vmem:[%s9732_s15 + $0x758] sm:$0xff] }
  0xaa   : > { %4685 = vmatprep.subr.bf16.mxu1 %v9587_v2  ;;  %v7826_v11 = vcombine.low %v431_v60, %v439_v61 }
  0xac   : > { %5553 = vmatpush1.bf16.msra.mxu0 %v9387_v3  ;;  %v7816_v3 = vcombine.low %v418_v54, %v426_v55  ;;  %v9410_v54 = vld [vmem:[%s11792_s1 + $0xd8] sm:$0xff]  }
  0xad   : > { %5554 = vmatprep.subr.bf16.mxu0 %v9587_v2  ;;  %4686 = vmatpush1.bf16.msra.mxu1 %v9395_v4  ;;  %v7827_v4 = vcombine.high %v431_v60, %v439_v61  ;;  %v530_v55 = vld [vmem:[%s9732_s15 + $0x798] sm:$0xff]  ;;  %v9411_v61 = vld [vmem:[%s11792_s1 + $0xe0] sm:$0xff]  }
  0xae   : > { %4439 = vmatmul.mubr.bf16.gmra.mrb[8].mxu1 %v7714_v5  ;;  %4687 = vmatprep.subr.bf16.mxu1 %v9587_v2  ;;  %v7833_v5 = vcombine.high %v434_v63, %v442_v0  ;;  %v543_v63 = vld [vmem:[%s9732_s15 + $0x800] sm:$0xff] }
  0xaf   : > { %5306 = vmatmul.mubr.bf16.gmra.mrb[8].mxu0 %v7720_v7  ;;  %4446 = vmatprep.mubr.bf16.mxu1 %v7731_v8  ;;  %v455_v7 = vld [vmem:[%s9732_s15 + $0x540] sm:$0xff] }
  0xb0   : > { %5313 = vmatprep.mubr.bf16.mxu0 %v7737_v10  ;;  %5555 = vmatpush1.bf16.msra.mxu0 %v9388_v6  ;;  %v447_v6 = vld [vmem:[%s9732_s15 + $0x500] sm:$0xff]  ;;  %v458_v10 = vld [vmem:[%s9732_s15 + $0x558] sm:$0xff] }
  0xb1   : > { %5556 = vmatprep.subr.bf16.mxu0 %v9587_v2  ;;  %4688 = vmatpush1.bf16.msra.mxu1 %v9397_v9  ;;  %v9404_v8 = vld [vmem:[%s11792_s1 + $0x260] sm:$0xff]   ;;  %v450_v9 = vld [vmem:[%s9732_s15 + $0x518] sm:$0xff]  ;;  %v7843_v13 = vcombine.high %v447_v6, %v455_v7 }
  0xb2   : > { %4689 = vmatprep.subr.bf16.mxu1 %v9587_v2  ;;  %v7849_v14 = vcombine.high %v450_v9, %v458_v10  ;;  %v7848_v21 = vcombine.low %v450_v9, %v458_v10  ;;  %v551_v0 = vld [vmem:[%s9732_s15 + $0x840] sm:$0xff]  ;;  %v9414_v9 = vld [vmem:[%s11792_s1 + $0xf0] sm:$0xff]  }
  0xb3   : > { %v559_v10 = vld [vmem:[%s9732_s15 + $0x880] sm:$0xff] }
  0xb4   : > { %5557 = vmatpush1.bf16.msra.mxu0 %v9390_v15  ;;  %v9405_v15 = vld [vmem:[%s11792_s1 + $0xc0] sm:$0xff]  }
  0xb5   : > { %5558 = vmatprep.subr.bf16.mxu0 %v9587_v2  ;;  %4690 = vmatpush1.bf16.msra.mxu1 %v9399_v24  ;;  %v9406_v24 = vld [vmem:[%s11792_s1 + $0x268] sm:$0xff]  }
  0xb6   : > { %4447 = vmatmul.mubr.bf16.gmra.mrb[12].mxu1 %v7730_v16  ;;  %4691 = vmatprep.subr.bf16.mxu1 %v9587_v2  ;;  %v463_v16 = vld [vmem:[%s9732_s15 + $0x580] sm:$0xff] }
  0xb7   : > { %5314 = vmatmul.mubr.bf16.gmra.mrb[12].mxu0 %v7736_v18  ;;  %4454 = vmatprep.mubr.bf16.mxu1 %v7747_v19  ;;  %v466_v18 = vld [vmem:[%s9732_s15 + $0x598] sm:$0xff] }
  0xb8   : > { %5321 = vmatprep.mubr.bf16.mxu0 %v7753_v20  ;;  %5559 = vmatpush1.bf16.msra.mxu0 %v9392_v17  ;;  %v471_v17 = vld [vmem:[%s9732_s15 + $0x5c0] sm:$0xff]  ;;  %v474_v19 = vld [vmem:[%s9732_s15 + $0x5d8] sm:$0xff]  ;;  %v7842_v20 = vcombine.low %v447_v6, %v455_v7  ;;  %v7939_v7 = vcombine.high %v543_v63, %v551_v0 }
  0xb9   : > { %5560 = vmatprep.subr.bf16.mxu0 %v9587_v2  ;;  %4692 = vmatpush1.bf16.msra.mxu1 %v9401_v44  ;;  %v7859_v22 = vcombine.high %v463_v16, %v471_v17  ;;  %v7865_v23 = vcombine.high %v466_v18, %v474_v19  ;;  %v519_v44 = vld [vmem:[%s9732_s15 + $0x740] sm:$0xff] }
  0xba   : > { %4693 = vmatprep.subr.bf16.mxu1 %v9587_v2 }
  0xbc   : > { %5561 = vmatpush1.bf16.msra.mxu0 %v9394_v26  ;;  %v487_v26 = vld [vmem:[%s9732_s15 + $0x640] sm:$0xff] }
  0xbd   : > { %5562 = vmatprep.subr.bf16.mxu0 %v9587_v2  ;;  %4694 = vmatpush1.bf16.msra.mxu1 %v9403_v62  ;;  %v9412_v62 = vld [vmem:[%s11792_s1 + $0x278] sm:$0xff]  }
  0xbe   : > { %4455 = vmatmul.mubr.bf16.gmra.mrb[16].mxu1 %v7746_v27  ;;  %4695 = vmatprep.subr.bf16.mxu1 %v9587_v2  ;;  %v482_v27 = vld [vmem:[%s9732_s15 + $0x618] sm:$0xff] }
  0xbf   : > { %5322 = vmatmul.mubr.bf16.gmra.mrb[16].mxu0 %v7752_v29  ;;  %4462 = vmatprep.mubr.bf16.mxu1 %v7763_v30  ;;  %v7858_v29 = vcombine.low %v463_v16, %v471_v17  ;;  %v7864_v30 = vcombine.low %v466_v18, %v474_v19  ;;  %v575_v19 = vld [vmem:[%s9732_s15 + $0x900] sm:$0xff] }
  0xc0   : > { %5329 = vmatprep.mubr.bf16.mxu0 %v7769_v31  ;;  %5563 = vmatpush1.bf16.msra.mxu0 %v9396_v28  ;;  %v490_v28 = vld [vmem:[%s9732_s15 + $0x658] sm:$0xff]  ;;  %v7875_v31 = vcombine.high %v479_v25, %v487_v26 }
  0xc1   : > { %5564 = vmatprep.subr.bf16.mxu0 %v9587_v2  ;;  %4696 = vmatpush1.bf16.msra.mxu1 %v9405_v15  ;;  %v7881_v32 = vcombine.high %v482_v27, %v490_v28  ;;  %v7938_v15 = vcombine.low %v543_v63, %v551_v0 }
  0xc2   : > { %4697 = vmatprep.subr.bf16.mxu1 %v9587_v2 }
  0xc4   : > { %5565 = vmatpush1.bf16.msra.mxu0 %v9398_v36  ;;  %v498_v36 = vld [vmem:[%s9732_s15 + $0x698] sm:$0xff] }
  0xc5   : > { %5566 = vmatprep.subr.bf16.mxu0 %v9587_v2  ;;  %4698 = vmatpush1.bf16.msra.mxu1 %v9407_v33 }
  0xc6   : > { %4463 = vmatmul.mubr.bf16.gmra.mrb[20].mxu1 %v7762_v37  ;;  %v506_v37 = vld [vmem:[%s9732_s15 + $0x6d8] sm:$0xff]  ;;  %4699 = vmatprep.subr.bf16.mxu1 %v9587_v2 }
  0xc7   : > { %5330 = vmatmul.mubr.bf16.gmra.mrb[20].mxu0 %v7768_v39  ;;  %4470 = vmatprep.mubr.bf16.mxu1 %v7779_v40  ;;  %v7880_v39 = vcombine.low %v482_v27, %v490_v28  ;;  %v7891_v40 = vcombine.high %v495_v34, %v503_v35  ;;  %v591_v27 = vld [vmem:[%s9732_s15 + $0x980] sm:$0xff] }
  0xc8   : > { %5337 = vmatprep.mubr.bf16.mxu0 %v7785_v41  ;;  %5567 = vmatpush1.bf16.msra.mxu0 %v9400_v38  ;;  %v7874_v38 = vcombine.low %v479_v25, %v487_v26  ;;  %v7897_v41 = vcombine.high %v498_v36, %v506_v37  ;;  %v599_v28 = vld [vmem:[%s9732_s15 + $0x9c0] sm:$0xff] }
  0xc9   : > { %5568 = vmatprep.subr.bf16.mxu0 %v9587_v2  ;;  %4700 = vmatpush1.bf16.msra.mxu1 %v9409_v51  ;;  %v7987_v33 = vcombine.high %v591_v27, %v599_v28  ;;  %v639_v51 = vld [vmem:[%s9732_s15 + $0xb00] sm:$0xff] }
  0xca   : > { %4701 = vmatprep.subr.bf16.mxu1 %v9587_v2 }
  0xcc   : > { %5569 = vmatpush1.bf16.msra.mxu0 %v9402_v53  ;;  %v535_v53 = vld [vmem:[%s9732_s15 + $0x7c0] sm:$0xff] }
  0xcd   : > { %5570 = vmatprep.subr.bf16.mxu0 %v9587_v2  ;;  %4702 = vmatpush1.bf16.msra.mxu1 %v9410_v54  ;;  %v650_v54 = vld [vmem:[%s9732_s15 + $0xb58] sm:$0xff] }
  0xce   : > { %4471 = vmatmul.mubr.bf16.gmra.mrb[24].mxu1 %v7778_v47  ;;  %v7890_v47 = vcombine.low %v495_v34, %v503_v35  ;;  %4703 = vmatprep.subr.bf16.mxu1 %v9587_v2  ;;  %v607_v35 = vld [vmem:[%s9732_s15 + $0xa00] sm:$0xff] }
  0xcf   : > { %5338 = vmatmul.mubr.bf16.gmra.mrb[24].mxu0 %v7784_v48  ;;  %4478 = vmatprep.mubr.bf16.mxu1 %v7795_v49  ;;  %v7896_v48 = vcombine.low %v498_v36, %v506_v37  ;;  %v7907_v49 = vcombine.high %v511_v43, %v519_v44  ;;  %v615_v36 = vld [vmem:[%s9732_s15 + $0xa40] sm:$0xff]  ;;  %v610_v37 = vld [vmem:[%s9732_s15 + $0xa18] sm:$0xff] }
  0xd0   : > { %5345 = vmatprep.mubr.bf16.mxu0 %v7801_v50  ;;  %5571 = vmatpush1.bf16.msra.mxu0 %v9404_v8  ;;  %v7913_v50 = vcombine.high %v514_v45, %v522_v46 }
  0xd1   : > { %5572 = vmatprep.subr.bf16.mxu0 %v9587_v2  ;;  %4704 = vmatpush1.bf16.msra.mxu1 %v9411_v61  ;;  %v658_v61 = vld [vmem:[%s9732_s15 + $0xb98] sm:$0xff] }
  0xd2   : > { %4705 = vmatprep.subr.bf16.mxu1 %v9587_v2 }
  0xd4   : > { %5573 = vmatpush1.bf16.msra.mxu0 %v9406_v24 }
  0xd5   : > { %5574 = vmatprep.subr.bf16.mxu0 %v9587_v2 }
  0xd6   : > { %4479 = vmatmul.mubr.bf16.gmra.mrb[28].mxu1 %v7794_v56  ;;  %v538_v56 = vld [vmem:[%s9732_s15 + $0x7d8] sm:$0xff] }
  0xd7   : > { %5346 = vmatmul.mubr.bf16.gmra.mrb[28].mxu0 %v7800_v57  ;;  %4486 = vmatprep.mubr.bf16.mxu1 %v7811_v58  ;;  %v7906_v57 = vcombine.low %v511_v43, %v519_v44  ;;  %v7912_v58 = vcombine.low %v514_v45, %v522_v46  ;;  %v7929_v60 = vcombine.high %v530_v55, %v538_v56  ;;  %v623_v43 = vld [vmem:[%s9732_s15 + $0xa80] sm:$0xff]  ;;  %v626_v45 = vld [vmem:[%s9732_s15 + $0xa98] sm:$0xff] }
  0xd8   : > { %5353 = vmatprep.mubr.bf16.mxu0 %v7817_v59  ;;  %5575 = vmatpush1.bf16.msra.mxu0 %v9408_v42  ;;  %v7923_v59 = vcombine.high %v527_v52, %v535_v53  ;;  %v7928_v6 = vcombine.low %v530_v55, %v538_v56  ;;  %v631_v44 = vld [vmem:[%s9732_s15 + $0xac0] sm:$0xff]  ;;  %v634_v46 = vld [vmem:[%s9732_s15 + $0xad8] sm:$0xff] }
  0xd9   : > { %5576 = vmatprep.subr.bf16.mxu0 %v9587_v2  ;;  %v8018_v55 = vcombine.low %v623_v43, %v631_v44  ;;  %v8024_v56 = vcombine.low %v626_v45, %v634_v46 }
  0xdc   : > { %5577 = vmatpush1.bf16.msra.mxu0 %v9412_v62  ;;  %v666_v62 = vld [vmem:[%s9732_s15 + $0xbd8] sm:$0xff] }
  0xdd   : > { %5835 = vmatprep.subr.bf16.mxu0 %v9587_v2 }
  0xde   : > { %4487 = vmatmul.mubr.bf16.gmra.mrb[32].mxu1 %v7810_v1  ;;  %v9413_v1 = vld [vmem:[%s11792_s1 + $0xe8] sm:$0xff]  }
  0xdf   : > { %5354 = vmatmul.mubr.bf16.gmra.mrb[32].mxu0 %v7816_v3  ;;  %4494 = vmatprep.mubr.bf16.mxu1 %v7827_v4  ;;  %v546_v3 = vld [vmem:[%s9732_s15 + $0x818] sm:$0xff] }
  0xe0   : > { %5361 = vmatprep.mubr.bf16.mxu0 %v7833_v5  ;;  %v554_v4 = vld [vmem:[%s9732_s15 + $0x858] sm:$0xff]  ;;  %v7922_v5 = vcombine.low %v527_v52, %v535_v53  ;;  %4706 = vmatpush1.bf16.msra.mxu1 %v9413_v1  ;;  %v647_v52 = vld [vmem:[%s9732_s15 + $0xb40] sm:$0xff] }
  0xe1   : > { %v7945_v8 = vcombine.high %v546_v3, %v554_v4  ;;  %4707 = vmatprep.subr.bf16.mxu1 %v9587_v2  ;;  %v7944_v16 = vcombine.low %v546_v3, %v554_v4  ;;  %v642_v53 = vld [vmem:[%s9732_s15 + $0xb18] sm:$0xff]  ;;  %v8034_v63 = vcombine.low %v639_v51, %v647_v52  ;;  %v8057_v3 = vcombine.high %v658_v61, %v666_v62  ;;  %v671_v4 = vld [vmem:[%s9732_s15 + $0xc00] sm:$0xff] }
  0xe2   : > { %v8040_v0 = vcombine.low %v642_v53, %v650_v54 }
  0xe4   : > { %4708 = vmatpush1.bf16.msra.mxu1 %v9414_v9  ;;  %v8056_v9 = vcombine.low %v658_v61, %v666_v62  ;;  %v791_v61 = vld [vmem:[%s9732_s15 + $0xfc0] sm:$0xff]  ;;  %v786_v62 = vld [vmem:[%s9732_s15 + $0xf98] sm:$0xff] }
  0xe5   : > { %4709 = vmatprep.subr.bf16.mxu1 %v9587_v2 }
  0xe6   : > { %4495 = vmatmul.mubr.bf16.gmra.mrb[36].mxu1 %v7826_v11  ;;  %v567_v11 = vld [vmem:[%s9732_s15 + $0x8c0] sm:$0xff] }
  0xe7   : > { %5362 = vmatmul.mubr.bf16.gmra.mrb[36].mxu0 %v7832_v12  ;;  %4502 = vmatprep.mubr.bf16.mxu1 %v7843_v13  ;;  %v9415_v12 = vld [vmem:[%s11792_s1 + $0xf8] sm:$0xff]   ;;  %v7955_v17 = vcombine.high %v559_v10, %v567_v11 }
  0xe8   : > { %5369 = vmatprep.mubr.bf16.mxu0 %v7849_v14  ;;  %v562_v13 = vld [vmem:[%s9732_s15 + $0x898] sm:$0xff]  ;;  %4710 = vmatpush1.bf16.msra.mxu1 %v9415_v12  ;;  %v687_v12 = vld [vmem:[%s9732_s15 + $0xc80] sm:$0xff] }
  0xe9   : > { %v570_v14 = vld [vmem:[%s9732_s15 + $0x8d8] sm:$0xff]  ;;  %4968 = vmatprep.subr.bf16.mxu1 %v9587_v2 }
  0xea   : > { %v7961_v18 = vcombine.high %v562_v13, %v570_v14  ;;  %v7960_v24 = vcombine.low %v562_v13, %v570_v14  ;;  %v695_v13 = vld [vmem:[%s9732_s15 + $0xcc0] sm:$0xff]  ;;  %v690_v14 = vld [vmem:[%s9732_s15 + $0xc98] sm:$0xff] }
  0xee   : > { %4503 = vmatmul.mubr.bf16.gmra.mrb[40].mxu1 %v7842_v20  ;;  %v583_v20 = vld [vmem:[%s9732_s15 + $0x940] sm:$0xff] }
  0xef   : > { %5370 = vmatmul.mubr.bf16.gmra.mrb[40].mxu0 %v7848_v21  ;;  %4510 = vmatprep.mubr.bf16.mxu1 %v7859_v22  ;;  %v578_v21 = vld [vmem:[%s9732_s15 + $0x918] sm:$0xff]  ;;  %v7971_v25 = vcombine.high %v575_v19, %v583_v20 }
  0xf0   : > { %5377 = vmatprep.mubr.bf16.mxu0 %v7865_v23  ;;  %v586_v22 = vld [vmem:[%s9732_s15 + $0x958] sm:$0xff]  ;;  %v7954_v23 = vcombine.low %v559_v10, %v567_v11 }
  0xf1   : > { %v7977_v26 = vcombine.high %v578_v21, %v586_v22 }
  0xf6   : > { %4511 = vmatmul.mubr.bf16.gmra.mrb[44].mxu1 %v7858_v29  ;;  %v594_v29 = vld [vmem:[%s9732_s15 + $0x998] sm:$0xff] }
  0xf7   : > { %5378 = vmatmul.mubr.bf16.gmra.mrb[44].mxu0 %v7864_v30  ;;  %4518 = vmatprep.mubr.bf16.mxu1 %v7875_v31  ;;  %v602_v30 = vld [vmem:[%s9732_s15 + $0x9d8] sm:$0xff]  ;;  %v7970_v31 = vcombine.low %v575_v19, %v583_v20  ;;  %v703_v20 = vld [vmem:[%s9732_s15 + $0xd00] sm:$0xff] }
  0xf8   : > { %5385 = vmatprep.mubr.bf16.mxu0 %v7881_v32  ;;  %v7976_v32 = vcombine.low %v578_v21, %v586_v22  ;;  %v7993_v34 = vcombine.high %v594_v29, %v602_v30  ;;  %v711_v21 = vld [vmem:[%s9732_s15 + $0xd40] sm:$0xff]  ;;  %v706_v22 = vld [vmem:[%s9732_s15 + $0xd18] sm:$0xff] }
  0xfe   : > { %4519 = vmatmul.mubr.bf16.gmra.mrb[48].mxu1 %v7874_v38  ;;  %v618_v38 = vld [vmem:[%s9732_s15 + $0xa58] sm:$0xff] }
  0xff   : > { %5386 = vmatmul.mubr.bf16.gmra.mrb[48].mxu0 %v7880_v39  ;;  %4526 = vmatprep.mubr.bf16.mxu1 %v7891_v40  ;;  %v7986_v39 = vcombine.low %v591_v27, %v599_v28  ;;  %v7992_v40 = vcombine.low %v594_v29, %v602_v30  ;;  %v8009_v42 = vcombine.high %v610_v37, %v618_v38  ;;  %v719_v28 = vld [vmem:[%s9732_s15 + $0xd80] sm:$0xff]  ;;  %v722_v30 = vld [vmem:[%s9732_s15 + $0xd98] sm:$0xff] }
 0x100   : > { %5393 = vmatprep.mubr.bf16.mxu0 %v7897_v41  ;;  %v8003_v41 = vcombine.high %v607_v35, %v615_v36  ;;  %v727_v29 = vld [vmem:[%s9732_s15 + $0xdc0] sm:$0xff] }
 0x106   : > { %4527 = vmatmul.mubr.bf16.gmra.mrb[52].mxu1 %v7890_v47  ;;  %v8002_v47 = vcombine.low %v607_v35, %v615_v36  ;;  %v735_v36 = vld [vmem:[%s9732_s15 + $0xe00] sm:$0xff] }
 0x107   : > { %5394 = vmatmul.mubr.bf16.gmra.mrb[52].mxu0 %v7896_v48  ;;  %4534 = vmatprep.mubr.bf16.mxu1 %v7907_v49  ;;  %v8008_v48 = vcombine.low %v610_v37, %v618_v38  ;;  %v8019_v49 = vcombine.high %v623_v43, %v631_v44  ;;  %v743_v37 = vld [vmem:[%s9732_s15 + $0xe40] sm:$0xff]  ;;  %v738_v38 = vld [vmem:[%s9732_s15 + $0xe18] sm:$0xff] }
 0x108   : > { %5401 = vmatprep.mubr.bf16.mxu0 %v7913_v50  ;;  %v8025_v50 = vcombine.high %v626_v45, %v634_v46  ;;  %v751_v44 = vld [vmem:[%s9732_s15 + $0xe80] sm:$0xff]  ;;  %v754_v46 = vld [vmem:[%s9732_s15 + $0xe98] sm:$0xff] }
 0x109   : > { %v759_v45 = vld [vmem:[%s9732_s15 + $0xec0] sm:$0xff] }
 0x10e   : > { %4535 = vmatmul.mubr.bf16.gmra.mrb[56].mxu1 %v7906_v57  ;;  %v8035_v57 = vcombine.high %v639_v51, %v647_v52  ;;  %v767_v52 = vld [vmem:[%s9732_s15 + $0xf00] sm:$0xff] }
 0x10f   : > { %5402 = vmatmul.mubr.bf16.gmra.mrb[56].mxu0 %v7912_v58  ;;  %4542 = vmatprep.mubr.bf16.mxu1 %v7923_v59  ;;  %v8041_v58 = vcombine.high %v642_v53, %v650_v54  ;;  %v655_v59 = vld [vmem:[%s9732_s15 + $0xb80] sm:$0xff]  ;;  %v770_v54 = vld [vmem:[%s9732_s15 + $0xf18] sm:$0xff] }
 0x110   : > { %5409 = vmatprep.mubr.bf16.mxu0 %v7929_v60  ;;  %v663_v60 = vld [vmem:[%s9732_s15 + $0xbc0] sm:$0xff] }
 0x111   : > { %v8051_v1 = vcombine.high %v655_v59, %v663_v60  ;;  %v775_v53 = vld [vmem:[%s9732_s15 + $0xf40] sm:$0xff] }
 0x116   : > { %4543 = vmatmul.mubr.bf16.gmra.mrb[60].mxu1 %v7922_v5  ;;  %v679_v5 = vld [vmem:[%s9732_s15 + $0xc40] sm:$0xff] }
 0x117   : > { %5410 = vmatmul.mubr.bf16.gmra.mrb[60].mxu0 %v7928_v6  ;;  %4550 = vmatprep.mubr.bf16.mxu1 %v7939_v7  ;;  %v674_v6 = vld [vmem:[%s9732_s15 + $0xc18] sm:$0xff]  ;;  %v8067_v10 = vcombine.high %v671_v4, %v679_v5 }
 0x118   : > { %5417 = vmatprep.mubr.bf16.mxu0 %v7945_v8  ;;  %v682_v7 = vld [vmem:[%s9732_s15 + $0xc58] sm:$0xff]  ;;  %v8050_v8 = vcombine.low %v655_v59, %v663_v60  ;;  %v783_v60 = vld [vmem:[%s9732_s15 + $0xf80] sm:$0xff] }
 0x119   : > { %v8073_v11 = vcombine.high %v674_v6, %v682_v7 }
 0x11e   : > { %4551 = vmatmul.mubr.bf16.gmra.mrb[64].mxu1 %v7938_v15  ;;  %v698_v15 = vld [vmem:[%s9732_s15 + $0xcd8] sm:$0xff] }
 0x11f   : > { %5418 = vmatmul.mubr.bf16.gmra.mrb[64].mxu0 %v7944_v16  ;;  %4558 = vmatprep.mubr.bf16.mxu1 %v7955_v17  ;;  %v8066_v16 = vcombine.low %v671_v4, %v679_v5  ;;  %v8072_v17 = vcombine.low %v674_v6, %v682_v7  ;;  %v8089_v19 = vcombine.high %v690_v14, %v698_v15  ;;  %v288_v5 = vld [vmem:[%s9732_s15 + $0x8] sm:$0xff]  ;;  %v291_v7 = vld [vmem:[%s9732_s15 + $0x20] sm:$0xff] }
 0x120   : > { %5425 = vmatprep.mubr.bf16.mxu0 %v7961_v18  ;;  %v8083_v18 = vcombine.high %v687_v12, %v695_v13  ;;  %v296_v6 = vld [vmem:[%s9732_s15 + $0x48] sm:$0xff] }
 0x126   : > { %4559 = vmatmul.mubr.bf16.gmra.mrb[68].mxu1 %v7954_v23  ;;  %v714_v23 = vld [vmem:[%s9732_s15 + $0xd58] sm:$0xff] }
 0x127   : > { %5426 = vmatmul.mubr.bf16.gmra.mrb[68].mxu0 %v7960_v24  ;;  %4566 = vmatprep.mubr.bf16.mxu1 %v7971_v25  ;;  %v8082_v24 = vcombine.low %v687_v12, %v695_v13  ;;  %v8088_v25 = vcombine.low %v690_v14, %v698_v15  ;;  %v8105_v27 = vcombine.high %v706_v22, %v714_v23  ;;  %v304_v13 = vld [vmem:[%s9732_s15 + $0x88] sm:$0xff]  ;;  %v307_v15 = vld [vmem:[%s9732_s15 + $0xa0] sm:$0xff] }
 0x128   : > { %5433 = vmatprep.mubr.bf16.mxu0 %v7977_v26  ;;  %v8099_v26 = vcombine.high %v703_v20, %v711_v21  ;;  %v312_v14 = vld [vmem:[%s9732_s15 + $0xc8] sm:$0xff] }
 0x12e   : > { %4567 = vmatmul.mubr.bf16.gmra.mrb[72].mxu1 %v7970_v31  ;;  %v730_v31 = vld [vmem:[%s9732_s15 + $0xdd8] sm:$0xff] }
 0x12f   : > { %5434 = vmatmul.mubr.bf16.gmra.mrb[72].mxu0 %v7976_v32  ;;  %4574 = vmatprep.mubr.bf16.mxu1 %v7987_v33  ;;  %v8098_v32 = vcombine.low %v703_v20, %v711_v21  ;;  %v8104_v33 = vcombine.low %v706_v22, %v714_v23  ;;  %v8121_v35 = vcombine.high %v722_v30, %v730_v31  ;;  %v9416_v20 = vld [vmem:[%s11792_s1 + $0x280] sm:$0xff]   ;;  %v320_v23 = vld [vmem:[%s9732_s15 + $0x108] sm:$0xff] }
 0x130   : > { %5441 = vmatprep.mubr.bf16.mxu0 %v7993_v34  ;;  %v8115_v34 = vcombine.high %v719_v28, %v727_v29  ;;  %v9421_v22 = vld [vmem:[%s11792_s1 + $0x100] sm:$0xff]  }
 0x136   : > { %4575 = vmatmul.mubr.bf16.gmra.mrb[76].mxu1 %v7986_v39  ;;  %v746_v39 = vld [vmem:[%s9732_s15 + $0xe58] sm:$0xff] }
 0x137   : > { %5442 = vmatmul.mubr.bf16.gmra.mrb[76].mxu0 %v7992_v40  ;;  %4582 = vmatprep.mubr.bf16.mxu1 %v8003_v41  ;;  %v8114_v40 = vcombine.low %v719_v28, %v727_v29  ;;  %v8120_v41 = vcombine.low %v722_v30, %v730_v31  ;;  %v8137_v43 = vcombine.high %v738_v38, %v746_v39  ;;  %v9423_v28 = vld [vmem:[%s11792_s1 + $0x108] sm:$0xff]  }
 0x138   : > { %5449 = vmatprep.mubr.bf16.mxu0 %v8009_v42  ;;  %v8131_v42 = vcombine.high %v735_v36, %v743_v37  ;;  %v7700_v29 = vcombine.low %v304_v13, %v312_v14 }
 0x13e   : > { %4583 = vmatmul.mubr.bf16.gmra.mrb[80].mxu1 %v8002_v47  ;;  %v762_v47 = vld [vmem:[%s9732_s15 + $0xed8] sm:$0xff] }
 0x13f   : > { %5450 = vmatmul.mubr.bf16.gmra.mrb[80].mxu0 %v8008_v48  ;;  %4590 = vmatprep.mubr.bf16.mxu1 %v8019_v49  ;;  %v8130_v48 = vcombine.low %v735_v36, %v743_v37  ;;  %v8136_v49 = vcombine.low %v738_v38, %v746_v39  ;;  %v8153_v51 = vcombine.high %v754_v46, %v762_v47  ;;  %v344_v36 = vld [vmem:[%s9732_s15 + $0x1c8] sm:$0xff]  ;;  %v9419_v37 = vld [vmem:[%s11792_s1 + $0x298] sm:$0xff]   ;;  %v339_v38 = vld [vmem:[%s9732_s15 + $0x1a0] sm:$0xff] }
 0x140   : > { %5457 = vmatprep.mubr.bf16.mxu0 %v8025_v50  ;;  %v8147_v50 = vcombine.high %v751_v44, %v759_v45  ;;  %v347_v39 = vld [vmem:[%s9732_s15 + $0x1e0] sm:$0xff] }
 0x146   : > { %4591 = vmatmul.mubr.bf16.gmra.mrb[84].mxu1 %v8018_v55  ;;  %v778_v55 = vld [vmem:[%s9732_s15 + $0xf58] sm:$0xff] }
 0x147   : > { %5458 = vmatmul.mubr.bf16.gmra.mrb[84].mxu0 %v8024_v56  ;;  %4598 = vmatprep.mubr.bf16.mxu1 %v8035_v57  ;;  %v8146_v56 = vcombine.low %v751_v44, %v759_v45  ;;  %v8152_v57 = vcombine.low %v754_v46, %v762_v47  ;;  %v8169_v59 = vcombine.high %v770_v54, %v778_v55  ;;  %v9420_v45 = vld [vmem:[%s11792_s1 + $0x2a0] sm:$0xff]   ;;  %v352_v47 = vld [vmem:[%s9732_s15 + $0x208] sm:$0xff] }
 0x148   : > { %5465 = vmatprep.mubr.bf16.mxu0 %v8041_v58  ;;  %v8163_v58 = vcombine.high %v767_v52, %v775_v53  ;;  %v7739_v44 = vcombine.high %v339_v38, %v347_v39  ;;  %v9429_v46 = vld [vmem:[%s11792_s1 + $0x120] sm:$0xff]  }
 0x14e   : > { %4599 = vmatmul.mubr.bf16.gmra.mrb[88].mxu1 %v8034_v63  ;;  %v794_v63 = vld [vmem:[%s9732_s15 + $0xfd8] sm:$0xff] }
 0x14f   : > { %5466 = vmatmul.mubr.bf16.gmra.mrb[88].mxu0 %v8040_v0  ;;  %4606 = vmatprep.mubr.bf16.mxu1 %v8051_v1  ;;  %v8162_v0 = vcombine.low %v767_v52, %v775_v53  ;;  %v8168_v1 = vcombine.low %v770_v54, %v778_v55  ;;  %v8185_v4 = vcombine.high %v786_v62, %v794_v63 }
 0x150   : > { %5473 = vmatprep.mubr.bf16.mxu0 %v8057_v3  ;;  %v8179_v3 = vcombine.high %v783_v60, %v791_v61  ;;  %v7738_v53 = vcombine.low %v339_v38, %v347_v39 }
 0x156   : > { %4607 = vmatmul.mubr.bf16.gmra.mrb[92].mxu1 %v8050_v8  ;;  %v299_v8 = vld [vmem:[%s9732_s15 + $0x60] sm:$0xff] }
 0x157   : > { %5474 = vmatmul.mubr.bf16.gmra.mrb[92].mxu0 %v8056_v9  ;;  %4614 = vmatprep.mubr.bf16.mxu1 %v8067_v10  ;;  %v8178_v9 = vcombine.low %v783_v60, %v791_v61  ;;  %v8184_v10 = vcombine.low %v786_v62, %v794_v63  ;;  %v7691_v12 = vcombine.high %v291_v7, %v299_v8  ;;  %v9426_v60 = vld [vmem:[%s11792_s1 + $0x2b8] sm:$0xff]   ;;  %v371_v61 = vld [vmem:[%s9732_s15 + $0x2a0] sm:$0xff] }
 0x158   : > { %5481 = vmatprep.mubr.bf16.mxu0 %v8073_v11  ;;  %v7685_v11 = vcombine.high %v288_v5, %v296_v6  ;;  %v379_v62 = vld [vmem:[%s9732_s15 + $0x2e0] sm:$0xff] }
 0x15e   : > { %4615 = vmatmul.mubr.bf16.gmra.mrb[96].mxu1 %v8066_v16  ;;  %v315_v16 = vld [vmem:[%s9732_s15 + $0xe0] sm:$0xff] }
 0x15f   : > { %5482 = vmatmul.mubr.bf16.gmra.mrb[96].mxu0 %v8072_v17  ;;  %4622 = vmatprep.mubr.bf16.mxu1 %v8083_v18  ;;  %v7684_v17 = vcombine.low %v288_v5, %v296_v6  ;;  %v7690_v18 = vcombine.low %v291_v7, %v299_v8  ;;  %v7707_v21 = vcombine.high %v307_v15, %v315_v16  ;;  %v384_v5 = vld [vmem:[%s9732_s15 + $0x308] sm:$0xff]  ;;  %v387_v8 = vld [vmem:[%s9732_s15 + $0x320] sm:$0xff] }
 0x160   : > { %5489 = vmatprep.mubr.bf16.mxu0 %v8089_v19  ;;  %v7701_v19 = vcombine.high %v304_v13, %v312_v14  ;;  %v7706_v30 = vcombine.low %v307_v15, %v315_v16  ;;  %v392_v6 = vld [vmem:[%s9732_s15 + $0x348] sm:$0xff]  ;;  %v9432_v14 = vld [vmem:[%s11792_s1 + $0x2d0] sm:$0xff]  }
 0x161   : > { %v9430_v7 = vld [vmem:[%s11792_s1 + $0x2c8] sm:$0xff]   ;;  %v9433_v15 = vld [vmem:[%s11792_s1 + $0x130] sm:$0xff]  }
 0x162   : > { %v400_v16 = vld [vmem:[%s9732_s15 + $0x388] sm:$0xff] }
 0x166   : > { %4623 = vmatmul.mubr.bf16.gmra.mrb[100].mxu1 %v8082_v24  ;;  %v328_v24 = vld [vmem:[%s9732_s15 + $0x148] sm:$0xff] }
 0x167   : > { %5490 = vmatmul.mubr.bf16.gmra.mrb[100].mxu0 %v8088_v25  ;;  %4630 = vmatprep.mubr.bf16.mxu1 %v8099_v26  ;;  %v9417_v25 = vld [vmem:[%s11792_s1 + $0x288] sm:$0xff]   ;;  %v323_v26 = vld [vmem:[%s9732_s15 + $0x120] sm:$0xff]  ;;  %v7717_v31 = vcombine.high %v320_v23, %v328_v24 }
 0x168   : > { %5497 = vmatprep.mubr.bf16.mxu0 %v8105_v27  ;;  %v331_v27 = vld [vmem:[%s9732_s15 + $0x160] sm:$0xff] }
 0x16e   : > { %4631 = vmatmul.mubr.bf16.gmra.mrb[104].mxu1 %v8098_v32  ;;  %v7723_v32 = vcombine.high %v323_v26, %v331_v27 }
 0x16f   : > { %5498 = vmatmul.mubr.bf16.gmra.mrb[104].mxu0 %v8104_v33  ;;  %4638 = vmatprep.mubr.bf16.mxu1 %v8115_v34  ;;  %v9418_v33 = vld [vmem:[%s11792_s1 + $0x290] sm:$0xff]  }
 0x170   : > { %5505 = vmatprep.mubr.bf16.mxu0 %v8121_v35  ;;  %v9425_v34 = vld [vmem:[%s11792_s1 + $0x110] sm:$0xff]   ;;  %v336_v35 = vld [vmem:[%s9732_s15 + $0x188] sm:$0xff] }
 0x171   : > { %v7732_v52 = vcombine.low %v336_v35, %v344_v36 }
 0x176   : > { %4639 = vmatmul.mubr.bf16.gmra.mrb[108].mxu1 %v8114_v40  ;;  %v9427_v40 = vld [vmem:[%s11792_s1 + $0x118] sm:$0xff]  }
 0x177   : > { %5506 = vmatmul.mubr.bf16.gmra.mrb[108].mxu0 %v8120_v41  ;;  %4646 = vmatprep.mubr.bf16.mxu1 %v8131_v42  ;;  %v7716_v41 = vcombine.low %v320_v23, %v328_v24  ;;  %v7722_v42 = vcombine.low %v323_v26, %v331_v27  ;;  %v9434_v24 = vld [vmem:[%s11792_s1 + $0x2d8] sm:$0xff]   ;;  %v424_v26 = vld [vmem:[%s9732_s15 + $0x448] sm:$0xff]  ;;  %v419_v27 = vld [vmem:[%s9732_s15 + $0x420] sm:$0xff] }
 0x178   : > { %5513 = vmatprep.mubr.bf16.mxu0 %v8137_v43  ;;  %v7733_v43 = vcombine.high %v336_v35, %v344_v36  ;;  %v440_v35 = vld [vmem:[%s9732_s15 + $0x4c8] sm:$0xff]  ;;  %v435_v36 = vld [vmem:[%s9732_s15 + $0x4a0] sm:$0xff] }
 0x17e   : > { %4647 = vmatmul.mubr.bf16.gmra.mrb[112].mxu1 %v8130_v48  ;;  %v360_v48 = vld [vmem:[%s9732_s15 + $0x248] sm:$0xff] }
 0x17f   : > { %5514 = vmatmul.mubr.bf16.gmra.mrb[112].mxu0 %v8136_v49  ;;  %4654 = vmatprep.mubr.bf16.mxu1 %v8147_v50  ;;  %v9422_v49 = vld [vmem:[%s11792_s1 + $0x2a8] sm:$0xff]   ;;  %v355_v50 = vld [vmem:[%s9732_s15 + $0x220] sm:$0xff]  ;;  %v7749_v54 = vcombine.high %v352_v47, %v360_v48  ;;  %v7748_v63 = vcombine.low %v352_v47, %v360_v48 }
 0x180   : > { %5521 = vmatprep.mubr.bf16.mxu0 %v8153_v51  ;;  %v363_v51 = vld [vmem:[%s9732_s15 + $0x260] sm:$0xff] }
 0x181   : > { %v7755_v55 = vcombine.high %v355_v50, %v363_v51 }
 0x186   : > { %4655 = vmatmul.mubr.bf16.gmra.mrb[116].mxu1 %v8146_v56  ;;  %v9424_v56 = vld [vmem:[%s11792_s1 + $0x2b0] sm:$0xff]  }
 0x187   : > { %5522 = vmatmul.mubr.bf16.gmra.mrb[116].mxu0 %v8152_v57  ;;  %4662 = vmatprep.mubr.bf16.mxu1 %v8163_v58  ;;  %v9431_v57 = vld [vmem:[%s11792_s1 + $0x128] sm:$0xff]  }
 0x188   : > { %5529 = vmatprep.mubr.bf16.mxu0 %v8169_v59  ;;  %v368_v58 = vld [vmem:[%s9732_s15 + $0x288] sm:$0xff] }
 0x189   : > { %v376_v59 = vld [vmem:[%s9732_s15 + $0x2c8] sm:$0xff] }
 0x18e   : > { %4663 = vmatmul.mubr.bf16.gmra.mrb[120].mxu1 %v8162_v0  ;;  %v7754_v0 = vcombine.low %v355_v50, %v363_v51  ;;  %v9437_v51 = vld [vmem:[%s11792_s1 + $0x140] sm:$0xff]  }
 0x18f   : > { %5530 = vmatmul.mubr.bf16.gmra.mrb[120].mxu0 %v8168_v1  ;;  %4670 = vmatprep.mubr.bf16.mxu1 %v8179_v3  ;;  %v7765_v1 = vcombine.high %v368_v58, %v376_v59  ;;  %v7771_v3 = vcombine.high %v371_v61, %v379_v62 }
 0x190   : > { %5537 = vmatprep.mubr.bf16.mxu0 %v8185_v4  ;;  %v9428_v4 = vld [vmem:[%s11792_s1 + $0x2c0] sm:$0xff]  }
 0x196   : > { %4671 = vmatmul.mubr.bf16.gmra.mrb[124].mxu1 %v8178_v9  ;;  %v395_v9 = vld [vmem:[%s9732_s15 + $0x360] sm:$0xff] }
 0x197   : > { %5538 = vmatmul.mubr.bf16.gmra.mrb[124].mxu0 %v8184_v10  ;;  %4711 = vmatprep.mubr.bf16.mxu1 %v7685_v11  ;;  %v7764_v10 = vcombine.low %v368_v58, %v376_v59  ;;  %v7770_v11 = vcombine.low %v371_v61, %v379_v62  ;;  %v7787_v13 = vcombine.high %v387_v8, %v395_v9  ;;  %v480_v61 = vld [vmem:[%s9732_s15 + $0x608] sm:$0xff] }
 0x198   : > { %5578 = vmatprep.mubr.bf16.mxu0 %v7691_v12  ;;  %v7781_v12 = vcombine.high %v384_v5, %v392_v6  ;;  %v488_v62 = vld [vmem:[%s9732_s15 + $0x648] sm:$0xff] }
 0x19e   : > { %4712 = vmatmul.mubr.bf16.vlgmr.msra.gmra.mrb[0].mxu1 %v7684_v17  ;;  %v408_v17 = vld [vmem:[%s9732_s15 + $0x3c8] sm:$0xff] }
 0x19f   : > { %5579 = vmatmul.mubr.bf16.vlgmr.msra.gmra.mrb[0].mxu0 %v7690_v18  ;;  %4719 = vmatprep.mubr.bf16.mxu1 %v7701_v19  ;;  %v403_v18 = vld [vmem:[%s9732_s15 + $0x3a0] sm:$0xff] }
 0x1a0   : > { %5836 = vmatpush1.bf16.msra.mxu0 %v9416_v20  ;;  %5586 = vmatprep.mubr.bf16.mxu0 %v7707_v21  ;;  %v411_v19 = vld [vmem:[%s9732_s15 + $0x3e0] sm:$0xff]  ;;  %v7780_v20 = vcombine.low %v384_v5, %v392_v6  ;;  %v7786_v21 = vcombine.low %v387_v8, %v395_v9  ;;  %v9439_v6 = vld [vmem:[%s11792_s1 + $0x148] sm:$0xff]  }
 0x1a1   : > { %5837 = vmatprep.subr.bf16.mxu0 %v9587_v2  ;;  %4969 = vmatpush1.bf16.msra.mxu1 %v9421_v22  ;;  %v7797_v22 = vcombine.high %v400_v16, %v408_v17  ;;  %v7803_v23 = vcombine.high %v403_v18, %v411_v19  ;;  %v504_v8 = vld [vmem:[%s9732_s15 + $0x6c8] sm:$0xff]  ;;  %v499_v9 = vld [vmem:[%s9732_s15 + $0x6a0] sm:$0xff] }
 0x1a2   : > { %4970 = vmatprep.subr.bf16.mxu1 %v9587_v2 }
 0x1a4   : > { %5838 = vmatpush1.bf16.msra.mxu0 %v9417_v25  ;;  %v416_v25 = vld [vmem:[%s9732_s15 + $0x408] sm:$0xff] }
 0x1a5   : > { %5839 = vmatprep.subr.bf16.mxu0 %v9587_v2  ;;  %4971 = vmatpush1.bf16.msra.mxu1 %v9423_v28  ;;  %v427_v28 = vld [vmem:[%s9732_s15 + $0x460] sm:$0xff]  ;;  %v7812_v38 = vcombine.low %v416_v25, %v424_v26 }
 0x1a6   : > { %4720 = vmatmul.mubr.bf16.gmra.mrb[4].mxu1 %v7700_v29  ;;  %4972 = vmatprep.subr.bf16.mxu1 %v9587_v2  ;;  %v7796_v29 = vcombine.low %v400_v16, %v408_v17  ;;  %v7818_v39 = vcombine.low %v419_v27, %v427_v28  ;;  %v512_v16 = vld [vmem:[%s9732_s15 + $0x708] sm:$0xff] }
 0x1a7   : > { %5587 = vmatmul.mubr.bf16.gmra.mrb[4].mxu0 %v7706_v30  ;;  %4727 = vmatprep.mubr.bf16.mxu1 %v7717_v31  ;;  %v7802_v30 = vcombine.low %v403_v18, %v411_v19  ;;  %v7813_v31 = vcombine.high %v416_v25, %v424_v26  ;;  %v520_v17 = vld [vmem:[%s9732_s15 + $0x748] sm:$0xff]  ;;  %v515_v18 = vld [vmem:[%s9732_s15 + $0x720] sm:$0xff] }
 0x1a8   : > { %5594 = vmatprep.mubr.bf16.mxu0 %v7723_v32  ;;  %5840 = vmatpush1.bf16.msra.mxu0 %v9418_v33  ;;  %v7819_v32 = vcombine.high %v419_v27, %v427_v28  ;;  %v9435_v33 = vld [vmem:[%s11792_s1 + $0x138] sm:$0xff]   ;;  %v523_v19 = vld [vmem:[%s9732_s15 + $0x760] sm:$0xff]  ;;  %v528_v25 = vld [vmem:[%s9732_s15 + $0x788] sm:$0xff] }
 0x1a9   : > { %5841 = vmatprep.subr.bf16.mxu0 %v9587_v2  ;;  %4973 = vmatpush1.bf16.msra.mxu1 %v9425_v34  ;;  %v432_v34 = vld [vmem:[%s9732_s15 + $0x488] sm:$0xff]  ;;  %v9442_v27 = vld [vmem:[%s11792_s1 + $0x158] sm:$0xff]   ;;  %v531_v28 = vld [vmem:[%s9732_s15 + $0x7a0] sm:$0xff] }
 0x1aa   : > { %4974 = vmatprep.subr.bf16.mxu1 %v9587_v2  ;;  %v7828_v47 = vcombine.low %v432_v34, %v440_v35  ;;  %v536_v26 = vld [vmem:[%s9732_s15 + $0x7c8] sm:$0xff] }
 0x1ac   : > { %5842 = vmatpush1.bf16.msra.mxu0 %v9419_v37  ;;  %v443_v37 = vld [vmem:[%s9732_s15 + $0x4e0] sm:$0xff] }
 0x1ad   : > { %5843 = vmatprep.subr.bf16.mxu0 %v9587_v2  ;;  %4975 = vmatpush1.bf16.msra.mxu1 %v9427_v40  ;;  %v7829_v40 = vcombine.high %v432_v34, %v440_v35  ;;  %v7834_v48 = vcombine.low %v435_v36, %v443_v37  ;;  %v9443_v34 = vld [vmem:[%s11792_s1 + $0x160] sm:$0xff]   ;;  %v9444_v35 = vld [vmem:[%s11792_s1 + $0x2f8] sm:$0xff]  }
 0x1ae   : > { %4728 = vmatmul.mubr.bf16.gmra.mrb[8].mxu1 %v7716_v41  ;;  %4976 = vmatprep.subr.bf16.mxu1 %v9587_v2  ;;  %v7835_v41 = vcombine.high %v435_v36, %v443_v37  ;;  %v544_v36 = vld [vmem:[%s9732_s15 + $0x808] sm:$0xff] }
 0x1af   : > { %5595 = vmatmul.mubr.bf16.gmra.mrb[8].mxu0 %v7722_v42  ;;  %4735 = vmatprep.mubr.bf16.mxu1 %v7733_v43  ;;  %v9436_v42 = vld [vmem:[%s11792_s1 + $0x2e0] sm:$0xff]   ;;  %v448_v43 = vld [vmem:[%s9732_s15 + $0x508] sm:$0xff] }
 0x1b0   : > { %5602 = vmatprep.mubr.bf16.mxu0 %v7739_v44  ;;  %5844 = vmatpush1.bf16.msra.mxu0 %v9420_v45  ;;  %v456_v44 = vld [vmem:[%s9732_s15 + $0x548] sm:$0xff]  ;;  %v451_v45 = vld [vmem:[%s9732_s15 + $0x520] sm:$0xff] }
 0x1b1   : > { %5845 = vmatprep.subr.bf16.mxu0 %v9587_v2  ;;  %4977 = vmatpush1.bf16.msra.mxu1 %v9429_v46  ;;  %v459_v46 = vld [vmem:[%s9732_s15 + $0x560] sm:$0xff]  ;;  %v552_v37 = vld [vmem:[%s9732_s15 + $0x848] sm:$0xff] }
 0x1b2   : > { %4978 = vmatprep.subr.bf16.mxu1 %v9587_v2  ;;  %v7851_v50 = vcombine.high %v451_v45, %v459_v46 }
 0x1b4   : > { %5846 = vmatpush1.bf16.msra.mxu0 %v9422_v49  ;;  %v7845_v49 = vcombine.high %v448_v43, %v456_v44 }
 0x1b5   : > { %5847 = vmatprep.subr.bf16.mxu0 %v9587_v2  ;;  %4979 = vmatpush1.bf16.msra.mxu1 %v9431_v57  ;;  %v7850_v57 = vcombine.low %v451_v45, %v459_v46  ;;  %v9446_v45 = vld [vmem:[%s11792_s1 + $0x170] sm:$0xff]   ;;  %v560_v46 = vld [vmem:[%s9732_s15 + $0x888] sm:$0xff] }
 0x1b6   : > { %4736 = vmatmul.mubr.bf16.gmra.mrb[12].mxu1 %v7732_v52  ;;  %4980 = vmatprep.subr.bf16.mxu1 %v9587_v2  ;;  %v464_v52 = vld [vmem:[%s9732_s15 + $0x588] sm:$0xff] }
 0x1b7   : > { %5603 = vmatmul.mubr.bf16.gmra.mrb[12].mxu0 %v7738_v53  ;;  %4743 = vmatprep.mubr.bf16.mxu1 %v7749_v54  ;;  %v472_v53 = vld [vmem:[%s9732_s15 + $0x5c8] sm:$0xff]  ;;  %v467_v54 = vld [vmem:[%s9732_s15 + $0x5a0] sm:$0xff] }
 0x1b8   : > { %5610 = vmatprep.mubr.bf16.mxu0 %v7755_v55  ;;  %5848 = vmatpush1.bf16.msra.mxu0 %v9424_v56  ;;  %v475_v55 = vld [vmem:[%s9732_s15 + $0x5e0] sm:$0xff]  ;;  %v7844_v56 = vcombine.low %v448_v43, %v456_v44  ;;  %v7861_v58 = vcombine.high %v464_v52, %v472_v53  ;;  %v7941_v43 = vcombine.high %v544_v36, %v552_v37 }
 0x1b9   : > { %5849 = vmatprep.subr.bf16.mxu0 %v9587_v2  ;;  %4981 = vmatpush1.bf16.msra.mxu1 %v9433_v15  ;;  %v7867_v59 = vcombine.high %v467_v54, %v475_v55  ;;  %v9440_v15 = vld [vmem:[%s11792_s1 + $0x2f0] sm:$0xff]  }
 0x1ba   : > { %4982 = vmatprep.subr.bf16.mxu1 %v9587_v2 }
 0x1bc   : > { %5850 = vmatpush1.bf16.msra.mxu0 %v9426_v60  ;;  %v9438_v60 = vld [vmem:[%s11792_s1 + $0x2e8] sm:$0xff]  }
 0x1bd   : > { %5851 = vmatprep.subr.bf16.mxu0 %v9587_v2  ;;  %4983 = vmatpush1.bf16.msra.mxu1 %v9435_v33 }
 0x1be   : > { %4744 = vmatmul.mubr.bf16.gmra.mrb[16].mxu1 %v7748_v63  ;;  %4984 = vmatprep.subr.bf16.mxu1 %v9587_v2  ;;  %v483_v63 = vld [vmem:[%s9732_s15 + $0x620] sm:$0xff] }
 0x1bf   : > { %5611 = vmatmul.mubr.bf16.gmra.mrb[16].mxu0 %v7754_v0  ;;  %4751 = vmatprep.mubr.bf16.mxu1 %v7765_v1  ;;  %v491_v0 = vld [vmem:[%s9732_s15 + $0x660] sm:$0xff]  ;;  %v7860_v1 = vcombine.low %v464_v52, %v472_v53 }
 0x1c0   : > { %5618 = vmatprep.mubr.bf16.mxu0 %v7771_v3  ;;  %5852 = vmatpush1.bf16.msra.mxu0 %v9428_v4  ;;  %v7866_v3 = vcombine.low %v467_v54, %v475_v55  ;;  %v7877_v4 = vcombine.high %v480_v61, %v488_v62  ;;  %v7883_v5 = vcombine.high %v483_v63, %v491_v0  ;;  %v576_v55 = vld [vmem:[%s9732_s15 + $0x908] sm:$0xff] }
 0x1c1   : > { %5853 = vmatprep.subr.bf16.mxu0 %v9587_v2  ;;  %4985 = vmatpush1.bf16.msra.mxu1 %v9437_v51  ;;  %v7940_v51 = vcombine.low %v544_v36, %v552_v37 }
 0x1c2   : > { %4986 = vmatprep.subr.bf16.mxu1 %v9587_v2 }
 0x1c4   : > { %5854 = vmatpush1.bf16.msra.mxu0 %v9430_v7  ;;  %v496_v7 = vld [vmem:[%s9732_s15 + $0x688] sm:$0xff] }
 0x1c5   : > { %5855 = vmatprep.subr.bf16.mxu0 %v9587_v2  ;;  %4987 = vmatpush1.bf16.msra.mxu1 %v9439_v6 }
 0x1c6   : > { %4752 = vmatmul.mubr.bf16.gmra.mrb[20].mxu1 %v7764_v10  ;;  %v507_v10 = vld [vmem:[%s9732_s15 + $0x6e0] sm:$0xff]  ;;  %4988 = vmatprep.subr.bf16.mxu1 %v9587_v2 }
 0x1c7   : > { %5619 = vmatmul.mubr.bf16.gmra.mrb[20].mxu0 %v7770_v11  ;;  %4759 = vmatprep.mubr.bf16.mxu1 %v7781_v12  ;;  %v7876_v11 = vcombine.low %v480_v61, %v488_v62  ;;  %v7882_v12 = vcombine.low %v483_v63, %v491_v0  ;;  %v592_v63 = vld [vmem:[%s9732_s15 + $0x988] sm:$0xff] }
 0x1c8   : > { %5626 = vmatprep.mubr.bf16.mxu0 %v7787_v13  ;;  %5856 = vmatpush1.bf16.msra.mxu0 %v9432_v14  ;;  %v7893_v13 = vcombine.high %v496_v7, %v504_v8  ;;  %v7899_v14 = vcombine.high %v499_v9, %v507_v10  ;;  %v600_v0 = vld [vmem:[%s9732_s15 + $0x9c8] sm:$0xff] }
 0x1c9   : > { %5857 = vmatprep.subr.bf16.mxu0 %v9587_v2  ;;  %v7989_v6 = vcombine.high %v592_v63, %v600_v0 }
 0x1cc   : > { %5858 = vmatpush1.bf16.msra.mxu0 %v9434_v24  ;;  %v9441_v24 = vld [vmem:[%s11792_s1 + $0x150] sm:$0xff]  }
 0x1cd   : > { %5859 = vmatprep.subr.bf16.mxu0 %v9587_v2  ;;  %4989 = vmatpush1.bf16.msra.mxu1 %v9441_v24  ;;  %v640_v24 = vld [vmem:[%s9732_s15 + $0xb08] sm:$0xff] }
 0x1ce   : > { %4760 = vmatmul.mubr.bf16.gmra.mrb[24].mxu1 %v7780_v20  ;;  %v7892_v20 = vcombine.low %v496_v7, %v504_v8  ;;  %4990 = vmatprep.subr.bf16.mxu1 %v9587_v2  ;;  %v608_v8 = vld [vmem:[%s9732_s15 + $0xa08] sm:$0xff] }
 0x1cf   : > { %5627 = vmatmul.mubr.bf16.gmra.mrb[24].mxu0 %v7786_v21  ;;  %4767 = vmatprep.mubr.bf16.mxu1 %v7797_v22  ;;  %v7898_v21 = vcombine.low %v499_v9, %v507_v10  ;;  %v7909_v22 = vcombine.high %v512_v16, %v520_v17  ;;  %v616_v9 = vld [vmem:[%s9732_s15 + $0xa48] sm:$0xff]  ;;  %v611_v10 = vld [vmem:[%s9732_s15 + $0xa20] sm:$0xff] }
 0x1d0   : > { %5634 = vmatprep.mubr.bf16.mxu0 %v7803_v23  ;;  %5860 = vmatpush1.bf16.msra.mxu0 %v9436_v42  ;;  %v7915_v23 = vcombine.high %v515_v18, %v523_v19 }
 0x1d1   : > { %5861 = vmatprep.subr.bf16.mxu0 %v9587_v2  ;;  %4991 = vmatpush1.bf16.msra.mxu1 %v9442_v27  ;;  %v651_v27 = vld [vmem:[%s9732_s15 + $0xb60] sm:$0xff] }
 0x1d2   : > { %4992 = vmatprep.subr.bf16.mxu1 %v9587_v2 }
 0x1d4   : > { %5862 = vmatpush1.bf16.msra.mxu0 %v9438_v60 }
 0x1d5   : > { %5863 = vmatprep.subr.bf16.mxu0 %v9587_v2  ;;  %4993 = vmatpush1.bf16.msra.mxu1 %v9443_v34  ;;  %v659_v34 = vld [vmem:[%s9732_s15 + $0xba0] sm:$0xff] }
 0x1d6   : > { %4768 = vmatmul.mubr.bf16.gmra.mrb[28].mxu1 %v7796_v29  ;;  %v539_v29 = vld [vmem:[%s9732_s15 + $0x7e0] sm:$0xff]  ;;  %4994 = vmatprep.subr.bf16.mxu1 %v9587_v2 }
 0x1d7   : > { %5635 = vmatmul.mubr.bf16.gmra.mrb[28].mxu0 %v7802_v30  ;;  %4775 = vmatprep.mubr.bf16.mxu1 %v7813_v31  ;;  %v7908_v30 = vcombine.low %v512_v16, %v520_v17  ;;  %v7914_v31 = vcombine.low %v515_v18, %v523_v19  ;;  %v7931_v33 = vcombine.high %v531_v28, %v539_v29  ;;  %v624_v16 = vld [vmem:[%s9732_s15 + $0xa88] sm:$0xff]  ;;  %v627_v18 = vld [vmem:[%s9732_s15 + $0xaa0] sm:$0xff] }
 0x1d8   : > { %5642 = vmatprep.mubr.bf16.mxu0 %v7819_v32  ;;  %5864 = vmatpush1.bf16.msra.mxu0 %v9440_v15  ;;  %v7925_v32 = vcombine.high %v528_v25, %v536_v26  ;;  %v7930_v42 = vcombine.low %v531_v28, %v539_v29  ;;  %v632_v17 = vld [vmem:[%s9732_s15 + $0xac8] sm:$0xff]  ;;  %v635_v19 = vld [vmem:[%s9732_s15 + $0xae0] sm:$0xff] }
 0x1d9   : > { %5865 = vmatprep.subr.bf16.mxu0 %v9587_v2  ;;  %v8020_v28 = vcombine.low %v624_v16, %v632_v17  ;;  %v8026_v29 = vcombine.low %v627_v18, %v635_v19 }
 0x1dc   : > { %5866 = vmatpush1.bf16.msra.mxu0 %v9444_v35  ;;  %v667_v35 = vld [vmem:[%s9732_s15 + $0xbe0] sm:$0xff] }
 0x1dd   : > { %6124 = vmatprep.subr.bf16.mxu0 %v9587_v2 }
 0x1de   : > { %4776 = vmatmul.mubr.bf16.gmra.mrb[32].mxu1 %v7812_v38  ;;  %v9445_v38 = vld [vmem:[%s11792_s1 + $0x168] sm:$0xff]  }
 0x1df   : > { %5643 = vmatmul.mubr.bf16.gmra.mrb[32].mxu0 %v7818_v39  ;;  %4783 = vmatprep.mubr.bf16.mxu1 %v7829_v40  ;;  %v547_v39 = vld [vmem:[%s9732_s15 + $0x820] sm:$0xff] }
 0x1e0   : > { %5650 = vmatprep.mubr.bf16.mxu0 %v7835_v41  ;;  %v555_v40 = vld [vmem:[%s9732_s15 + $0x860] sm:$0xff]  ;;  %v7924_v41 = vcombine.low %v528_v25, %v536_v26  ;;  %4995 = vmatpush1.bf16.msra.mxu1 %v9445_v38  ;;  %v648_v25 = vld [vmem:[%s9732_s15 + $0xb48] sm:$0xff] }
 0x1e1   : > { %v7947_v44 = vcombine.high %v547_v39, %v555_v40  ;;  %4996 = vmatprep.subr.bf16.mxu1 %v9587_v2  ;;  %v7946_v52 = vcombine.low %v547_v39, %v555_v40  ;;  %v643_v26 = vld [vmem:[%s9732_s15 + $0xb20] sm:$0xff]  ;;  %v8036_v36 = vcombine.low %v640_v24, %v648_v25  ;;  %v8059_v39 = vcombine.high %v659_v34, %v667_v35  ;;  %v672_v40 = vld [vmem:[%s9732_s15 + $0xc08] sm:$0xff] }
 0x1e2   : > { %v8042_v37 = vcombine.low %v643_v26, %v651_v27 }
 0x1e4   : > { %4997 = vmatpush1.bf16.msra.mxu1 %v9446_v45  ;;  %v8058_v45 = vcombine.low %v659_v34, %v667_v35  ;;  %v792_v34 = vld [vmem:[%s9732_s15 + $0xfc8] sm:$0xff]  ;;  %v787_v35 = vld [vmem:[%s9732_s15 + $0xfa0] sm:$0xff] }
 0x1e5   : > { %4998 = vmatprep.subr.bf16.mxu1 %v9587_v2 }
 0x1e6   : > { %4784 = vmatmul.mubr.bf16.gmra.mrb[36].mxu1 %v7828_v47  ;;  %v568_v47 = vld [vmem:[%s9732_s15 + $0x8c8] sm:$0xff] }
 0x1e7   : > { %5651 = vmatmul.mubr.bf16.gmra.mrb[36].mxu0 %v7834_v48  ;;  %4791 = vmatprep.mubr.bf16.mxu1 %v7845_v49  ;;  %v9447_v48 = vld [vmem:[%s11792_s1 + $0x178] sm:$0xff]   ;;  %v563_v49 = vld [vmem:[%s9732_s15 + $0x8a0] sm:$0xff]  ;;  %v7957_v53 = vcombine.high %v560_v46, %v568_v47 }
 0x1e8   : > { %5658 = vmatprep.mubr.bf16.mxu0 %v7851_v50  ;;  %v571_v50 = vld [vmem:[%s9732_s15 + $0x8e0] sm:$0xff]  ;;  %4999 = vmatpush1.bf16.msra.mxu1 %v9447_v48  ;;  %v688_v48 = vld [vmem:[%s9732_s15 + $0xc88] sm:$0xff] }
 0x1e9   : > { %v7963_v54 = vcombine.high %v563_v49, %v571_v50  ;;  %8414 = vmatprep.subr.bf16.mxu1 %v9587_v2  ;;  %v7962_v60 = vcombine.low %v563_v49, %v571_v50  ;;  %v696_v49 = vld [vmem:[%s9732_s15 + $0xcc8] sm:$0xff]  ;;  %v691_v50 = vld [vmem:[%s9732_s15 + $0xca0] sm:$0xff] }
 0x1ee   : > { %4792 = vmatmul.mubr.bf16.gmra.mrb[40].mxu1 %v7844_v56  ;;  %v584_v56 = vld [vmem:[%s9732_s15 + $0x948] sm:$0xff] }
 0x1ef   : > { %5659 = vmatmul.mubr.bf16.gmra.mrb[40].mxu0 %v7850_v57  ;;  %4799 = vmatprep.mubr.bf16.mxu1 %v7861_v58  ;;  %v579_v57 = vld [vmem:[%s9732_s15 + $0x920] sm:$0xff]  ;;  %v7973_v61 = vcombine.high %v576_v55, %v584_v56 }
 0x1f0   : > { %5666 = vmatprep.mubr.bf16.mxu0 %v7867_v59  ;;  %v587_v58 = vld [vmem:[%s9732_s15 + $0x960] sm:$0xff]  ;;  %v7956_v59 = vcombine.low %v560_v46, %v568_v47 }
 0x1f1   : > { %v7979_v62 = vcombine.high %v579_v57, %v587_v58 }
 0x1f6   : > { %4800 = vmatmul.mubr.bf16.gmra.mrb[44].mxu1 %v7860_v1  ;;  %v595_v1 = vld [vmem:[%s9732_s15 + $0x9a0] sm:$0xff] }
 0x1f7   : > { %5667 = vmatmul.mubr.bf16.gmra.mrb[44].mxu0 %v7866_v3  ;;  %4807 = vmatprep.mubr.bf16.mxu1 %v7877_v4  ;;  %v603_v3 = vld [vmem:[%s9732_s15 + $0x9e0] sm:$0xff]  ;;  %v7972_v4 = vcombine.low %v576_v55, %v584_v56  ;;  %v704_v56 = vld [vmem:[%s9732_s15 + $0xd08] sm:$0xff] }
 0x1f8   : > { %5674 = vmatprep.mubr.bf16.mxu0 %v7883_v5  ;;  %v7978_v5 = vcombine.low %v579_v57, %v587_v58  ;;  %v7995_v7 = vcombine.high %v595_v1, %v603_v3  ;;  %v712_v57 = vld [vmem:[%s9732_s15 + $0xd48] sm:$0xff]  ;;  %v707_v58 = vld [vmem:[%s9732_s15 + $0xd20] sm:$0xff] }
 0x1fe   : > { %4808 = vmatmul.mubr.bf16.gmra.mrb[48].mxu1 %v7876_v11  ;;  %v619_v11 = vld [vmem:[%s9732_s15 + $0xa60] sm:$0xff] }
 0x1ff   : > { %5675 = vmatmul.mubr.bf16.gmra.mrb[48].mxu0 %v7882_v12  ;;  %4815 = vmatprep.mubr.bf16.mxu1 %v7893_v13  ;;  %v7988_v12 = vcombine.low %v592_v63, %v600_v0  ;;  %v7994_v13 = vcombine.low %v595_v1, %v603_v3  ;;  %v8011_v15 = vcombine.high %v611_v10, %v619_v11  ;;  %v720_v0 = vld [vmem:[%s9732_s15 + $0xd88] sm:$0xff]  ;;  %v723_v3 = vld [vmem:[%s9732_s15 + $0xda0] sm:$0xff] }
 0x200   : > { %5682 = vmatprep.mubr.bf16.mxu0 %v7899_v14  ;;  %v8005_v14 = vcombine.high %v608_v8, %v616_v9  ;;  %v728_v1 = vld [vmem:[%s9732_s15 + $0xdc8] sm:$0xff] }
 0x206   : > { %4816 = vmatmul.mubr.bf16.gmra.mrb[52].mxu1 %v7892_v20  ;;  %v8004_v20 = vcombine.low %v608_v8, %v616_v9  ;;  %v736_v9 = vld [vmem:[%s9732_s15 + $0xe08] sm:$0xff] }
 0x207   : > { %5683 = vmatmul.mubr.bf16.gmra.mrb[52].mxu0 %v7898_v21  ;;  %4823 = vmatprep.mubr.bf16.mxu1 %v7909_v22  ;;  %v8010_v21 = vcombine.low %v611_v10, %v619_v11  ;;  %v8021_v22 = vcombine.high %v624_v16, %v632_v17  ;;  %v744_v10 = vld [vmem:[%s9732_s15 + $0xe48] sm:$0xff]  ;;  %v739_v11 = vld [vmem:[%s9732_s15 + $0xe20] sm:$0xff] }
 0x208   : > { %5690 = vmatprep.mubr.bf16.mxu0 %v7915_v23  ;;  %v8027_v23 = vcombine.high %v627_v18, %v635_v19  ;;  %v752_v17 = vld [vmem:[%s9732_s15 + $0xe88] sm:$0xff]  ;;  %v755_v19 = vld [vmem:[%s9732_s15 + $0xea0] sm:$0xff] }
 0x209   : > { %v760_v18 = vld [vmem:[%s9732_s15 + $0xec8] sm:$0xff] }
 0x20e   : > { %4824 = vmatmul.mubr.bf16.gmra.mrb[56].mxu1 %v7908_v30  ;;  %v8037_v30 = vcombine.high %v640_v24, %v648_v25  ;;  %v768_v25 = vld [vmem:[%s9732_s15 + $0xf08] sm:$0xff] }
 0x20f   : > { %5691 = vmatmul.mubr.bf16.gmra.mrb[56].mxu0 %v7914_v31  ;;  %4831 = vmatprep.mubr.bf16.mxu1 %v7925_v32  ;;  %v8043_v31 = vcombine.high %v643_v26, %v651_v27  ;;  %v656_v32 = vld [vmem:[%s9732_s15 + $0xb88] sm:$0xff]  ;;  %v771_v27 = vld [vmem:[%s9732_s15 + $0xf20] sm:$0xff] }
 0x210   : > { %5698 = vmatprep.mubr.bf16.mxu0 %v7931_v33  ;;  %v664_v33 = vld [vmem:[%s9732_s15 + $0xbc8] sm:$0xff] }
 0x211   : > { %v8053_v38 = vcombine.high %v656_v32, %v664_v33  ;;  %v776_v26 = vld [vmem:[%s9732_s15 + $0xf48] sm:$0xff] }
 0x216   : > { %4832 = vmatmul.mubr.bf16.gmra.mrb[60].mxu1 %v7924_v41  ;;  %v680_v41 = vld [vmem:[%s9732_s15 + $0xc48] sm:$0xff] }
 0x217   : > { %5699 = vmatmul.mubr.bf16.gmra.mrb[60].mxu0 %v7930_v42  ;;  %4839 = vmatprep.mubr.bf16.mxu1 %v7941_v43  ;;  %v675_v42 = vld [vmem:[%s9732_s15 + $0xc20] sm:$0xff]  ;;  %v8069_v46 = vcombine.high %v672_v40, %v680_v41 }
 0x218   : > { %5706 = vmatprep.mubr.bf16.mxu0 %v7947_v44  ;;  %v683_v43 = vld [vmem:[%s9732_s15 + $0xc60] sm:$0xff]  ;;  %v8052_v44 = vcombine.low %v656_v32, %v664_v33  ;;  %v784_v33 = vld [vmem:[%s9732_s15 + $0xf88] sm:$0xff] }
 0x219   : > { %v8075_v47 = vcombine.high %v675_v42, %v683_v43 }
 0x21e   : > { %4840 = vmatmul.mubr.bf16.gmra.mrb[64].mxu1 %v7940_v51  ;;  %v699_v51 = vld [vmem:[%s9732_s15 + $0xce0] sm:$0xff] }
 0x21f   : > { %5707 = vmatmul.mubr.bf16.gmra.mrb[64].mxu0 %v7946_v52  ;;  %4847 = vmatprep.mubr.bf16.mxu1 %v7957_v53  ;;  %v8068_v52 = vcombine.low %v672_v40, %v680_v41  ;;  %v8074_v53 = vcombine.low %v675_v42, %v683_v43  ;;  %v8091_v55 = vcombine.high %v691_v50, %v699_v51  ;;  %v289_v41 = vld [vmem:[%s9732_s15 + $0x10] sm:$0xff]  ;;  %v292_v43 = vld [vmem:[%s9732_s15 + $0x28] sm:$0xff] }
 0x220   : > { %5714 = vmatprep.mubr.bf16.mxu0 %v7963_v54  ;;  %v8085_v54 = vcombine.high %v688_v48, %v696_v49  ;;  %v297_v42 = vld [vmem:[%s9732_s15 + $0x50] sm:$0xff] }
 0x226   : > { %4848 = vmatmul.mubr.bf16.gmra.mrb[68].mxu1 %v7956_v59  ;;  %v715_v59 = vld [vmem:[%s9732_s15 + $0xd60] sm:$0xff] }
 0x227   : > { %5715 = vmatmul.mubr.bf16.gmra.mrb[68].mxu0 %v7962_v60  ;;  %4855 = vmatprep.mubr.bf16.mxu1 %v7973_v61  ;;  %v8084_v60 = vcombine.low %v688_v48, %v696_v49  ;;  %v8090_v61 = vcombine.low %v691_v50, %v699_v51  ;;  %v8107_v63 = vcombine.high %v707_v58, %v715_v59  ;;  %v305_v49 = vld [vmem:[%s9732_s15 + $0x90] sm:$0xff]  ;;  %v308_v51 = vld [vmem:[%s9732_s15 + $0xa8] sm:$0xff] }
 0x228   : > { %5722 = vmatprep.mubr.bf16.mxu0 %v7979_v62  ;;  %v8101_v62 = vcombine.high %v704_v56, %v712_v57  ;;  %v313_v50 = vld [vmem:[%s9732_s15 + $0xd0] sm:$0xff] }
 0x22e   : > { %4856 = vmatmul.mubr.bf16.gmra.mrb[72].mxu1 %v7972_v4  ;;  %v731_v4 = vld [vmem:[%s9732_s15 + $0xde0] sm:$0xff] }
 0x22f   : > { %5723 = vmatmul.mubr.bf16.gmra.mrb[72].mxu0 %v7978_v5  ;;  %4863 = vmatprep.mubr.bf16.mxu1 %v7989_v6  ;;  %v8100_v5 = vcombine.low %v704_v56, %v712_v57  ;;  %v8106_v6 = vcombine.low %v707_v58, %v715_v59  ;;  %v8123_v8 = vcombine.high %v723_v3, %v731_v4  ;;  %v9448_v56 = vld [vmem:[%s11792_s1 + $0x300] sm:$0xff]   ;;  %v321_v59 = vld [vmem:[%s9732_s15 + $0x110] sm:$0xff] }
 0x230   : > { %5730 = vmatprep.mubr.bf16.mxu0 %v7995_v7  ;;  %v8117_v7 = vcombine.high %v720_v0, %v728_v1  ;;  %v10414_v58 = vld [vmem:[%s11792_s1 + $0x380] sm:$0xff]  }
 0x236   : > { %4864 = vmatmul.mubr.bf16.gmra.mrb[76].mxu1 %v7988_v12  ;;  %v747_v12 = vld [vmem:[%s9732_s15 + $0xe60] sm:$0xff] }
 0x237   : > { %5731 = vmatmul.mubr.bf16.gmra.mrb[76].mxu0 %v7994_v13  ;;  %4871 = vmatprep.mubr.bf16.mxu1 %v8005_v14  ;;  %v8116_v13 = vcombine.low %v720_v0, %v728_v1  ;;  %v8122_v14 = vcombine.low %v723_v3, %v731_v4  ;;  %v8139_v16 = vcombine.high %v739_v11, %v747_v12  ;;  %v10428_v0 = vld [vmem:[%s11792_s1 + $0x388] sm:$0xff]  }
 0x238   : > { %5738 = vmatprep.mubr.bf16.mxu0 %v8011_v15  ;;  %v8133_v15 = vcombine.high %v736_v9, %v744_v10  ;;  %v7702_v1 = vcombine.low %v305_v49, %v313_v50 }
 0x23e   : > { %4872 = vmatmul.mubr.bf16.gmra.mrb[80].mxu1 %v8004_v20  ;;  %v763_v20 = vld [vmem:[%s9732_s15 + $0xee0] sm:$0xff] }
 0x23f   : > { %5739 = vmatmul.mubr.bf16.gmra.mrb[80].mxu0 %v8010_v21  ;;  %4879 = vmatprep.mubr.bf16.mxu1 %v8021_v22  ;;  %v8132_v21 = vcombine.low %v736_v9, %v744_v10  ;;  %v8138_v22 = vcombine.low %v739_v11, %v747_v12  ;;  %v8155_v24 = vcombine.high %v755_v19, %v763_v20  ;;  %v345_v9 = vld [vmem:[%s9732_s15 + $0x1d0] sm:$0xff]  ;;  %v9451_v10 = vld [vmem:[%s11792_s1 + $0x318] sm:$0xff]   ;;  %v340_v11 = vld [vmem:[%s9732_s15 + $0x1a8] sm:$0xff] }
 0x240   : > { %5746 = vmatprep.mubr.bf16.mxu0 %v8027_v23  ;;  %v8149_v23 = vcombine.high %v752_v17, %v760_v18  ;;  %v348_v12 = vld [vmem:[%s9732_s15 + $0x1e8] sm:$0xff] }
 0x246   : > { %4880 = vmatmul.mubr.bf16.gmra.mrb[84].mxu1 %v8020_v28  ;;  %v779_v28 = vld [vmem:[%s9732_s15 + $0xf60] sm:$0xff] }
 0x247   : > { %5747 = vmatmul.mubr.bf16.gmra.mrb[84].mxu0 %v8026_v29  ;;  %4887 = vmatprep.mubr.bf16.mxu1 %v8037_v30  ;;  %v8148_v29 = vcombine.low %v752_v17, %v760_v18  ;;  %v8154_v30 = vcombine.low %v755_v19, %v763_v20  ;;  %v8171_v32 = vcombine.high %v771_v27, %v779_v28  ;;  %v9452_v18 = vld [vmem:[%s11792_s1 + $0x320] sm:$0xff]   ;;  %v353_v20 = vld [vmem:[%s9732_s15 + $0x210] sm:$0xff] }
 0x248   : > { %5754 = vmatprep.mubr.bf16.mxu0 %v8043_v31  ;;  %v8165_v31 = vcombine.high %v768_v25, %v776_v26  ;;  %v7741_v17 = vcombine.high %v340_v11, %v348_v12  ;;  %v10465_v19 = vld [vmem:[%s11792_s1 + $0x3a0] sm:$0xff]  }
 0x24e   : > { %4888 = vmatmul.mubr.bf16.gmra.mrb[88].mxu1 %v8036_v36  ;;  %v795_v36 = vld [vmem:[%s9732_s15 + $0xfe0] sm:$0xff] }
 0x24f   : > { %5755 = vmatmul.mubr.bf16.gmra.mrb[88].mxu0 %v8042_v37  ;;  %4895 = vmatprep.mubr.bf16.mxu1 %v8053_v38  ;;  %v8164_v37 = vcombine.low %v768_v25, %v776_v26  ;;  %v8170_v38 = vcombine.low %v771_v27, %v779_v28  ;;  %v8187_v40 = vcombine.high %v787_v35, %v795_v36 }
 0x250   : > { %5762 = vmatprep.mubr.bf16.mxu0 %v8059_v39  ;;  %v8181_v39 = vcombine.high %v784_v33, %v792_v34  ;;  %v7740_v26 = vcombine.low %v340_v11, %v348_v12  ;;  %v441_v11 = vld [vmem:[%s9732_s15 + $0x4d0] sm:$0xff]  ;;  %v436_v12 = vld [vmem:[%s9732_s15 + $0x4a8] sm:$0xff] }
 0x256   : > { %4896 = vmatmul.mubr.bf16.gmra.mrb[92].mxu1 %v8052_v44  ;;  %v300_v44 = vld [vmem:[%s9732_s15 + $0x68] sm:$0xff] }
 0x257   : > { %5763 = vmatmul.mubr.bf16.gmra.mrb[92].mxu0 %v8058_v45  ;;  %4903 = vmatprep.mubr.bf16.mxu1 %v8069_v46  ;;  %v8180_v45 = vcombine.low %v784_v33, %v792_v34  ;;  %v8186_v46 = vcombine.low %v787_v35, %v795_v36  ;;  %v7693_v48 = vcombine.high %v292_v43, %v300_v44  ;;  %v9458_v33 = vld [vmem:[%s11792_s1 + $0x338] sm:$0xff]   ;;  %v372_v34 = vld [vmem:[%s9732_s15 + $0x2a8] sm:$0xff] }
 0x258   : > { %5770 = vmatprep.mubr.bf16.mxu0 %v8075_v47  ;;  %v7687_v47 = vcombine.high %v289_v41, %v297_v42  ;;  %v380_v35 = vld [vmem:[%s9732_s15 + $0x2e8] sm:$0xff] }
 0x25e   : > { %4904 = vmatmul.mubr.bf16.gmra.mrb[96].mxu1 %v8068_v52  ;;  %v316_v52 = vld [vmem:[%s9732_s15 + $0xe8] sm:$0xff] }
 0x25f   : > { %5771 = vmatmul.mubr.bf16.gmra.mrb[96].mxu0 %v8074_v53  ;;  %4911 = vmatprep.mubr.bf16.mxu1 %v8085_v54  ;;  %v7686_v53 = vcombine.low %v289_v41, %v297_v42  ;;  %v7692_v54 = vcombine.low %v292_v43, %v300_v44  ;;  %v7709_v57 = vcombine.high %v308_v51, %v316_v52  ;;  %v385_v41 = vld [vmem:[%s9732_s15 + $0x310] sm:$0xff]  ;;  %v9462_v43 = vld [vmem:[%s11792_s1 + $0x348] sm:$0xff]  }
 0x260   : > { %5778 = vmatprep.mubr.bf16.mxu0 %v8091_v55  ;;  %v7703_v55 = vcombine.high %v305_v49, %v313_v50  ;;  %v7708_v3 = vcombine.low %v308_v51, %v316_v52  ;;  %v393_v42 = vld [vmem:[%s9732_s15 + $0x350] sm:$0xff]  ;;  %v388_v44 = vld [vmem:[%s9732_s15 + $0x328] sm:$0xff] }
 0x261   : > { %v9464_v50 = vld [vmem:[%s11792_s1 + $0x350] sm:$0xff]  }
 0x262   : > { %v10516_v51 = vld [vmem:[%s11792_s1 + $0x3b0] sm:$0xff]  }
 0x263   : > { %v401_v52 = vld [vmem:[%s9732_s15 + $0x390] sm:$0xff] }
 0x266   : > { %4912 = vmatmul.mubr.bf16.gmra.mrb[100].mxu1 %v8084_v60  ;;  %v329_v60 = vld [vmem:[%s9732_s15 + $0x150] sm:$0xff] }
 0x267   : > { %5779 = vmatmul.mubr.bf16.gmra.mrb[100].mxu0 %v8090_v61  ;;  %4919 = vmatprep.mubr.bf16.mxu1 %v8101_v62  ;;  %v9449_v61 = vld [vmem:[%s11792_s1 + $0x308] sm:$0xff]   ;;  %v7719_v4 = vcombine.high %v321_v59, %v329_v60 }
 0x268   : > { %5786 = vmatprep.mubr.bf16.mxu0 %v8107_v63  ;;  %v324_v62 = vld [vmem:[%s9732_s15 + $0x128] sm:$0xff] }
 0x269   : > { %v332_v63 = vld [vmem:[%s9732_s15 + $0x168] sm:$0xff] }
 0x26e   : > { %4920 = vmatmul.mubr.bf16.gmra.mrb[104].mxu1 %v8100_v5  ;;  %v7725_v5 = vcombine.high %v324_v62, %v332_v63 }
 0x26f   : > { %5787 = vmatmul.mubr.bf16.gmra.mrb[104].mxu0 %v8106_v6  ;;  %4927 = vmatprep.mubr.bf16.mxu1 %v8117_v7  ;;  %v9450_v6 = vld [vmem:[%s11792_s1 + $0x310] sm:$0xff]  }
 0x270   : > { %5794 = vmatprep.mubr.bf16.mxu0 %v8123_v8  ;;  %v10439_v7 = vld [vmem:[%s11792_s1 + $0x390] sm:$0xff]  }
 0x271   : > { %v337_v8 = vld [vmem:[%s9732_s15 + $0x190] sm:$0xff] }
 0x272   : > { %v7734_v25 = vcombine.low %v337_v8, %v345_v9 }
 0x276   : > { %4928 = vmatmul.mubr.bf16.gmra.mrb[108].mxu1 %v8116_v13  ;;  %v10454_v13 = vld [vmem:[%s11792_s1 + $0x398] sm:$0xff]  }
 0x277   : > { %5795 = vmatmul.mubr.bf16.gmra.mrb[108].mxu0 %v8122_v14  ;;  %4935 = vmatprep.mubr.bf16.mxu1 %v8133_v15  ;;  %v7718_v14 = vcombine.low %v321_v59, %v329_v60  ;;  %v7724_v15 = vcombine.low %v324_v62, %v332_v63  ;;  %v417_v62 = vld [vmem:[%s9732_s15 + $0x410] sm:$0xff] }
 0x278   : > { %5802 = vmatprep.mubr.bf16.mxu0 %v8139_v16  ;;  %v7735_v16 = vcombine.high %v337_v8, %v345_v9  ;;  %v425_v63 = vld [vmem:[%s9732_s15 + $0x450] sm:$0xff]  ;;  %v10536_v9 = vld [vmem:[%s11792_s1 + $0x3b8] sm:$0xff]  }
 0x27e   : > { %4936 = vmatmul.mubr.bf16.gmra.mrb[112].mxu1 %v8132_v21  ;;  %v361_v21 = vld [vmem:[%s9732_s15 + $0x250] sm:$0xff] }
 0x27f   : > { %5803 = vmatmul.mubr.bf16.gmra.mrb[112].mxu0 %v8138_v22  ;;  %4943 = vmatprep.mubr.bf16.mxu1 %v8149_v23  ;;  %v9454_v22 = vld [vmem:[%s11792_s1 + $0x328] sm:$0xff]   ;;  %v7751_v27 = vcombine.high %v353_v20, %v361_v21  ;;  %v7750_v36 = vcombine.low %v353_v20, %v361_v21  ;;  %v9468_v20 = vld [vmem:[%s11792_s1 + $0x360] sm:$0xff]   ;;  %v449_v21 = vld [vmem:[%s9732_s15 + $0x510] sm:$0xff] }
 0x280   : > { %5810 = vmatprep.mubr.bf16.mxu0 %v8155_v24  ;;  %v356_v23 = vld [vmem:[%s9732_s15 + $0x228] sm:$0xff] }
 0x281   : > { %v364_v24 = vld [vmem:[%s9732_s15 + $0x268] sm:$0xff] }
 0x282   : > { %v7757_v28 = vcombine.high %v356_v23, %v364_v24 }
 0x286   : > { %4944 = vmatmul.mubr.bf16.gmra.mrb[116].mxu1 %v8148_v29  ;;  %v9456_v29 = vld [vmem:[%s11792_s1 + $0x330] sm:$0xff]  }
 0x287   : > { %5811 = vmatmul.mubr.bf16.gmra.mrb[116].mxu0 %v8154_v30  ;;  %4951 = vmatprep.mubr.bf16.mxu1 %v8165_v31  ;;  %v10485_v30 = vld [vmem:[%s11792_s1 + $0x3a8] sm:$0xff]   ;;  %v369_v31 = vld [vmem:[%s9732_s15 + $0x290] sm:$0xff] }
 0x288   : > { %5818 = vmatprep.mubr.bf16.mxu0 %v8171_v32  ;;  %v377_v32 = vld [vmem:[%s9732_s15 + $0x2d0] sm:$0xff] }
 0x28e   : > { %4952 = vmatmul.mubr.bf16.gmra.mrb[120].mxu1 %v8164_v37  ;;  %v7756_v37 = vcombine.low %v356_v23, %v364_v24  ;;  %v452_v23 = vld [vmem:[%s9732_s15 + $0x528] sm:$0xff] }
 0x28f   : > { %5819 = vmatmul.mubr.bf16.gmra.mrb[120].mxu0 %v8170_v38  ;;  %4959 = vmatprep.mubr.bf16.mxu1 %v8181_v39  ;;  %v7767_v38 = vcombine.high %v369_v31, %v377_v32  ;;  %v7773_v39 = vcombine.high %v372_v34, %v380_v35  ;;  %v460_v24 = vld [vmem:[%s9732_s15 + $0x568] sm:$0xff] }
 0x290   : > { %5826 = vmatprep.mubr.bf16.mxu0 %v8187_v40  ;;  %v9460_v40 = vld [vmem:[%s11792_s1 + $0x340] sm:$0xff]  }
 0x296   : > { %4960 = vmatmul.mubr.bf16.gmra.mrb[124].mxu1 %v8180_v45  ;;  %v396_v45 = vld [vmem:[%s9732_s15 + $0x368] sm:$0xff] }
 0x297   : > { %5827 = vmatmul.mubr.bf16.gmra.mrb[124].mxu0 %v8186_v46  ;;  %5000 = vmatprep.mubr.bf16.mxu1 %v7687_v47  ;;  %v7766_v46 = vcombine.low %v369_v31, %v377_v32  ;;  %v7772_v47 = vcombine.low %v372_v34, %v380_v35  ;;  %v7789_v49 = vcombine.high %v388_v44, %v396_v45  ;;  %v465_v31 = vld [vmem:[%s9732_s15 + $0x590] sm:$0xff]  ;;  %v476_v34 = vld [vmem:[%s9732_s15 + $0x5e8] sm:$0xff] }
 0x298   : > { %5867 = vmatprep.mubr.bf16.mxu0 %v7693_v48  ;;  %v7783_v48 = vcombine.high %v385_v41, %v393_v42  ;;  %v473_v32 = vld [vmem:[%s9732_s15 + $0x5d0] sm:$0xff] }
 0x29e   : > { %5001 = vmatmul.mubr.bf16.vlgmr.msra.gmra.mrb[0].mxu1 %v7686_v53  ;;  %v409_v53 = vld [vmem:[%s9732_s15 + $0x3d0] sm:$0xff] }
 0x29f   : > { %5868 = vmatmul.mubr.bf16.vlgmr.msra.gmra.mrb[0].mxu0 %v7692_v54  ;;  %5008 = vmatprep.mubr.bf16.mxu1 %v7703_v55  ;;  %v404_v54 = vld [vmem:[%s9732_s15 + $0x3a8] sm:$0xff]  ;;  %v7799_v59 = vcombine.high %v401_v52, %v409_v53 }
 0x2a0   : > { %6125 = vmatpush1.bf16.msra.mxu0 %v9448_v56  ;;  %5875 = vmatprep.mubr.bf16.mxu0 %v7709_v57  ;;  %v412_v55 = vld [vmem:[%s9732_s15 + $0x3e8] sm:$0xff]  ;;  %v7782_v56 = vcombine.low %v385_v41, %v393_v42  ;;  %v7788_v57 = vcombine.low %v388_v44, %v396_v45  ;;  %v489_v41 = vld [vmem:[%s9732_s15 + $0x650] sm:$0xff]  ;;  %v7862_v44 = vcombine.low %v465_v31, %v473_v32 }
 0x2a1   : > { %6126 = vmatprep.subr.bf16.mxu0 %v9587_v2  ;;  %8430 = vmatpush1.bf16.msra.mxu1 %v10414_v58  ;;  %v7805_v60 = vcombine.high %v404_v54, %v412_v55  ;;  %v484_v42 = vld [vmem:[%s9732_s15 + $0x628] sm:$0xff] }
 0x2a2   : > { %8415 = vmatprep.subr.bf16.mxu1 %v9587_v2 }
 0x2a4   : > { %6127 = vmatpush1.bf16.msra.mxu0 %v9449_v61  ;;  %v9466_v61 = vld [vmem:[%s11792_s1 + $0x358] sm:$0xff]  }
 0x2a5   : > { %6128 = vmatprep.subr.bf16.mxu0 %v9587_v2  ;;  %8431 = vmatpush1.bf16.msra.mxu1 %v10428_v0 }
 0x2a6   : > { %5009 = vmatmul.mubr.bf16.gmra.mrb[4].mxu1 %v7702_v1  ;;  %8416 = vmatprep.subr.bf16.mxu1 %v9587_v2  ;;  %v420_v1 = vld [vmem:[%s9732_s15 + $0x428] sm:$0xff] }
 0x2a7   : > { %5876 = vmatmul.mubr.bf16.gmra.mrb[4].mxu0 %v7708_v3  ;;  %5016 = vmatprep.mubr.bf16.mxu1 %v7719_v4  ;;  %v428_v3 = vld [vmem:[%s9732_s15 + $0x468] sm:$0xff]  ;;  %v7798_v4 = vcombine.low %v401_v52, %v409_v53 }
 0x2a8   : > { %5883 = vmatprep.mubr.bf16.mxu0 %v7725_v5  ;;  %6129 = vmatpush1.bf16.msra.mxu0 %v9450_v6  ;;  %v7804_v5 = vcombine.low %v404_v54, %v412_v55  ;;  %v7815_v6 = vcombine.high %v417_v62, %v425_v63  ;;  %v7821_v8 = vcombine.high %v420_v1, %v428_v3  ;;  %v508_v52 = vld [vmem:[%s9732_s15 + $0x6e8] sm:$0xff] }
 0x2a9   : > { %6130 = vmatprep.subr.bf16.mxu0 %v9587_v2  ;;  %8432 = vmatpush1.bf16.msra.mxu1 %v10439_v7 }
 0x2aa   : > { %8417 = vmatprep.subr.bf16.mxu1 %v9587_v2 }
 0x2ac   : > { %6131 = vmatpush1.bf16.msra.mxu0 %v9451_v10  ;;  %v433_v10 = vld [vmem:[%s9732_s15 + $0x490] sm:$0xff] }
 0x2ad   : > { %6132 = vmatprep.subr.bf16.mxu0 %v9587_v2  ;;  %8433 = vmatpush1.bf16.msra.mxu1 %v10454_v13 }
 0x2ae   : > { %5017 = vmatmul.mubr.bf16.gmra.mrb[8].mxu1 %v7718_v14  ;;  %8418 = vmatprep.subr.bf16.mxu1 %v9587_v2  ;;  %v444_v14 = vld [vmem:[%s9732_s15 + $0x4e8] sm:$0xff] }
 0x2af   : > { %5884 = vmatmul.mubr.bf16.gmra.mrb[8].mxu0 %v7724_v15  ;;  %5024 = vmatprep.mubr.bf16.mxu1 %v7735_v16  ;;  %v7814_v15 = vcombine.low %v417_v62, %v425_v63  ;;  %v7820_v16 = vcombine.low %v420_v1, %v428_v3  ;;  %v516_v62 = vld [vmem:[%s9732_s15 + $0x728] sm:$0xff] }
 0x2b0   : > { %5891 = vmatprep.mubr.bf16.mxu0 %v7741_v17  ;;  %6133 = vmatpush1.bf16.msra.mxu0 %v9452_v18  ;;  %v7831_v17 = vcombine.high %v433_v10, %v441_v11  ;;  %v7837_v18 = vcombine.high %v436_v12, %v444_v14  ;;  %v524_v63 = vld [vmem:[%s9732_s15 + $0x768] sm:$0xff] }
 0x2b1   : > { %6134 = vmatprep.subr.bf16.mxu0 %v9587_v2  ;;  %8434 = vmatpush1.bf16.msra.mxu1 %v10465_v19 }
 0x2b2   : > { %8419 = vmatprep.subr.bf16.mxu1 %v9587_v2 }
 0x2b4   : > { %6135 = vmatpush1.bf16.msra.mxu0 %v9454_v22  ;;  %v457_v22 = vld [vmem:[%s9732_s15 + $0x550] sm:$0xff] }
 0x2b5   : > { %6136 = vmatprep.subr.bf16.mxu0 %v9587_v2  ;;  %8435 = vmatpush1.bf16.msra.mxu1 %v10485_v30  ;;  %v7846_v35 = vcombine.low %v449_v21, %v457_v22 }
 0x2b6   : > { %5025 = vmatmul.mubr.bf16.gmra.mrb[12].mxu1 %v7734_v25  ;;  %8420 = vmatprep.subr.bf16.mxu1 %v9587_v2  ;;  %v7830_v25 = vcombine.low %v433_v10, %v441_v11  ;;  %v532_v10 = vld [vmem:[%s9732_s15 + $0x7a8] sm:$0xff] }
 0x2b7   : > { %5892 = vmatmul.mubr.bf16.gmra.mrb[12].mxu0 %v7740_v26  ;;  %5032 = vmatprep.mubr.bf16.mxu1 %v7751_v27  ;;  %v7836_v26 = vcombine.low %v436_v12, %v444_v14  ;;  %v7847_v27 = vcombine.high %v449_v21, %v457_v22  ;;  %v540_v11 = vld [vmem:[%s9732_s15 + $0x7e8] sm:$0xff]  ;;  %v7916_v14 = vcombine.low %v516_v62, %v524_v63  ;;  %v553_v21 = vld [vmem:[%s9732_s15 + $0x850] sm:$0xff] }
 0x2b8   : > { %5899 = vmatprep.mubr.bf16.mxu0 %v7757_v28  ;;  %6137 = vmatpush1.bf16.msra.mxu0 %v9456_v29  ;;  %v7853_v28 = vcombine.high %v452_v23, %v460_v24  ;;  %v10555_v29 = vld [vmem:[%s11792_s1 + $0x3c0] sm:$0xff]   ;;  %v548_v22 = vld [vmem:[%s9732_s15 + $0x828] sm:$0xff] }
 0x2b9   : > { %6138 = vmatprep.subr.bf16.mxu0 %v9587_v2  ;;  %8436 = vmatpush1.bf16.msra.mxu1 %v10516_v51 }
 0x2ba   : > { %8421 = vmatprep.subr.bf16.mxu1 %v9587_v2 }
 0x2bc   : > { %6139 = vmatpush1.bf16.msra.mxu0 %v9458_v33  ;;  %v468_v33 = vld [vmem:[%s9732_s15 + $0x5a8] sm:$0xff] }
 0x2bd   : > { %6140 = vmatprep.subr.bf16.mxu0 %v9587_v2  ;;  %8437 = vmatpush1.bf16.msra.mxu1 %v10536_v9  ;;  %v7868_v45 = vcombine.low %v468_v33, %v476_v34 }
 0x2be   : > { %5033 = vmatmul.mubr.bf16.gmra.mrb[16].mxu1 %v7750_v36  ;;  %8422 = vmatprep.subr.bf16.mxu1 %v9587_v2  ;;  %v7852_v36 = vcombine.low %v452_v23, %v460_v24  ;;  %v556_v23 = vld [vmem:[%s9732_s15 + $0x868] sm:$0xff] }
 0x2bf   : > { %5900 = vmatmul.mubr.bf16.gmra.mrb[16].mxu0 %v7756_v37  ;;  %5040 = vmatprep.mubr.bf16.mxu1 %v7767_v38  ;;  %v7863_v37 = vcombine.high %v465_v31, %v473_v32  ;;  %v7869_v38 = vcombine.high %v468_v33, %v476_v34  ;;  %v561_v31 = vld [vmem:[%s9732_s15 + $0x890] sm:$0xff]  ;;  %v10620_v33 = vld [vmem:[%s11792_s1 + $0x3e0] sm:$0xff]   ;;  %v564_v34 = vld [vmem:[%s9732_s15 + $0x8a8] sm:$0xff] }
 0x2c0   : > { %5907 = vmatprep.mubr.bf16.mxu0 %v7773_v39  ;;  %6141 = vmatpush1.bf16.msra.mxu0 %v9460_v40  ;;  %v9470_v39 = vld [vmem:[%s11792_s1 + $0x368] sm:$0xff]   ;;  %v481_v40 = vld [vmem:[%s9732_s15 + $0x610] sm:$0xff] }
 0x2c1   : > { %6142 = vmatprep.subr.bf16.mxu0 %v9587_v2  ;;  %8438 = vmatpush1.bf16.msra.mxu1 %v10555_v29  ;;  %v7878_v53 = vcombine.low %v481_v40, %v489_v41  ;;  %v569_v32 = vld [vmem:[%s9732_s15 + $0x8d0] sm:$0xff] }
 0x2c2   : > { %8423 = vmatprep.subr.bf16.mxu1 %v9587_v2 }
 0x2c4   : > { %6143 = vmatpush1.bf16.msra.mxu0 %v9462_v43  ;;  %v492_v43 = vld [vmem:[%s9732_s15 + $0x668] sm:$0xff] }
 0x2c5   : > { %6144 = vmatprep.subr.bf16.mxu0 %v9587_v2  ;;  %v7884_v54 = vcombine.low %v484_v42, %v492_v43 }
 0x2c6   : > { %5041 = vmatmul.mubr.bf16.gmra.mrb[20].mxu1 %v7766_v46  ;;  %v7879_v46 = vcombine.high %v481_v40, %v489_v41  ;;  %v10629_v40 = vld [vmem:[%s11792_s1 + $0x3e8] sm:$0xff]   ;;  %v577_v41 = vld [vmem:[%s9732_s15 + $0x910] sm:$0xff] }
 0x2c7   : > { %5908 = vmatmul.mubr.bf16.gmra.mrb[20].mxu0 %v7772_v47  ;;  %5048 = vmatprep.mubr.bf16.mxu1 %v7783_v48  ;;  %v7885_v47 = vcombine.high %v484_v42, %v492_v43  ;;  %v497_v48 = vld [vmem:[%s9732_s15 + $0x690] sm:$0xff] }
 0x2c8   : > { %5915 = vmatprep.mubr.bf16.mxu0 %v7789_v49  ;;  %6145 = vmatpush1.bf16.msra.mxu0 %v9464_v50  ;;  %v505_v49 = vld [vmem:[%s9732_s15 + $0x6d0] sm:$0xff]  ;;  %v500_v50 = vld [vmem:[%s9732_s15 + $0x6a8] sm:$0xff] }
 0x2c9   : > { %6146 = vmatprep.subr.bf16.mxu0 %v9587_v2  ;;  %v7895_v55 = vcombine.high %v497_v48, %v505_v49  ;;  %v7894_v1 = vcombine.low %v497_v48, %v505_v49  ;;  %v7900_v3 = vcombine.low %v500_v50, %v508_v52  ;;  %v585_v42 = vld [vmem:[%s9732_s15 + $0x950] sm:$0xff] }
 0x2ca   : > { %v10638_v43 = vld [vmem:[%s11792_s1 + $0x3f0] sm:$0xff]   ;;  %v7975_v48 = vcombine.high %v577_v41, %v585_v42 }
 0x2cc   : > { %6147 = vmatpush1.bf16.msra.mxu0 %v9466_v61  ;;  %v521_v61 = vld [vmem:[%s9732_s15 + $0x750] sm:$0xff] }
 0x2cd   : > { %6148 = vmatprep.subr.bf16.mxu0 %v9587_v2 }
 0x2ce   : > { %5049 = vmatmul.mubr.bf16.gmra.mrb[24].mxu1 %v7782_v56  ;;  %v7901_v56 = vcombine.high %v500_v50, %v508_v52  ;;  %v10647_v50 = vld [vmem:[%s11792_s1 + $0x3f8] sm:$0xff]   ;;  %v593_v52 = vld [vmem:[%s9732_s15 + $0x990] sm:$0xff] }
 0x2cf   : > { %5916 = vmatmul.mubr.bf16.gmra.mrb[24].mxu0 %v7788_v57  ;;  %5056 = vmatprep.mubr.bf16.mxu1 %v7799_v59  ;;  %v10578_v57 = vld [vmem:[%s11792_s1 + $0x3c8] sm:$0xff]   ;;  %v9472_v59 = vld [vmem:[%s11792_s1 + $0x370] sm:$0xff]  }
 0x2d0   : > { %5923 = vmatprep.mubr.bf16.mxu0 %v7805_v60  ;;  %6149 = vmatpush1.bf16.msra.mxu0 %v9468_v20  ;;  %v513_v60 = vld [vmem:[%s9732_s15 + $0x710] sm:$0xff] }
 0x2d1   : > { %6150 = vmatprep.subr.bf16.mxu0 %v9587_v2  ;;  %8439 = vmatpush1.bf16.msra.mxu1 %v10578_v57  ;;  %v7910_v12 = vcombine.low %v513_v60, %v521_v61  ;;  %v545_v20 = vld [vmem:[%s9732_s15 + $0x810] sm:$0xff] }
 0x2d2   : > { %8424 = vmatprep.subr.bf16.mxu1 %v9587_v2 }
 0x2d4   : > { %6151 = vmatpush1.bf16.msra.mxu0 %v9470_v39 }
 0x2d5   : > { %6152 = vmatprep.subr.bf16.mxu0 %v9587_v2 }
 0x2d6   : > { %5057 = vmatmul.mubr.bf16.gmra.mrb[28].mxu1 %v7798_v4  ;;  %v7911_v4 = vcombine.high %v513_v60, %v521_v61 }
 0x2d7   : > { %5924 = vmatmul.mubr.bf16.gmra.mrb[28].mxu0 %v7804_v5  ;;  %5064 = vmatprep.mubr.bf16.mxu1 %v7815_v6  ;;  %v7917_v5 = vcombine.high %v516_v62, %v524_v63  ;;  %v529_v6 = vld [vmem:[%s9732_s15 + $0x790] sm:$0xff] }
 0x2d8   : > { %5931 = vmatprep.mubr.bf16.mxu0 %v7821_v8  ;;  %6153 = vmatpush1.bf16.msra.mxu0 %v9472_v59  ;;  %v537_v8 = vld [vmem:[%s9732_s15 + $0x7d0] sm:$0xff] }
 0x2d9   : > { %6154 = vmatprep.subr.bf16.mxu0 %v9587_v2  ;;  %v7926_v24 = vcombine.low %v529_v6, %v537_v8  ;;  %v609_v62 = vld [vmem:[%s9732_s15 + $0xa10] sm:$0xff] }
 0x2da   : > { %v617_v63 = vld [vmem:[%s9732_s15 + $0xa50] sm:$0xff] }
 0x2de   : > { %5065 = vmatmul.mubr.bf16.gmra.mrb[32].mxu1 %v7814_v15  ;;  %v7927_v15 = vcombine.high %v529_v6, %v537_v8  ;;  %v8007_v6 = vcombine.high %v609_v62, %v617_v63 }
 0x2df   : > { %5932 = vmatmul.mubr.bf16.gmra.mrb[32].mxu0 %v7820_v16  ;;  %5072 = vmatprep.mubr.bf16.mxu1 %v7831_v17  ;;  %v7933_v16 = vcombine.high %v532_v10, %v540_v11  ;;  %v10597_v17 = vld [vmem:[%s11792_s1 + $0x3d0] sm:$0xff]  }
 0x2e0   : > { %5939 = vmatprep.mubr.bf16.mxu0 %v7837_v18  ;;  %v9474_v18 = vld [vmem:[%s11792_s1 + $0x378] sm:$0xff]   ;;  %8440 = vmatpush1.bf16.msra.mxu1 %v10597_v17 }
 0x2e1   : > { %6155 = vmatpush1.bf16.msra.mxu0 %v9474_v18  ;;  %8425 = vmatprep.subr.bf16.mxu1 %v9587_v2 }
 0x2e2   : > { %6413 = vmatprep.subr.bf16.mxu0 %v9587_v2 }
 0x2e6   : > { %5073 = vmatmul.mubr.bf16.gmra.mrb[36].mxu1 %v7830_v25  ;;  %v7932_v25 = vcombine.low %v532_v10, %v540_v11  ;;  %v625_v10 = vld [vmem:[%s9732_s15 + $0xa90] sm:$0xff] }
 0x2e7   : > { %5940 = vmatmul.mubr.bf16.gmra.mrb[36].mxu0 %v7836_v26  ;;  %5080 = vmatprep.mubr.bf16.mxu1 %v7847_v27  ;;  %v7943_v26 = vcombine.high %v545_v20, %v553_v21  ;;  %v7949_v27 = vcombine.high %v548_v22, %v556_v23  ;;  %v633_v11 = vld [vmem:[%s9732_s15 + $0xad0] sm:$0xff] }
 0x2e8   : > { %5947 = vmatprep.mubr.bf16.mxu0 %v7853_v28  ;;  %v10612_v28 = vld [vmem:[%s11792_s1 + $0x3d8] sm:$0xff]   ;;  %v8023_v18 = vcombine.high %v625_v10, %v633_v11 }
 0x2e9   : > { %8441 = vmatpush1.bf16.msra.mxu1 %v10612_v28 }
 0x2ea   : > { %8426 = vmatprep.subr.bf16.mxu1 %v9587_v2 }
 0x2ed   : > { %8442 = vmatpush1.bf16.msra.mxu1 %v10620_v33 }
 0x2ee   : > { %5081 = vmatmul.mubr.bf16.gmra.mrb[40].mxu1 %v7846_v35  ;;  %v572_v35 = vld [vmem:[%s9732_s15 + $0x8e8] sm:$0xff]  ;;  %8427 = vmatprep.subr.bf16.mxu1 %v9587_v2 }
 0x2ef   : > { %5948 = vmatmul.mubr.bf16.gmra.mrb[40].mxu0 %v7852_v36  ;;  %5088 = vmatprep.mubr.bf16.mxu1 %v7863_v37  ;;  %v7942_v36 = vcombine.low %v545_v20, %v553_v21  ;;  %v7948_v37 = vcombine.low %v548_v22, %v556_v23  ;;  %v7965_v39 = vcombine.high %v564_v34, %v572_v35  ;;  %v641_v21 = vld [vmem:[%s9732_s15 + $0xb10] sm:$0xff]  ;;  %v644_v23 = vld [vmem:[%s9732_s15 + $0xb28] sm:$0xff] }
 0x2f0   : > { %5955 = vmatprep.mubr.bf16.mxu0 %v7869_v38  ;;  %v7959_v38 = vcombine.high %v561_v31, %v569_v32  ;;  %v649_v22 = vld [vmem:[%s9732_s15 + $0xb50] sm:$0xff] }
 0x2f1   : > { %8443 = vmatpush1.bf16.msra.mxu1 %v10629_v40 }
 0x2f2   : > { %8428 = vmatprep.subr.bf16.mxu1 %v9587_v2 }
 0x2f5   : > { %8444 = vmatpush1.bf16.msra.mxu1 %v10638_v43 }
 0x2f6   : > { %5089 = vmatmul.mubr.bf16.gmra.mrb[44].mxu1 %v7862_v44  ;;  %v580_v44 = vld [vmem:[%s9732_s15 + $0x928] sm:$0xff]  ;;  %8429 = vmatprep.subr.bf16.mxu1 %v9587_v2 }
 0x2f7   : > { %5956 = vmatmul.mubr.bf16.gmra.mrb[44].mxu0 %v7868_v45  ;;  %5096 = vmatprep.mubr.bf16.mxu1 %v7879_v46  ;;  %v588_v45 = vld [vmem:[%s9732_s15 + $0x968] sm:$0xff]  ;;  %v7958_v46 = vcombine.low %v561_v31, %v569_v32  ;;  %v657_v32 = vld [vmem:[%s9732_s15 + $0xb90] sm:$0xff] }
 0x2f8   : > { %5963 = vmatprep.mubr.bf16.mxu0 %v7885_v47  ;;  %v7964_v47 = vcombine.low %v564_v34, %v572_v35  ;;  %v7981_v49 = vcombine.high %v580_v44, %v588_v45  ;;  %v7980_v59 = vcombine.low %v580_v44, %v588_v45  ;;  %v665_v34 = vld [vmem:[%s9732_s15 + $0xbd0] sm:$0xff]  ;;  %v660_v35 = vld [vmem:[%s9732_s15 + $0xba8] sm:$0xff] }
 0x2f9   : > { %8445 = vmatpush1.bf16.msra.mxu1 %v10647_v50  ;;  %v681_v44 = vld [vmem:[%s9732_s15 + $0xc50] sm:$0xff]  ;;  %v676_v45 = vld [vmem:[%s9732_s15 + $0xc28] sm:$0xff] }
 0x2fe   : > { %5097 = vmatmul.mubr.bf16.gmra.mrb[48].mxu1 %v7878_v53  ;;  %v601_v53 = vld [vmem:[%s9732_s15 + $0x9d0] sm:$0xff] }
 0x2ff   : > { %5964 = vmatmul.mubr.bf16.gmra.mrb[48].mxu0 %v7884_v54  ;;  %5104 = vmatprep.mubr.bf16.mxu1 %v7895_v55  ;;  %v596_v54 = vld [vmem:[%s9732_s15 + $0x9a8] sm:$0xff]  ;;  %v7991_v60 = vcombine.high %v593_v52, %v601_v53 }
 0x300   : > { %5971 = vmatprep.mubr.bf16.mxu0 %v7901_v56  ;;  %v604_v55 = vld [vmem:[%s9732_s15 + $0x9e8] sm:$0xff]  ;;  %v7974_v56 = vcombine.low %v577_v41, %v585_v42  ;;  %v673_v42 = vld [vmem:[%s9732_s15 + $0xc10] sm:$0xff] }
 0x301   : > { %v7997_v61 = vcombine.high %v596_v54, %v604_v55 }
 0x306   : > { %5105 = vmatmul.mubr.bf16.gmra.mrb[52].mxu1 %v7894_v1  ;;  %v612_v1 = vld [vmem:[%s9732_s15 + $0xa28] sm:$0xff] }
 0x307   : > { %5972 = vmatmul.mubr.bf16.gmra.mrb[52].mxu0 %v7900_v3  ;;  %5112 = vmatprep.mubr.bf16.mxu1 %v7911_v4  ;;  %v620_v3 = vld [vmem:[%s9732_s15 + $0xa68] sm:$0xff]  ;;  %v7990_v4 = vcombine.low %v593_v52, %v601_v53  ;;  %v689_v53 = vld [vmem:[%s9732_s15 + $0xc90] sm:$0xff] }
 0x308   : > { %5979 = vmatprep.mubr.bf16.mxu0 %v7917_v5  ;;  %v7996_v5 = vcombine.low %v596_v54, %v604_v55  ;;  %v8013_v8 = vcombine.high %v612_v1, %v620_v3  ;;  %v697_v54 = vld [vmem:[%s9732_s15 + $0xcd0] sm:$0xff]  ;;  %v692_v55 = vld [vmem:[%s9732_s15 + $0xca8] sm:$0xff] }
 0x30e   : > { %5113 = vmatmul.mubr.bf16.gmra.mrb[56].mxu1 %v7910_v12  ;;  %v628_v12 = vld [vmem:[%s9732_s15 + $0xaa8] sm:$0xff] }
 0x30f   : > { %5980 = vmatmul.mubr.bf16.gmra.mrb[56].mxu0 %v7916_v14  ;;  %5120 = vmatprep.mubr.bf16.mxu1 %v7927_v15  ;;  %v636_v14 = vld [vmem:[%s9732_s15 + $0xae8] sm:$0xff]  ;;  %v8006_v15 = vcombine.low %v609_v62, %v617_v63  ;;  %v705_v63 = vld [vmem:[%s9732_s15 + $0xd10] sm:$0xff] }
 0x310   : > { %5987 = vmatprep.mubr.bf16.mxu0 %v7933_v16  ;;  %v8012_v16 = vcombine.low %v612_v1, %v620_v3  ;;  %v8029_v20 = vcombine.high %v628_v12, %v636_v14  ;;  %v713_v1 = vld [vmem:[%s9732_s15 + $0xd50] sm:$0xff]  ;;  %v708_v3 = vld [vmem:[%s9732_s15 + $0xd28] sm:$0xff] }
 0x316   : > { %5121 = vmatmul.mubr.bf16.gmra.mrb[60].mxu1 %v7926_v24  ;;  %v652_v24 = vld [vmem:[%s9732_s15 + $0xb68] sm:$0xff] }
 0x317   : > { %5988 = vmatmul.mubr.bf16.gmra.mrb[60].mxu0 %v7932_v25  ;;  %5128 = vmatprep.mubr.bf16.mxu1 %v7943_v26  ;;  %v8022_v25 = vcombine.low %v625_v10, %v633_v11  ;;  %v8028_v26 = vcombine.low %v628_v12, %v636_v14  ;;  %v8045_v31 = vcombine.high %v644_v23, %v652_v24  ;;  %v721_v11 = vld [vmem:[%s9732_s15 + $0xd90] sm:$0xff]  ;;  %v724_v14 = vld [vmem:[%s9732_s15 + $0xda8] sm:$0xff] }
 0x318   : > { %5995 = vmatprep.mubr.bf16.mxu0 %v7949_v27  ;;  %v8039_v27 = vcombine.high %v641_v21, %v649_v22  ;;  %v729_v12 = vld [vmem:[%s9732_s15 + $0xdd0] sm:$0xff] }
 0x31e   : > { %5129 = vmatmul.mubr.bf16.gmra.mrb[64].mxu1 %v7942_v36  ;;  %v668_v36 = vld [vmem:[%s9732_s15 + $0xbe8] sm:$0xff] }
 0x31f   : > { %5996 = vmatmul.mubr.bf16.gmra.mrb[64].mxu0 %v7948_v37  ;;  %5136 = vmatprep.mubr.bf16.mxu1 %v7959_v38  ;;  %v8038_v37 = vcombine.low %v641_v21, %v649_v22  ;;  %v8044_v38 = vcombine.low %v644_v23, %v652_v24  ;;  %v8061_v41 = vcombine.high %v660_v35, %v668_v36  ;;  %v737_v22 = vld [vmem:[%s9732_s15 + $0xe10] sm:$0xff] }
 0x320   : > { %6003 = vmatprep.mubr.bf16.mxu0 %v7965_v39  ;;  %v8055_v39 = vcombine.high %v657_v32, %v665_v34  ;;  %v745_v23 = vld [vmem:[%s9732_s15 + $0xe50] sm:$0xff] }
 0x326   : > { %5137 = vmatmul.mubr.bf16.gmra.mrb[68].mxu1 %v7958_v46  ;;  %v684_v46 = vld [vmem:[%s9732_s15 + $0xc68] sm:$0xff] }
 0x327   : > { %6004 = vmatmul.mubr.bf16.gmra.mrb[68].mxu0 %v7964_v47  ;;  %5144 = vmatprep.mubr.bf16.mxu1 %v7975_v48  ;;  %v8054_v47 = vcombine.low %v657_v32, %v665_v34  ;;  %v8060_v48 = vcombine.low %v660_v35, %v668_v36  ;;  %v8077_v52 = vcombine.high %v676_v45, %v684_v46 }
 0x328   : > { %6011 = vmatprep.mubr.bf16.mxu0 %v7981_v49  ;;  %v8071_v49 = vcombine.high %v673_v42, %v681_v44  ;;  %v8135_v35 = vcombine.high %v737_v22, %v745_v23 }
 0x32e   : > { %5145 = vmatmul.mubr.bf16.gmra.mrb[72].mxu1 %v7974_v56  ;;  %v700_v56 = vld [vmem:[%s9732_s15 + $0xce8] sm:$0xff] }
 0x32f   : > { %6012 = vmatmul.mubr.bf16.gmra.mrb[72].mxu0 %v7980_v59  ;;  %5152 = vmatprep.mubr.bf16.mxu1 %v7991_v60  ;;  %v8070_v59 = vcombine.low %v673_v42, %v681_v44  ;;  %v8076_v60 = vcombine.low %v676_v45, %v684_v46  ;;  %v8093_v62 = vcombine.high %v692_v55, %v700_v56  ;;  %v756_v42 = vld [vmem:[%s9732_s15 + $0xea8] sm:$0xff] }
 0x330   : > { %6019 = vmatprep.mubr.bf16.mxu0 %v7997_v61  ;;  %v8087_v61 = vcombine.high %v689_v53, %v697_v54  ;;  %v764_v44 = vld [vmem:[%s9732_s15 + $0xee8] sm:$0xff]  ;;  %v8134_v46 = vcombine.low %v737_v22, %v745_v23  ;;  %v310_v23 = vld [vmem:[%s9732_s15 + $0xb8] sm:$0xff] }
 0x336   : > { %5153 = vmatmul.mubr.bf16.gmra.mrb[76].mxu1 %v7990_v4  ;;  %v716_v4 = vld [vmem:[%s9732_s15 + $0xd68] sm:$0xff] }
 0x337   : > { %6020 = vmatmul.mubr.bf16.gmra.mrb[76].mxu0 %v7996_v5  ;;  %5160 = vmatprep.mubr.bf16.mxu1 %v8007_v6  ;;  %v8086_v5 = vcombine.low %v689_v53, %v697_v54  ;;  %v8092_v6 = vcombine.low %v692_v55, %v700_v56  ;;  %v8109_v10 = vcombine.high %v708_v3, %v716_v4  ;;  %v769_v54 = vld [vmem:[%s9732_s15 + $0xf10] sm:$0xff] }
 0x338   : > { %6027 = vmatprep.mubr.bf16.mxu0 %v8013_v8  ;;  %v8103_v8 = vcombine.high %v705_v63, %v713_v1  ;;  %v8157_v53 = vcombine.high %v756_v42, %v764_v44  ;;  %v777_v55 = vld [vmem:[%s9732_s15 + $0xf50] sm:$0xff] }
 0x33e   : > { %5161 = vmatmul.mubr.bf16.gmra.mrb[80].mxu1 %v8006_v15  ;;  %v732_v15 = vld [vmem:[%s9732_s15 + $0xde8] sm:$0xff] }
 0x33f   : > { %6028 = vmatmul.mubr.bf16.gmra.mrb[80].mxu0 %v8012_v16  ;;  %5168 = vmatprep.mubr.bf16.mxu1 %v8023_v18  ;;  %v8102_v16 = vcombine.low %v705_v63, %v713_v1  ;;  %v8108_v18 = vcombine.low %v708_v3, %v716_v4  ;;  %v8125_v21 = vcombine.high %v724_v14, %v732_v15 }
 0x340   : > { %6035 = vmatprep.mubr.bf16.mxu0 %v8029_v20  ;;  %v8119_v20 = vcombine.high %v721_v11, %v729_v12  ;;  %v8124_v34 = vcombine.low %v724_v14, %v732_v15  ;;  %v8156_v1 = vcombine.low %v756_v42, %v764_v44  ;;  %v8167_v3 = vcombine.high %v769_v54, %v777_v55  ;;  %v326_v44 = vld [vmem:[%s9732_s15 + $0x138] sm:$0xff] }
 0x341   : > { %v8166_v15 = vcombine.low %v769_v54, %v777_v55 }
 0x346   : > { %5169 = vmatmul.mubr.bf16.gmra.mrb[84].mxu1 %v8022_v25  ;;  %v740_v25 = vld [vmem:[%s9732_s15 + $0xe28] sm:$0xff] }
 0x347   : > { %6036 = vmatmul.mubr.bf16.gmra.mrb[84].mxu0 %v8028_v26  ;;  %5176 = vmatprep.mubr.bf16.mxu1 %v8039_v27  ;;  %v748_v26 = vld [vmem:[%s9732_s15 + $0xe68] sm:$0xff] }
 0x348   : > { %6043 = vmatprep.mubr.bf16.mxu0 %v8045_v31  ;;  %v8118_v31 = vcombine.low %v721_v11, %v729_v12  ;;  %v788_v11 = vld [vmem:[%s9732_s15 + $0xfa8] sm:$0xff] }
 0x349   : > { %v796_v12 = vld [vmem:[%s9732_s15 + $0xfe8] sm:$0xff] }
 0x34a   : > { %v8189_v22 = vcombine.high %v788_v11, %v796_v12 }
 0x34e   : > { %5177 = vmatmul.mubr.bf16.gmra.mrb[88].mxu1 %v8038_v37  ;;  %v8141_v37 = vcombine.high %v740_v25, %v748_v26 }
 0x34f   : > { %6044 = vmatmul.mubr.bf16.gmra.mrb[88].mxu0 %v8044_v38  ;;  %5184 = vmatprep.mubr.bf16.mxu1 %v8055_v39  ;;  %v753_v38 = vld [vmem:[%s9732_s15 + $0xe90] sm:$0xff] }
 0x350   : > { %6051 = vmatprep.mubr.bf16.mxu0 %v8061_v41  ;;  %v761_v39 = vld [vmem:[%s9732_s15 + $0xed0] sm:$0xff] }
 0x356   : > { %5185 = vmatmul.mubr.bf16.gmra.mrb[92].mxu1 %v8054_v47 }
 0x357   : > { %6052 = vmatmul.mubr.bf16.gmra.mrb[92].mxu0 %v8060_v48  ;;  %5192 = vmatprep.mubr.bf16.mxu1 %v8071_v49  ;;  %v8140_v48 = vcombine.low %v740_v25, %v748_v26  ;;  %v8151_v49 = vcombine.high %v753_v38, %v761_v39  ;;  %v318_v25 = vld [vmem:[%s9732_s15 + $0xf8] sm:$0xff] }
 0x358   : > { %6059 = vmatprep.mubr.bf16.mxu0 %v8077_v52 }
 0x35e   : > { %5193 = vmatmul.mubr.bf16.gmra.mrb[96].mxu1 %v8070_v59  ;;  %v772_v59 = vld [vmem:[%s9732_s15 + $0xf28] sm:$0xff] }
 0x35f   : > { %6060 = vmatmul.mubr.bf16.gmra.mrb[96].mxu0 %v8076_v60  ;;  %5200 = vmatprep.mubr.bf16.mxu1 %v8087_v61  ;;  %v780_v60 = vld [vmem:[%s9732_s15 + $0xf68] sm:$0xff] }
 0x360   : > { %6067 = vmatprep.mubr.bf16.mxu0 %v8093_v62  ;;  %v8150_v62 = vcombine.low %v753_v38, %v761_v39  ;;  %v7713_v38 = vcombine.high %v310_v23, %v318_v25 }
 0x366   : > { %5201 = vmatmul.mubr.bf16.gmra.mrb[100].mxu1 %v8086_v5  ;;  %v8173_v5 = vcombine.high %v772_v59, %v780_v60 }
 0x367   : > { %6068 = vmatmul.mubr.bf16.gmra.mrb[100].mxu0 %v8092_v6  ;;  %5208 = vmatprep.mubr.bf16.mxu1 %v8103_v8  ;;  %v785_v6 = vld [vmem:[%s9732_s15 + $0xf90] sm:$0xff] }
 0x368   : > { %6075 = vmatprep.mubr.bf16.mxu0 %v8109_v10  ;;  %v793_v8 = vld [vmem:[%s9732_s15 + $0xfd0] sm:$0xff] }
 0x36e   : > { %5209 = vmatmul.mubr.bf16.gmra.mrb[104].mxu1 %v8102_v16 }
 0x36f   : > { %6076 = vmatmul.mubr.bf16.gmra.mrb[104].mxu0 %v8108_v18  ;;  %5216 = vmatprep.mubr.bf16.mxu1 %v8119_v20  ;;  %v8172_v18 = vcombine.low %v772_v59, %v780_v60  ;;  %v8183_v20 = vcombine.high %v785_v6, %v793_v8 }
 0x370   : > { %6083 = vmatprep.mubr.bf16.mxu0 %v8125_v21 }
 0x371   : > { %v10689_v24 = vpop.f32.mrb[0].mxu1 }
 0x372   : > { %11820 = vst [vmem:[#allocation15_spill] sm:$0xff] %v10689_v24  ;;  %v5004_v27 = vpop.f32.mrb[1].mxu1  ;;  %v613_v24 = vld [vmem:[%s9732_s15 + $0xa30] sm:$0xff] }
 0x373   : > { %v10693_v32 = vpop.f32.mrb[2].mxu1  ;;  %v293_v27 = vld [vmem:[%s9732_s15 + $0x30] sm:$0xff] }
 0x374   : > { %11821 = vst [vmem:[#allocation16_spill] sm:$0xff] %v10693_v32  ;;  %v5007_v36 = vpop.f32.mrb[3].mxu1 }
 0x376   : > { %5217 = vmatmul.mubr.bf16.gmra.mrb[108].mxu1 %v8118_v31  ;;  %v301_v31 = vld [vmem:[%s9732_s15 + $0x70] sm:$0xff] }
 0x377   : > { %6084 = vmatmul.mubr.bf16.gmra.mrb[108].mxu0 %v8124_v34  ;;  %5224 = vmatprep.mubr.bf16.mxu1 %v8135_v35  ;;  %v8182_v35 = vcombine.low %v785_v6, %v793_v8  ;;  %v7695_v42 = vcombine.high %v293_v27, %v301_v31  ;;  %v7694_v55 = vcombine.low %v293_v27, %v301_v31 }
 0x378   : > { %6091 = vmatprep.mubr.bf16.mxu0 %v8141_v37  ;;  %v8188_v37 = vcombine.low %v788_v11, %v796_v12 }
 0x379   : > { %v10697_v41 = vpop.f32.mrb[4].mxu1 }
 0x37a   : > { %v5012_v45 = vpop.f32.mrb[5].mxu1 }
 0x37b   : > { %v10701_v47 = vpop.f32.mrb[6].mxu1  ;;  %v334_v45 = vld [vmem:[%s9732_s15 + $0x178] sm:$0xff] }
 0x37c   : > { %v5015_v52 = vpop.f32.mrb[7].mxu1  ;;  %v7729_v59 = vcombine.high %v326_v44, %v334_v45  ;;  %v7728_v8 = vcombine.low %v326_v44, %v334_v45  ;;  %v365_v44 = vld [vmem:[%s9732_s15 + $0x270] sm:$0xff] }
 0x37e   : > { %5225 = vmatmul.mubr.bf16.gmra.mrb[112].mxu1 %v8134_v46 }
 0x37f   : > { %6092 = vmatmul.mubr.bf16.gmra.mrb[112].mxu0 %v8140_v48  ;;  %5232 = vmatprep.mubr.bf16.mxu1 %v8151_v49  ;;  %v309_v48 = vld [vmem:[%s9732_s15 + $0xb0] sm:$0xff] }
 0x380   : > { %6099 = vmatprep.mubr.bf16.mxu0 %v8157_v53  ;;  %v317_v49 = vld [vmem:[%s9732_s15 + $0xf0] sm:$0xff]  ;;  %v7712_v53 = vcombine.low %v310_v23, %v318_v25 }
 0x381   : > { %v10705_v56 = vpop.f32.mrb[8].mxu1  ;;  %v7710_v12 = vcombine.low %v309_v48, %v317_v49  ;;  %v349_v23 = vld [vmem:[%s9732_s15 + $0x1f0] sm:$0xff] }
 0x382   : > { %v5020_v61 = vpop.f32.mrb[9].mxu1 }
 0x383   : > { %v10709_v63 = vpop.f32.mrb[10].mxu1  ;;  %v7711_v61 = vcombine.high %v309_v48, %v317_v49 }
 0x384   : > { %v5023_v4 = vpop.f32.mrb[11].mxu1 }
 0x385   : > { %v325_v4 = vld [vmem:[%s9732_s15 + $0x130] sm:$0xff] }
 0x386   : > { %5233 = vmatmul.mubr.bf16.gmra.mrb[116].mxu1 %v8150_v62  ;;  %v342_v62 = vld [vmem:[%s9732_s15 + $0x1b8] sm:$0xff] }
 0x387   : > { %6100 = vmatmul.mubr.bf16.gmra.mrb[116].mxu0 %v8156_v1  ;;  %5240 = vmatprep.mubr.bf16.mxu1 %v8167_v3  ;;  %v350_v1 = vld [vmem:[%s9732_s15 + $0x1f8] sm:$0xff] }
 0x388   : > { %6107 = vmatprep.mubr.bf16.mxu0 %v8173_v5  ;;  %v333_v5 = vld [vmem:[%s9732_s15 + $0x170] sm:$0xff] }
 0x389   : > { %v10713_v10 = vpop.f32.mrb[12].mxu1  ;;  %v7726_v31 = vcombine.low %v325_v4, %v333_v5 }
 0x38a   : > { %v5028_v14 = vpop.f32.mrb[13].mxu1 }
 0x38b   : > { %v10717_v16 = vpop.f32.mrb[14].mxu1  ;;  %v7745_v14 = vcombine.high %v342_v62, %v350_v1 }
 0x38c   : > { %v5031_v21 = vpop.f32.mrb[15].mxu1 }
 0x38e   : > { %5241 = vmatmul.mubr.bf16.gmra.mrb[120].mxu1 %v8166_v15  ;;  %v7727_v15 = vcombine.high %v325_v4, %v333_v5 }
 0x38f   : > { %6108 = vmatmul.mubr.bf16.gmra.mrb[120].mxu0 %v8172_v18  ;;  %5248 = vmatprep.mubr.bf16.mxu1 %v8183_v20  ;;  %v358_v18 = vld [vmem:[%s9732_s15 + $0x238] sm:$0xff] }
 0x390   : > { %6115 = vmatprep.mubr.bf16.mxu0 %v8189_v22  ;;  %v366_v20 = vld [vmem:[%s9732_s15 + $0x278] sm:$0xff]  ;;  %v341_v22 = vld [vmem:[%s9732_s15 + $0x1b0] sm:$0xff] }
 0x391   : > { %v10721_v26 = vpop.f32.mrb[16].mxu1  ;;  %v7742_v49 = vcombine.low %v341_v22, %v349_v23 }
 0x392   : > { %v5036_v34 = vpop.f32.mrb[17].mxu1 }
 0x393   : > { %v10725_v36 = vpop.f32.mrb[18].mxu1  ;;  %v7761_v34 = vcombine.high %v358_v18, %v366_v20 }
 0x394   : > { %v5039_v39 = vpop.f32.mrb[19].mxu1 }
 0x396   : > { %5249 = vmatmul.mubr.bf16.gmra.mrb[124].mxu1 %v8182_v35 }
 0x397   : > { %6116 = vmatmul.mubr.bf16.gmra.mrb[124].mxu0 %v8188_v37  ;;  %6453 = vmatprep.mubr.bf16.mxu1 %v7713_v38  ;;  %v374_v37 = vld [vmem:[%s9732_s15 + $0x2b8] sm:$0xff] }
 0x398   : > { %6156 = vmatprep.mubr.bf16.mxu0 %v7695_v42  ;;  %v382_v38 = vld [vmem:[%s9732_s15 + $0x2f8] sm:$0xff]  ;;  %v357_v42 = vld [vmem:[%s9732_s15 + $0x230] sm:$0xff] }
 0x399   : > { %v10729_v46 = vpop.f32.mrb[20].mxu1  ;;  %v7758_v5 = vcombine.low %v357_v42, %v365_v44 }
 0x39a   : > { %v5044_v52 = vpop.f32.mrb[21].mxu1 }
 0x39b   : > { %v10733_v54 = vpop.f32.mrb[22].mxu1  ;;  %v7777_v52 = vcombine.high %v374_v37, %v382_v38 }
 0x39c   : > { %v5047_v60 = vpop.f32.mrb[23].mxu1 }
 0x39e   : > { %6454 = vmatmul.mubr.bf16.vlgmr.msra.gmra.mrb[128].mxu1 %v7712_v53 }
 0x39f   : > { %6157 = vmatmul.mubr.bf16.vlgmr.msra.gmra.mrb[0].mxu0 %v7694_v55  ;;  %6461 = vmatprep.mubr.bf16.mxu1 %v7729_v59  ;;  %v7759_v55 = vcombine.high %v357_v42, %v365_v44  ;;  %v398_v59 = vld [vmem:[%s9732_s15 + $0x378] sm:$0xff] }
 0x3a0   : > { %6414 = vmatpush1.bf16.msra.mxu0 %v10414_v58  ;;  %6164 = vmatprep.mubr.bf16.mxu0 %v7711_v61  ;;  %v373_v61 = vld [vmem:[%s9732_s15 + $0x2b0] sm:$0xff] }
 0x3a1   : > { %v10738_v3 = vpop.f32.mrb[24].mxu1  ;;  %6415 = vmatprep.subr.bf16.mxu0 %v9587_v2 }
 0x3a2   : > { %v5052_v6 = vpop.f32.mrb[25].mxu1 }
 0x3a3   : > { %v10743_v11 = vpop.f32.mrb[26].mxu1 }
 0x3a4   : > { %v5055_v58 = vpop.f32.mrb[27].mxu1  ;;  %6416 = vmatpush1.bf16.msra.mxu0 %v10428_v0  ;;  %v7744_v0 = vcombine.low %v342_v62, %v350_v1  ;;  %v381_v62 = vld [vmem:[%s9732_s15 + $0x2f0] sm:$0xff] }
 0x3a5   : > { %6417 = vmatprep.subr.bf16.mxu0 %v9587_v2 }
 0x3a6   : > { %6462 = vmatmul.mubr.bf16.gmra.mrb[132].mxu1 %v7728_v8 }
 0x3a7   : > { %6165 = vmatmul.mubr.bf16.gmra.mrb[4].mxu0 %v7710_v12  ;;  %6469 = vmatprep.mubr.bf16.mxu1 %v7745_v14  ;;  %v7775_v12 = vcombine.high %v373_v61, %v381_v62  ;;  %v414_v14 = vld [vmem:[%s9732_s15 + $0x3f8] sm:$0xff] }
 0x3a8   : > { %6172 = vmatprep.mubr.bf16.mxu0 %v7727_v15  ;;  %6418 = vmatpush1.bf16.msra.mxu0 %v10439_v7  ;;  %v7743_v7 = vcombine.high %v341_v22, %v349_v23  ;;  %v389_v15 = vld [vmem:[%s9732_s15 + $0x330] sm:$0xff]  ;;  %v7774_v23 = vcombine.low %v373_v61, %v381_v62 }
 0x3a9   : > { %v10750_v21 = vpop.f32.mrb[28].mxu1  ;;  %6419 = vmatprep.subr.bf16.mxu0 %v9587_v2 }
 0x3aa   : > { %v5060_v25 = vpop.f32.mrb[29].mxu1 }
 0x3ab   : > { %v10755_v27 = vpop.f32.mrb[30].mxu1 }
 0x3ac   : > { %v5063_v35 = vpop.f32.mrb[31].mxu1  ;;  %6420 = vmatpush1.bf16.msra.mxu0 %v10454_v13  ;;  %v7760_v13 = vcombine.low %v358_v18, %v366_v20  ;;  %v397_v18 = vld [vmem:[%s9732_s15 + $0x370] sm:$0xff] }
 0x3ad   : > { %6421 = vmatprep.subr.bf16.mxu0 %v9587_v2  ;;  %v7790_v44 = vcombine.low %v389_v15, %v397_v18 }
 0x3ae   : > { %6470 = vmatmul.mubr.bf16.gmra.mrb[136].mxu1 %v7744_v0 }
 0x3af   : > { %6173 = vmatmul.mubr.bf16.gmra.mrb[8].mxu0 %v7726_v31  ;;  %6477 = vmatprep.mubr.bf16.mxu1 %v7761_v34  ;;  %v7791_v31 = vcombine.high %v389_v15, %v397_v18  ;;  %v430_v34 = vld [vmem:[%s9732_s15 + $0x478] sm:$0xff] }
 0x3b0   : > { %6180 = vmatprep.mubr.bf16.mxu0 %v7743_v7  ;;  %6422 = vmatpush1.bf16.msra.mxu0 %v10465_v19  ;;  %v390_v19 = vld [vmem:[%s9732_s15 + $0x338] sm:$0xff]  ;;  %v405_v7 = vld [vmem:[%s9732_s15 + $0x3b0] sm:$0xff] }
 0x3b1   : > { %v10762_v39 = vpop.f32.mrb[32].mxu1  ;;  %6423 = vmatprep.subr.bf16.mxu0 %v9587_v2  ;;  %v7793_v6 = vcombine.high %v390_v19, %v398_v59 }
 0x3b2   : > { %v5068_v45 = vpop.f32.mrb[33].mxu1 }
 0x3b3   : > { %v10767_v48 = vpop.f32.mrb[34].mxu1 }
 0x3b4   : > { %v5071_v53 = vpop.f32.mrb[35].mxu1  ;;  %6424 = vmatpush1.bf16.msra.mxu0 %v10485_v30  ;;  %v7776_v30 = vcombine.low %v374_v37, %v382_v38  ;;  %v413_v37 = vld [vmem:[%s9732_s15 + $0x3f0] sm:$0xff] }
 0x3b5   : > { %6425 = vmatprep.subr.bf16.mxu0 %v9587_v2  ;;  %v7806_v62 = vcombine.low %v405_v7, %v413_v37 }
 0x3b6   : > { %6478 = vmatmul.mubr.bf16.gmra.mrb[140].mxu1 %v7760_v13 }
 0x3b7   : > { %6181 = vmatmul.mubr.bf16.gmra.mrb[12].mxu0 %v7742_v49  ;;  %6485 = vmatprep.mubr.bf16.mxu1 %v7777_v52  ;;  %v7807_v49 = vcombine.high %v405_v7, %v413_v37  ;;  %v446_v52 = vld [vmem:[%s9732_s15 + $0x4f8] sm:$0xff] }
 0x3b8   : > { %6188 = vmatprep.mubr.bf16.mxu0 %v7759_v55  ;;  %6426 = vmatpush1.bf16.msra.mxu0 %v10516_v51  ;;  %v406_v51 = vld [vmem:[%s9732_s15 + $0x3b8] sm:$0xff]  ;;  %v421_v55 = vld [vmem:[%s9732_s15 + $0x430] sm:$0xff] }
 0x3b9   : > { %v10774_v60 = vpop.f32.mrb[36].mxu1  ;;  %6427 = vmatprep.subr.bf16.mxu0 %v9587_v2  ;;  %v7809_v25 = vcombine.high %v406_v51, %v414_v14 }
 0x3ba   : > { %v5076_v1 = vpop.f32.mrb[37].mxu1 }
 0x3bb   : > { %v10779_v4 = vpop.f32.mrb[38].mxu1 }
 0x3bc   : > { %v5079_v8 = vpop.f32.mrb[39].mxu1  ;;  %6428 = vmatpush1.bf16.msra.mxu0 %v10536_v9  ;;  %v7792_v9 = vcombine.low %v390_v19, %v398_v59  ;;  %v429_v19 = vld [vmem:[%s9732_s15 + $0x470] sm:$0xff] }
 0x3bd   : > { %6429 = vmatprep.subr.bf16.mxu0 %v9587_v2  ;;  %v7822_v18 = vcombine.low %v421_v55, %v429_v19 }
 0x3be   : > { %6486 = vmatmul.mubr.bf16.gmra.mrb[144].mxu1 %v7776_v30 }
 0x3bf   : > { %6189 = vmatmul.mubr.bf16.gmra.mrb[16].mxu0 %v7758_v5  ;;  %6493 = vmatprep.mubr.bf16.mxu1 %v7793_v6  ;;  %v7823_v5 = vcombine.high %v421_v55, %v429_v19  ;;  %v462_v6 = vld [vmem:[%s9732_s15 + $0x578] sm:$0xff] }
 0x3c0   : > { %6196 = vmatprep.mubr.bf16.mxu0 %v7775_v12  ;;  %6430 = vmatpush1.bf16.msra.mxu0 %v10555_v29  ;;  %v422_v29 = vld [vmem:[%s9732_s15 + $0x438] sm:$0xff]  ;;  %v437_v12 = vld [vmem:[%s9732_s15 + $0x4b0] sm:$0xff] }
 0x3c1   : > { %v10786_v58 = vpop.f32.mrb[40].mxu1  ;;  %6431 = vmatprep.subr.bf16.mxu0 %v9587_v2  ;;  %v7825_v45 = vcombine.high %v422_v29, %v430_v34 }
 0x3c2   : > { %v5084_v20 = vpop.f32.mrb[41].mxu1 }
 0x3c3   : > { %v10791_v22 = vpop.f32.mrb[42].mxu1 }
 0x3c4   : > { %v5087_v0 = vpop.f32.mrb[43].mxu1  ;;  %6432 = vmatpush1.bf16.msra.mxu0 %v10578_v57  ;;  %v7808_v57 = vcombine.low %v406_v51, %v414_v14  ;;  %v445_v51 = vld [vmem:[%s9732_s15 + $0x4f0] sm:$0xff] }
 0x3c5   : > { %6433 = vmatprep.subr.bf16.mxu0 %v9587_v2  ;;  %v453_v0 = vld [vmem:[%s9732_s15 + $0x530] sm:$0xff]  ;;  %v7838_v37 = vcombine.low %v437_v12, %v445_v51 }
 0x3c6   : > { %6494 = vmatmul.mubr.bf16.gmra.mrb[148].mxu1 %v7792_v9 }
 0x3c7   : > { %6197 = vmatmul.mubr.bf16.gmra.mrb[20].mxu0 %v7774_v23  ;;  %6501 = vmatprep.mubr.bf16.mxu1 %v7809_v25  ;;  %v7839_v23 = vcombine.high %v437_v12, %v445_v51  ;;  %v478_v25 = vld [vmem:[%s9732_s15 + $0x5f8] sm:$0xff]  ;;  %v493_v12 = vld [vmem:[%s9732_s15 + $0x670] sm:$0xff] }
 0x3c8   : > { %6204 = vmatprep.mubr.bf16.mxu0 %v7791_v31  ;;  %6434 = vmatpush1.bf16.msra.mxu0 %v10597_v17  ;;  %v438_v17 = vld [vmem:[%s9732_s15 + $0x4b8] sm:$0xff]  ;;  %v461_v31 = vld [vmem:[%s9732_s15 + $0x570] sm:$0xff] }
 0x3c9   : > { %v10798_v35 = vpop.f32.mrb[44].mxu1  ;;  %6435 = vmatprep.subr.bf16.mxu0 %v9587_v2  ;;  %v7841_v1 = vcombine.high %v438_v17, %v446_v52  ;;  %v7840_v14 = vcombine.low %v438_v17, %v446_v52  ;;  %v477_v17 = vld [vmem:[%s9732_s15 + $0x5f0] sm:$0xff] }
 0x3ca   : > { %v5092_v38 = vpop.f32.mrb[45].mxu1 }
 0x3cb   : > { %v10803_v42 = vpop.f32.mrb[46].mxu1 }
 0x3cc   : > { %v5095_v13 = vpop.f32.mrb[47].mxu1  ;;  %6436 = vmatpush1.bf16.msra.mxu0 %v10612_v28  ;;  %v7824_v28 = vcombine.low %v422_v29, %v430_v34 }
 0x3cd   : > { %6437 = vmatprep.subr.bf16.mxu0 %v9587_v2 }
 0x3ce   : > { %6502 = vmatmul.mubr.bf16.gmra.mrb[152].mxu1 %v7808_v57  ;;  %v7855_v57 = vcombine.high %v453_v0, %v461_v31 }
 0x3cf   : > { %6205 = vmatmul.mubr.bf16.gmra.mrb[24].mxu0 %v7790_v44  ;;  %6509 = vmatprep.mubr.bf16.mxu1 %v7825_v45  ;;  %v486_v44 = vld [vmem:[%s9732_s15 + $0x638] sm:$0xff] }
 0x3d0   : > { %6212 = vmatprep.mubr.bf16.mxu0 %v7807_v49  ;;  %6438 = vmatpush1.bf16.msra.mxu0 %v10620_v33  ;;  %v454_v33 = vld [vmem:[%s9732_s15 + $0x538] sm:$0xff]  ;;  %v469_v49 = vld [vmem:[%s9732_s15 + $0x5b0] sm:$0xff] }
 0x3d1   : > { %v10810_v53 = vpop.f32.mrb[48].mxu1  ;;  %6439 = vmatprep.subr.bf16.mxu0 %v9587_v2  ;;  %v7857_v20 = vcombine.high %v454_v33, %v462_v6  ;;  %v7856_v34 = vcombine.low %v454_v33, %v462_v6  ;;  %v494_v45 = vld [vmem:[%s9732_s15 + $0x678] sm:$0xff]  ;;  %v485_v6 = vld [vmem:[%s9732_s15 + $0x630] sm:$0xff] }
 0x3d2   : > { %v5100_v59 = vpop.f32.mrb[49].mxu1 }
 0x3d3   : > { %v10815_v61 = vpop.f32.mrb[50].mxu1  ;;  %v7854_v59 = vcombine.low %v453_v0, %v461_v31  ;;  %v501_v31 = vld [vmem:[%s9732_s15 + $0x6b0] sm:$0xff] }
 0x3d4   : > { %v5103_v30 = vpop.f32.mrb[51].mxu1  ;;  %6440 = vmatpush1.bf16.msra.mxu0 %v10629_v40 }
 0x3d5   : > { %6441 = vmatprep.subr.bf16.mxu0 %v9587_v2  ;;  %v502_v30 = vld [vmem:[%s9732_s15 + $0x6b8] sm:$0xff] }
 0x3d6   : > { %6510 = vmatmul.mubr.bf16.gmra.mrb[156].mxu1 %v7824_v28  ;;  %v7889_v28 = vcombine.high %v486_v44, %v494_v45 }
 0x3d7   : > { %6213 = vmatmul.mubr.bf16.gmra.mrb[28].mxu0 %v7806_v62  ;;  %6517 = vmatprep.mubr.bf16.mxu1 %v7841_v1  ;;  %v7871_v1 = vcombine.high %v469_v49, %v477_v17 }
 0x3d8   : > { %6220 = vmatprep.mubr.bf16.mxu0 %v7823_v5  ;;  %6442 = vmatpush1.bf16.msra.mxu0 %v10638_v43  ;;  %v470_v43 = vld [vmem:[%s9732_s15 + $0x5b8] sm:$0xff] }
 0x3d9   : > { %v10822_v8 = vpop.f32.mrb[52].mxu1  ;;  %6443 = vmatprep.subr.bf16.mxu0 %v9587_v2  ;;  %v7872_v55 = vcombine.low %v470_v43, %v478_v25  ;;  %v510_v5 = vld [vmem:[%s9732_s15 + $0x6f8] sm:$0xff] }
 0x3da   : > { %v5108_v40 = vpop.f32.mrb[53].mxu1 }
 0x3db   : > { %v10827_v15 = vpop.f32.mrb[54].mxu1  ;;  %v7888_v40 = vcombine.low %v486_v44, %v494_v45 }
 0x3dc   : > { %v5111_v9 = vpop.f32.mrb[55].mxu1  ;;  %6444 = vmatpush1.bf16.msra.mxu0 %v10647_v50  ;;  %v7873_v50 = vcombine.high %v470_v43, %v478_v25  ;;  %v518_v43 = vld [vmem:[%s9732_s15 + $0x738] sm:$0xff] }
 0x3dd   : > { %v526_v25 = vld [vmem:[%s9732_s15 + $0x778] sm:$0xff] }
 0x3de   : > { %6518 = vmatmul.mubr.bf16.gmra.mrb[160].mxu1 %v7840_v14 }
 0x3df   : > { %6221 = vmatmul.mubr.bf16.gmra.mrb[32].mxu0 %v7822_v18  ;;  %6525 = vmatprep.mubr.bf16.mxu1 %v7857_v20  ;;  %v7870_v18 = vcombine.low %v469_v49, %v477_v17  ;;  %v7905_v20 = vcombine.high %v502_v30, %v510_v5  ;;  %v534_v49 = vld [vmem:[%s9732_s15 + $0x7b8] sm:$0xff] }
 0x3e0   : > { %6228 = vmatprep.mubr.bf16.mxu0 %v7839_v23  ;;  %v7887_v23 = vcombine.high %v485_v6, %v493_v12  ;;  %v542_v17 = vld [vmem:[%s9732_s15 + $0x7f8] sm:$0xff] }
 0x3e1   : > { %v10832_v2 = vpop.f32.mrb[56].mxu1 }
 0x3e2   : > { %v5116_v29 = vpop.f32.mrb[57].mxu1 }
 0x3e3   : > { %v10836_v7 = vpop.f32.mrb[58].mxu1  ;;  %v509_v29 = vld [vmem:[%s9732_s15 + $0x6f0] sm:$0xff] }
 0x3e4   : > { %v5119_v38 = vpop.f32.mrb[59].mxu1  ;;  %v7903_v45 = vcombine.high %v501_v31, %v509_v29 }
 0x3e5   : > { %v7886_v38 = vcombine.low %v485_v6, %v493_v12 }
 0x3e6   : > { %6526 = vmatmul.mubr.bf16.gmra.mrb[164].mxu1 %v7856_v34 }
 0x3e7   : > { %6229 = vmatmul.mubr.bf16.gmra.mrb[36].mxu0 %v7838_v37  ;;  %6533 = vmatprep.mubr.bf16.mxu1 %v7873_v50  ;;  %v7904_v37 = vcombine.low %v502_v30, %v510_v5  ;;  %v7902_v30 = vcombine.low %v501_v31, %v509_v29  ;;  %v7937_v5 = vcombine.high %v534_v49, %v542_v17 }
 0x3e8   : > { %6236 = vmatprep.mubr.bf16.mxu0 %v7855_v57  ;;  %v7921_v57 = vcombine.high %v518_v43, %v526_v25 }
 0x3e9   : > { %v10840_v13 = vpop.f32.mrb[60].mxu1 }
 0x3ea   : > { %v5124_v52 = vpop.f32.mrb[61].mxu1 }
 0x3eb   : > { %v10844_v19 = vpop.f32.mrb[62].mxu1 }
 0x3ec   : > { %v5127_v62 = vpop.f32.mrb[63].mxu1 }
 0x3ed   : > { %v7920_v62 = vcombine.low %v518_v43, %v526_v25  ;;  %v7936_v43 = vcombine.low %v534_v49, %v542_v17 }
 0x3ee   : > { %6534 = vmatmul.mubr.bf16.gmra.mrb[168].mxu1 %v7872_v55  ;;  %v517_v55 = vld [vmem:[%s9732_s15 + $0x730] sm:$0xff] }
 0x3ef   : > { %6237 = vmatmul.mubr.bf16.gmra.mrb[40].mxu0 %v7854_v59  ;;  %6541 = vmatprep.mubr.bf16.mxu1 %v7889_v28  ;;  %v525_v59 = vld [vmem:[%s9732_s15 + $0x770] sm:$0xff] }
 0x3f0   : > { %6244 = vmatprep.mubr.bf16.mxu0 %v7871_v1  ;;  %v7919_v12 = vcombine.high %v517_v55, %v525_v59  ;;  %v7918_v31 = vcombine.low %v517_v55, %v525_v59 }
 0x3f1   : > { %v10848_v33 = vpop.f32.mrb[64].mxu1 }
 0x3f2   : > { %v5132_v51 = vpop.f32.mrb[65].mxu1 }
 0x3f3   : > { %v10852_v14 = vpop.f32.mrb[66].mxu1  ;;  %v550_v51 = vld [vmem:[%s9732_s15 + $0x838] sm:$0xff] }
 0x3f4   : > { %v5135_v9 = vpop.f32.mrb[67].mxu1 }
 0x3f5   : > { %v541_v9 = vld [vmem:[%s9732_s15 + $0x7f0] sm:$0xff] }
 0x3f6   : > { %6542 = vmatmul.mubr.bf16.gmra.mrb[172].mxu1 %v7888_v40  ;;  %v558_v40 = vld [vmem:[%s9732_s15 + $0x878] sm:$0xff] }
 0x3f7   : > { %6245 = vmatmul.mubr.bf16.gmra.mrb[44].mxu0 %v7870_v18  ;;  %6549 = vmatprep.mubr.bf16.mxu1 %v7905_v20  ;;  %v533_v20 = vld [vmem:[%s9732_s15 + $0x7b0] sm:$0xff]  ;;  %v7953_v29 = vcombine.high %v550_v51, %v558_v40  ;;  %v7952_v17 = vcombine.low %v550_v51, %v558_v40 }
 0x3f8   : > { %6252 = vmatprep.mubr.bf16.mxu0 %v7887_v23  ;;  %v7934_v59 = vcombine.low %v533_v20, %v541_v9 }
 0x3f9   : > { %v10856_v0 = vpop.f32.mrb[68].mxu1 }
 0x3fa   : > { %v5140_v34 = vpop.f32.mrb[69].mxu1 }
 0x3fb   : > { %v10860_v50 = vpop.f32.mrb[70].mxu1 }
 0x3fc   : > { %v5143_v44 = vpop.f32.mrb[71].mxu1 }
 0x3fe   : > { %6550 = vmatmul.mubr.bf16.gmra.mrb[176].mxu1 %v7904_v37  ;;  %v7935_v37 = vcombine.high %v533_v20, %v541_v9 }
 0x3ff   : > { %6253 = vmatmul.mubr.bf16.gmra.mrb[48].mxu0 %v7886_v38  ;;  %6557 = vmatprep.mubr.bf16.mxu1 %v7921_v57  ;;  %v566_v38 = vld [vmem:[%s9732_s15 + $0x8b8] sm:$0xff] }
 0x400   : > { %6260 = vmatprep.mubr.bf16.mxu0 %v7903_v45  ;;  %v574_v57 = vld [vmem:[%s9732_s15 + $0x8f8] sm:$0xff]  ;;  %v549_v45 = vld [vmem:[%s9732_s15 + $0x830] sm:$0xff] }
 0x401   : > { %v10864_v52 = vpop.f32.mrb[72].mxu1  ;;  %v7968_v40 = vcombine.low %v566_v38, %v574_v57 }
 0x402   : > { %v5148_v28 = vpop.f32.mrb[73].mxu1 }
 0x403   : > { %v10868_v1 = vpop.f32.mrb[74].mxu1  ;;  %v557_v28 = vld [vmem:[%s9732_s15 + $0x870] sm:$0xff] }
 0x404   : > { %v5151_v6 = vpop.f32.mrb[75].mxu1  ;;  %v7950_v9 = vcombine.low %v549_v45, %v557_v28 }
 0x405   : > { %v582_v6 = vld [vmem:[%s9732_s15 + $0x938] sm:$0xff] }
 0x406   : > { %6558 = vmatmul.mubr.bf16.gmra.mrb[180].mxu1 %v7920_v62  ;;  %v7969_v62 = vcombine.high %v566_v38, %v574_v57 }
 0x407   : > { %6261 = vmatmul.mubr.bf16.gmra.mrb[52].mxu0 %v7902_v30  ;;  %6565 = vmatprep.mubr.bf16.mxu1 %v7937_v5  ;;  %v7951_v5 = vcombine.high %v549_v45, %v557_v28 }
 0x408   : > { %6268 = vmatprep.mubr.bf16.mxu0 %v7919_v12  ;;  %v590_v12 = vld [vmem:[%s9732_s15 + $0x978] sm:$0xff] }
 0x409   : > { %v10872_v18 = vpop.f32.mrb[76].mxu1  ;;  %v7984_v57 = vcombine.low %v582_v6, %v590_v12 }
 0x40a   : > { %v5156_v23 = vpop.f32.mrb[77].mxu1 }
 0x40b   : > { %v10876_v25 = vpop.f32.mrb[78].mxu1 }
 0x40c   : > { %v5159_v34 = vpop.f32.mrb[79].mxu1 }
 0x40e   : > { %6566 = vmatmul.mubr.bf16.gmra.mrb[184].mxu1 %v7936_v43  ;;  %v565_v43 = vld [vmem:[%s9732_s15 + $0x8b0] sm:$0xff] }
 0x40f   : > { %6269 = vmatmul.mubr.bf16.gmra.mrb[56].mxu0 %v7918_v31  ;;  %6573 = vmatprep.mubr.bf16.mxu1 %v7953_v29  ;;  %v573_v31 = vld [vmem:[%s9732_s15 + $0x8f0] sm:$0xff]  ;;  %v7985_v29 = vcombine.high %v582_v6, %v590_v12 }
 0x410   : > { %6276 = vmatprep.mubr.bf16.mxu0 %v7935_v37  ;;  %v7967_v37 = vcombine.high %v565_v43, %v573_v31  ;;  %v7966_v28 = vcombine.low %v565_v43, %v573_v31 }
 0x411   : > { %v10880_v44 = vpop.f32.mrb[80].mxu1 }
 0x412   : > { %11822 = vst [vmem:[#allocation17_spill] sm:$0xff] %v10880_v44  ;;  %v5164_v49 = vpop.f32.mrb[81].mxu1 }
 0x413   : > { %v10884_v55 = vpop.f32.mrb[82].mxu1  ;;  %v598_v49 = vld [vmem:[%s9732_s15 + $0x9b8] sm:$0xff] }
 0x414   : > { %11823 = vst [vmem:[#allocation18_spill] sm:$0xff] %v10884_v55  ;;  %v5167_v30 = vpop.f32.mrb[83].mxu1 }
 0x415   : > { %v589_v30 = vld [vmem:[%s9732_s15 + $0x970] sm:$0xff] }
 0x416   : > { %6574 = vmatmul.mubr.bf16.gmra.mrb[188].mxu1 %v7952_v17  ;;  %v606_v17 = vld [vmem:[%s9732_s15 + $0x9f8] sm:$0xff] }
 0x417   : > { %6277 = vmatmul.mubr.bf16.gmra.mrb[60].mxu0 %v7934_v59  ;;  %6581 = vmatprep.mubr.bf16.mxu1 %v7969_v62  ;;  %v581_v62 = vld [vmem:[%s9732_s15 + $0x930] sm:$0xff]  ;;  %v8000_v12 = vcombine.low %v598_v49, %v606_v17 }
 0x418   : > { %6284 = vmatprep.mubr.bf16.mxu0 %v7951_v5  ;;  %v8001_v5 = vcombine.high %v598_v49, %v606_v17  ;;  %v7982_v31 = vcombine.low %v581_v62, %v589_v30 }
 0x419   : > { %v10888_v23 = vpop.f32.mrb[84].mxu1 }
 0x41a   : > { %11824 = vst [vmem:[#allocation19_spill] sm:$0xff] %v10888_v23  ;;  %v5172_v51 = vpop.f32.mrb[85].mxu1 }
 0x41b   : > { %v10892_v20 = vpop.f32.mrb[86].mxu1 }
 0x41c   : > { %11825 = vst [vmem:[#allocation20_spill] sm:$0xff] %v10892_v20  ;;  %v5175_v34 = vpop.f32.mrb[87].mxu1 }
 0x41e   : > { %6582 = vmatmul.mubr.bf16.gmra.mrb[192].mxu1 %v7968_v40  ;;  %v7983_v40 = vcombine.high %v581_v62, %v589_v30 }
 0x41f   : > { %6285 = vmatmul.mubr.bf16.gmra.mrb[64].mxu0 %v7950_v9  ;;  %6589 = vmatprep.mubr.bf16.mxu1 %v7985_v29  ;;  %v614_v9 = vld [vmem:[%s9732_s15 + $0xa38] sm:$0xff] }
 0x420   : > { %6292 = vmatprep.mubr.bf16.mxu0 %v7967_v37  ;;  %v622_v29 = vld [vmem:[%s9732_s15 + $0xa78] sm:$0xff]  ;;  %v597_v37 = vld [vmem:[%s9732_s15 + $0x9b0] sm:$0xff] }
 0x421   : > { %v10896_v59 = vpop.f32.mrb[88].mxu1  ;;  %v8016_v17 = vcombine.low %v614_v9, %v622_v29 }
 0x422   : > { %11826 = vst [vmem:[#allocation21_spill] sm:$0xff] %v10896_v59  ;;  %v5180_v38 = vpop.f32.mrb[89].mxu1 }
 0x423   : > { %v10900_v45 = vpop.f32.mrb[90].mxu1  ;;  %v605_v38 = vld [vmem:[%s9732_s15 + $0x9f0] sm:$0xff] }
 0x424   : > { %11827 = vst [vmem:[#allocation22_spill] sm:$0xff] %v10900_v45  ;;  %v5183_v51 = vpop.f32.mrb[91].mxu1  ;;  %v7998_v30 = vcombine.low %v597_v37, %v605_v38  ;;  %v749_v45 = vld [vmem:[%s9732_s15 + $0xe70] sm:$0xff] }
 0x425   : > { %v8017_v51 = vcombine.high %v614_v9, %v622_v29 }
 0x426   : > { %6590 = vmatmul.mubr.bf16.gmra.mrb[196].mxu1 %v7984_v57 }
 0x427   : > { %6293 = vmatmul.mubr.bf16.gmra.mrb[68].mxu0 %v7966_v28  ;;  %6597 = vmatprep.mubr.bf16.mxu1 %v8001_v5  ;;  %v7999_v28 = vcombine.high %v597_v37, %v605_v38  ;;  %v630_v5 = vld [vmem:[%s9732_s15 + $0xab8] sm:$0xff] }
 0x428   : > { %6300 = vmatprep.mubr.bf16.mxu0 %v7983_v40  ;;  %v638_v40 = vld [vmem:[%s9732_s15 + $0xaf8] sm:$0xff] }
 0x429   : > { %v10904_v34 = vpop.f32.mrb[92].mxu1  ;;  %v8032_v29 = vcombine.low %v630_v5, %v638_v40 }
 0x42a   : > { %11828 = vst [vmem:[#allocation23_spill] sm:$0xff] %v10904_v34  ;;  %v5188_v6 = vpop.f32.mrb[93].mxu1  ;;  %v669_v34 = vld [vmem:[%s9732_s15 + $0xbf0] sm:$0xff] }
 0x42b   : > { %v10908_v43 = vpop.f32.mrb[94].mxu1  ;;  %v621_v6 = vld [vmem:[%s9732_s15 + $0xa70] sm:$0xff] }
 0x42c   : > { %11829 = vst [vmem:[#allocation24_spill] sm:$0xff] %v10908_v43  ;;  %v5191_v57 = vpop.f32.mrb[95].mxu1  ;;  %v629_v43 = vld [vmem:[%s9732_s15 + $0xab0] sm:$0xff]  ;;  %v8014_v38 = vcombine.low %v613_v24, %v621_v6 }
 0x42d   : > { %v8033_v57 = vcombine.high %v630_v5, %v638_v40 }
 0x42e   : > { %6598 = vmatmul.mubr.bf16.gmra.mrb[200].mxu1 %v8000_v12 }
 0x42f   : > { %6301 = vmatmul.mubr.bf16.gmra.mrb[72].mxu0 %v7982_v31  ;;  %6605 = vmatprep.mubr.bf16.mxu1 %v8017_v51  ;;  %v8015_v31 = vcombine.high %v613_v24, %v621_v6  ;;  %v646_v51 = vld [vmem:[%s9732_s15 + $0xb38] sm:$0xff] }
 0x430   : > { %6308 = vmatprep.mubr.bf16.mxu0 %v7999_v28  ;;  %v654_v28 = vld [vmem:[%s9732_s15 + $0xb78] sm:$0xff] }
 0x431   : > { %v10912_v32 = vpop.f32.mrb[96].mxu1  ;;  %v8048_v40 = vcombine.low %v646_v51, %v654_v28 }
 0x432   : > { %11830 = vst [vmem:[#allocation25_spill] sm:$0xff] %v10912_v32  ;;  %v5196_v49 = vpop.f32.mrb[97].mxu1 }
 0x433   : > { %v10916_v62 = vpop.f32.mrb[98].mxu1  ;;  %v637_v49 = vld [vmem:[%s9732_s15 + $0xaf0] sm:$0xff] }
 0x434   : > { %11831 = vst [vmem:[#allocation26_spill] sm:$0xff] %v10916_v62  ;;  %v5199_v12 = vpop.f32.mrb[99].mxu1  ;;  %v645_v62 = vld [vmem:[%s9732_s15 + $0xb30] sm:$0xff]  ;;  %v8030_v6 = vcombine.low %v629_v43, %v637_v49 }
 0x435   : > { %v8049_v12 = vcombine.high %v646_v51, %v654_v28 }
 0x436   : > { %6606 = vmatmul.mubr.bf16.gmra.mrb[204].mxu1 %v8016_v17 }
 0x437   : > { %6309 = vmatmul.mubr.bf16.gmra.mrb[76].mxu0 %v7998_v30  ;;  %6613 = vmatprep.mubr.bf16.mxu1 %v8033_v57  ;;  %v8031_v30 = vcombine.high %v629_v43, %v637_v49  ;;  %v662_v57 = vld [vmem:[%s9732_s15 + $0xbb8] sm:$0xff] }
 0x438   : > { %6316 = vmatprep.mubr.bf16.mxu0 %v8015_v31  ;;  %v670_v31 = vld [vmem:[%s9732_s15 + $0xbf8] sm:$0xff] }
 0x439   : > { %v10920_v32 = vpop.f32.mrb[100].mxu1  ;;  %v8064_v28 = vcombine.low %v662_v57, %v670_v31 }
 0x43a   : > { %11832 = vst [vmem:[#allocation27_spill] sm:$0xff] %v10920_v32  ;;  %v5204_v9 = vpop.f32.mrb[101].mxu1 }
 0x43b   : > { %v10924_v37 = vpop.f32.mrb[102].mxu1  ;;  %v653_v9 = vld [vmem:[%s9732_s15 + $0xb70] sm:$0xff] }
 0x43c   : > { %11833 = vst [vmem:[#allocation28_spill] sm:$0xff] %v10924_v37  ;;  %v5207_v17 = vpop.f32.mrb[103].mxu1  ;;  %v8046_v49 = vcombine.low %v645_v62, %v653_v9 }
 0x43d   : > { %v8065_v17 = vcombine.high %v662_v57, %v670_v31  ;;  %v685_v57 = vld [vmem:[%s9732_s15 + $0xc70] sm:$0xff]  ;;  %v7108_v31 = vld [vmem:[%s11794_s3 + $0x8] sm:$0xff] }
 0x43e   : > { %6614 = vmatmul.mubr.bf16.gmra.mrb[208].mxu1 %v8032_v29 }
 0x43f   : > { %6317 = vmatmul.mubr.bf16.gmra.mrb[80].mxu0 %v8014_v38  ;;  %6621 = vmatprep.mubr.bf16.mxu1 %v8049_v12  ;;  %v8047_v38 = vcombine.high %v645_v62, %v653_v9  ;;  %v678_v12 = vld [vmem:[%s9732_s15 + $0xc38] sm:$0xff]  ;;  %v7107_v62 = vld [vmem:[%s11794_s3] sm:$0xff] }
 0x440   : > { %6324 = vmatprep.mubr.bf16.mxu0 %v8031_v30  ;;  %v686_v30 = vld [vmem:[%s9732_s15 + $0xc78] sm:$0xff] }
 0x441   : > { %v10928_v32 = vpop.f32.mrb[104].mxu1 }
 0x442   : > { %11834 = vst [vmem:[#allocation29_spill] sm:$0xff] %v10928_v32  ;;  %v5212_v5 = vpop.f32.mrb[105].mxu1  ;;  %v661_v32 = vld [vmem:[%s9732_s15 + $0xbb0] sm:$0xff] }
 0x443   : > { %v10932_v24 = vpop.f32.mrb[106].mxu1  ;;  %v8081_v5 = vcombine.high %v678_v12, %v686_v30 }
 0x444   : > { %11835 = vst [vmem:[#allocation30_spill] sm:$0xff] %v10932_v24  ;;  %v5215_v29 = vpop.f32.mrb[107].mxu1 }
 0x445   : > { %v677_v29 = vld [vmem:[%s9732_s15 + $0xc30] sm:$0xff] }
 0x446   : > { %6622 = vmatmul.mubr.bf16.gmra.mrb[212].mxu1 %v8048_v40 }
 0x447   : > { %6325 = vmatmul.mubr.bf16.gmra.mrb[84].mxu0 %v8030_v6  ;;  %6629 = vmatprep.mubr.bf16.mxu1 %v8065_v17  ;;  %v8063_v6 = vcombine.high %v661_v32, %v669_v34  ;;  %v11802_v17 = vmov 0.0|0.0  }
 0x448   : > { %6332 = vmatprep.mubr.bf16.mxu0 %v8047_v38  ;;  %8390 = vmatprep.subr.bf16.mxu1 %v11802_v17  ;;  %v694_v38 = vld [vmem:[%s9732_s15 + $0xcb8] sm:$0xff]  ;;  %v8079_v17 = vcombine.high %v677_v29, %v685_v57 }
 0x449   : > { %v10936_v37 = vpop.f32.mrb[108].mxu1 }
 0x44a   : > { %11836 = vst [vmem:[#allocation31_spill] sm:$0xff] %v10936_v37  ;;  %v5220_v51 = vpop.f32.mrb[109].mxu1  ;;  %v702_v37 = vld [vmem:[%s9732_s15 + $0xcf8] sm:$0xff] }
 0x44b   : > { %v10940_v43 = vpop.f32.mrb[110].mxu1  ;;  %v8080_v51 = vcombine.low %v678_v12, %v686_v30  ;;  %v718_v12 = vld [vmem:[%s9732_s15 + $0xd78] sm:$0xff] }
 0x44c   : > { %11837 = vst [vmem:[#allocation32_spill] sm:$0xff] %v10940_v43  ;;  %v5223_v40 = vpop.f32.mrb[111].mxu1  ;;  %v709_v43 = vld [vmem:[%s9732_s15 + $0xd30] sm:$0xff] }
 0x44d   : > { %v8097_v40 = vcombine.high %v694_v38, %v702_v37 }
 0x44e   : > { %6630 = vmatmul.mubr.bf16.gmra.mrb[216].mxu1 %v8064_v28  ;;  %v10955_v28 = vpack.c.bf16 %v7108_v31, %v7107_v62  ;;  %v693_v62 = vld [vmem:[%s9732_s15 + $0xcb0] sm:$0xff]  ;;  %v8096_v31 = vcombine.low %v694_v38, %v702_v37 }
 0x44f   : > { %6333 = vmatmul.mubr.bf16.gmra.mrb[88].mxu0 %v8046_v49  ;;  %6637 = vmatprep.mubr.bf16.mxu1 %v8081_v5  ;;  %v8062_v5 = vcombine.low %v661_v32, %v669_v34  ;;  %v701_v32 = vld [vmem:[%s9732_s15 + $0xcf0] sm:$0xff] }
 0x450   : > { %6340 = vmatprep.mubr.bf16.mxu0 %v8063_v6  ;;  %11839 = vst [vmem:[#allocation34_spill] sm:$0xff] %v10955_v28  ;;  %8392 = vmatpush3.bf16.msra.mxu1 %v10955_v28  ;;  %v8078_v28 = vcombine.low %v677_v29, %v685_v57  ;;  %v8094_v57 = vcombine.low %v693_v62, %v701_v32 }
 0x451   : > { %v10946_v24 = vpop.f32.mrb[112].mxu1 }
 0x452   : > { %11838 = vst [vmem:[#allocation33_spill] sm:$0xff] %v10946_v24  ;;  %v5228_v9 = vpop.f32.mrb[113].mxu1  ;;  %v11841_v24 = vmov 0.0|0.0  }
 0x453   : > { %v10957_v49 = vpop.f32.mrb[114].mxu1  ;;  %8393 = vmatprep.subr.bf16.mxu1 %v11841_v24  ;;  %v710_v9 = vld [vmem:[%s9732_s15 + $0xd38] sm:$0xff] }
 0x454   : > { %11840 = vst [vmem:[#allocation35_spill] sm:$0xff] %v10957_v49  ;;  %v5231_v6 = vpop.f32.mrb[115].mxu1  ;;  %v8113_v49 = vcombine.high %v710_v9, %v718_v12  ;;  %v8112_v38 = vcombine.low %v710_v9, %v718_v12 }
 0x456   : > { %6638 = vmatmul.mubr.bf16.gmra.mrb[220].mxu1 %v8080_v51 }
 0x457   : > { %6341 = vmatmul.mubr.bf16.gmra.mrb[92].mxu0 %v8062_v5  ;;  %6645 = vmatprep.mubr.bf16.mxu1 %v8097_v40  ;;  %v8095_v5 = vcombine.high %v693_v62, %v701_v32  ;;  %v734_v40 = vld [vmem:[%s9732_s15 + $0xdf8] sm:$0xff] }
 0x458   : > { %6348 = vmatprep.mubr.bf16.mxu0 %v8079_v17  ;;  %v726_v17 = vld [vmem:[%s9732_s15 + $0xdb8] sm:$0xff] }
 0x459   : > { %v10963_v30 = vpop.f32.mrb[116].mxu1  ;;  %v8128_v12 = vcombine.low %v726_v17, %v734_v40 }
 0x45a   : > { %11842 = vst [vmem:[#allocation36_spill] sm:$0xff] %v10963_v30  ;;  %v5236_v34 = vpop.f32.mrb[117].mxu1 }
 0x45b   : > { %v10967_v6 = vpop.f32.mrb[118].mxu1  ;;  %v717_v34 = vld [vmem:[%s9732_s15 + $0xd70] sm:$0xff] }
 0x45c   : > { %11843 = vst [vmem:[#allocation37_spill] sm:$0xff] %v10967_v6  ;;  %v5239_v51 = vpop.f32.mrb[119].mxu1  ;;  %v725_v6 = vld [vmem:[%s9732_s15 + $0xdb0] sm:$0xff]  ;;  %v8110_v32 = vcombine.low %v709_v43, %v717_v34 }
 0x45d   : > { %v8129_v51 = vcombine.high %v726_v17, %v734_v40 }
 0x45e   : > { %6646 = vmatmul.mubr.bf16.gmra.mrb[224].mxu1 %v8096_v31 }
 0x45f   : > { %6349 = vmatmul.mubr.bf16.gmra.mrb[96].mxu0 %v8078_v28  ;;  %6653 = vmatprep.mubr.bf16.mxu1 %v8113_v49  ;;  %v8111_v28 = vcombine.high %v709_v43, %v717_v34  ;;  %v742_v49 = vld [vmem:[%s9732_s15 + $0xe38] sm:$0xff] }
 0x460   : > { %6356 = vmatprep.mubr.bf16.mxu0 %v8095_v5  ;;  %v750_v5 = vld [vmem:[%s9732_s15 + $0xe78] sm:$0xff] }
 0x461   : > { %v10971_v30 = vpop.f32.mrb[120].mxu1  ;;  %v8144_v17 = vcombine.low %v742_v49, %v750_v5 }
 0x462   : > { %11844 = vst [vmem:[#allocation38_spill] sm:$0xff] %v10971_v30  ;;  %v5244_v37 = vpop.f32.mrb[121].mxu1 }
 0x463   : > { %v10975_v29 = vpop.f32.mrb[122].mxu1  ;;  %v733_v37 = vld [vmem:[%s9732_s15 + $0xdf0] sm:$0xff] }
 0x464   : > { %11845 = vst [vmem:[#allocation39_spill] sm:$0xff] %v10975_v29  ;;  %v5247_v31 = vpop.f32.mrb[123].mxu1  ;;  %v741_v29 = vld [vmem:[%s9732_s15 + $0xe30] sm:$0xff]  ;;  %v8126_v40 = vcombine.low %v725_v6, %v733_v37 }
 0x465   : > { %v8145_v31 = vcombine.high %v742_v49, %v750_v5  ;;  %v765_v49 = vld [vmem:[%s9732_s15 + $0xef0] sm:$0xff] }
 0x466   : > { %6654 = vmatmul.mubr.bf16.gmra.mrb[228].mxu1 %v8112_v38 }
 0x467   : > { %6357 = vmatmul.mubr.bf16.gmra.mrb[100].mxu0 %v8094_v57  ;;  %6661 = vmatprep.mubr.bf16.mxu1 %v8129_v51  ;;  %v8127_v57 = vcombine.high %v725_v6, %v733_v37  ;;  %v758_v51 = vld [vmem:[%s9732_s15 + $0xeb8] sm:$0xff] }
 0x468   : > { %6364 = vmatprep.mubr.bf16.mxu0 %v8111_v28  ;;  %v766_v28 = vld [vmem:[%s9732_s15 + $0xef8] sm:$0xff] }
 0x469   : > { %v10979_v30 = vpop.f32.mrb[124].mxu1  ;;  %v8161_v34 = vcombine.high %v758_v51, %v766_v28  ;;  %v8160_v37 = vcombine.low %v758_v51, %v766_v28 }
 0x46a   : > { %11846 = vst [vmem:[#allocation40_spill] sm:$0xff] %v10979_v30  ;;  %v5252_v9 = vpop.f32.mrb[125].mxu1 }
 0x46b   : > { %v10983_v62 = vpop.f32.mrb[126].mxu1  ;;  %v8143_v9 = vcombine.high %v741_v29, %v749_v45 }
 0x46c   : > { %11847 = vst [vmem:[#allocation41_spill] sm:$0xff] %v10983_v62  ;;  %v5255_v38 = vpop.f32.mrb[127].mxu1  ;;  %v757_v62 = vld [vmem:[%s9732_s15 + $0xeb0] sm:$0xff] }
 0x46e   : > { %6662 = vmatmul.mubr.bf16.gmra.mrb[232].mxu1 %v8128_v12  ;;  %v10989_v12 = vld [vmem:[#allocation5] ss:$0 sm:$0xff] }
 0x46f   : > { %6365 = vmatmul.mubr.bf16.gmra.mrb[104].mxu0 %v8110_v32  ;;  %6669 = vmatprep.mubr.bf16.mxu1 %v8145_v31  ;;  %v774_v32 = vld [vmem:[%s9732_s15 + $0xf38] sm:$0xff]  ;;  %v8456_v28 = vadd.f32 %v10989_v12, %v10705_v56 }
 0x470   : > { %6372 = vmatprep.mubr.bf16.mxu0 %v8127_v57  ;;  %v782_v31 = vld [vmem:[%s9732_s15 + $0xf78] sm:$0xff]  ;;  %v8450_v57 = vadd.f32 %v10989_v12, %v10697_v41  ;;  %v8159_v41 = vcombine.high %v757_v62, %v765_v49 }
 0x471   : > { %v6455_v30 = vpop.f32.mrb[128].mxu1  ;;  %v8177_v20 = vcombine.high %v774_v32, %v782_v31 }
 0x472   : > { %v6457_v59 = vpop.f32.mrb[129].mxu1 }
 0x473   : > { %v6458_v43 = vpop.f32.mrb[130].mxu1 }
 0x474   : > { %v6460_v38 = vpop.f32.mrb[131].mxu1 }
 0x475   : > { %v8142_v38 = vcombine.low %v741_v29, %v749_v45  ;;  %v790_v45 = vld [vmem:[%s9732_s15 + $0xfb8] sm:$0xff] }
 0x476   : > { %6670 = vmatmul.mubr.bf16.gmra.mrb[236].mxu1 %v8144_v17  ;;  %v8453_v17 = vadd.f32 %v10989_v12, %v10701_v47  ;;  %v798_v29 = vld [vmem:[%s9732_s15 + $0xff8] sm:$0xff] }
 0x477   : > { %6373 = vmatmul.mubr.bf16.gmra.mrb[108].mxu0 %v8126_v40  ;;  %6677 = vmatprep.mubr.bf16.mxu1 %v8161_v34 }
 0x478   : > { %6380 = vmatprep.mubr.bf16.mxu0 %v8143_v9 }
 0x479   : > { %v6463_v59 = vpop.f32.mrb[132].mxu1 }
 0x47a   : > { %v6166_v5 = vpop.f32.mrb[4].mxu0  ;;  %v6465_v6 = vpop.f32.mrb[133].mxu1 }
 0x47b   : > { %v8451_v40 = vadd.f32 %v8450_v57, %v6166_v5  ;;  %v6168_v34 = vpop.f32.mrb[5].mxu0  ;;  %v6466_v9 = vpop.f32.mrb[134].mxu1 }
 0x47c   : > { %v6169_v23 = vpop.f32.mrb[6].mxu0  ;;  %v6468_v55 = vpop.f32.mrb[135].mxu1 }
 0x47d   : > { %v8454_v6 = vadd.f32 %v8453_v17, %v6169_v23  ;;  %v10999_v44 = vadd.f32 %v8451_v40, %v6455_v30  ;;  %v6171_v51 = vpop.f32.mrb[7].mxu0  ;;  %v773_v23 = vld [vmem:[%s9732_s15 + $0xf30] sm:$0xff]  ;;  %v8158_v40 = vcombine.low %v757_v62, %v765_v49  ;;  %v8462_v62 = vadd.f32 %v10989_v12, %v10713_v10 }
 0x47e   : > { %6678 = vmatmul.mubr.bf16.gmra.mrb[240].mxu1 %v8160_v37  ;;  %v781_v30 = vld [vmem:[%s9732_s15 + $0xf70] sm:$0xff]  ;;  %v8176_v37 = vcombine.low %v774_v32, %v782_v31 }
 0x47f   : > { %11848 = vst [vmem:[#allocation42_spill] sm:$0xff] %v10999_v44  ;;  %6705 = vst.msk [vmem:[%s9742_s30 + $0x10] sm:$0xff] %vm6702_vm1, %v10999_v44  ;;  %v11004_v47 = vadd.f32 %v8454_v6, %v6458_v43  ;;  %6381 = vmatmul.mubr.bf16.gmra.mrb[112].mxu0 %v8142_v38  ;;  %6685 = vmatprep.mubr.bf16.mxu1 %v8177_v20  ;;  %v8459_v43 = vadd.f32 %v10989_v12, %v10709_v63  ;;  %v789_v31 = vld [vmem:[%s9732_s15 + $0xfb0] sm:$0xff] }
 0x480   : > { %6388 = vmatprep.mubr.bf16.mxu0 %v8159_v41  ;;  %v8193_v38 = vcombine.high %v790_v45, %v798_v29  ;;  %v8175_v41 = vcombine.high %v773_v23, %v781_v30 }
 0x481   : > { %11849 = vst [vmem:[#allocation43_spill] sm:$0xff] %v11004_v47  ;;  %6706 = vst.msk [vmem:[%s9742_s30 + $0x18] sm:$0xff] %vm6702_vm1, %v11004_v47  ;;  %v6471_v55 = vpop.f32.mrb[136].mxu1 }
 0x482   : > { %v6174_v57 = vpop.f32.mrb[8].mxu0  ;;  %v6473_v5 = vpop.f32.mrb[137].mxu1 }
 0x483   : > { %v8457_v20 = vadd.f32 %v8456_v28, %v6174_v57  ;;  %v6176_v17 = vpop.f32.mrb[9].mxu0  ;;  %v6474_v34 = vpop.f32.mrb[138].mxu1  ;;  %v8192_v28 = vcombine.low %v790_v45, %v798_v29  ;;  %v7110_v45 = vld [vmem:[%s11794_s3 + $0x18] sm:$0xff] }
 0x484   : > { %v6177_v56 = vpop.f32.mrb[10].mxu0  ;;  %v6476_v6 = vpop.f32.mrb[139].mxu1 }
 0x485   : > { %v8460_v51 = vadd.f32 %v8459_v43, %v6177_v56  ;;  %v11017_v47 = vadd.f32 %v8457_v20, %v6463_v59  ;;  %v6179_v44 = vpop.f32.mrb[11].mxu0  ;;  %v797_v59 = vld [vmem:[%s9732_s15 + $0xff0] sm:$0xff]  ;;  %v8468_v56 = vadd.f32 %v10989_v12, %v10721_v26  ;;  %v302_v6 = vld [vmem:[%s9732_s15 + $0x78] sm:$0xff] }
 0x486   : > { %6686 = vmatmul.mubr.bf16.gmra.mrb[244].mxu1 %v8176_v37  ;;  %v8174_v37 = vcombine.low %v773_v23, %v781_v30  ;;  %v8191_v17 = vcombine.high %v789_v31, %v797_v59 }
 0x487   : > { %6707 = vst.msk [vmem:[%s9742_s30 + $0x20] sm:$0xff] %vm6702_vm1, %v11017_v47  ;;  %v11022_v63 = vadd.f32 %v8460_v51, %v6466_v9  ;;  %6389 = vmatmul.mubr.bf16.gmra.mrb[116].mxu0 %v8158_v40  ;;  %6693 = vmatprep.mubr.bf16.mxu1 %v8193_v38  ;;  %v8465_v9 = vadd.f32 %v10989_v12, %v10717_v16  ;;  %v7109_v40 = vld [vmem:[%s11794_s3 + $0x10] sm:$0xff] }
 0x488   : > { %6396 = vmatprep.mubr.bf16.mxu0 %v8175_v41  ;;  %v11041_v23 = vpack.c.bf16 %v7110_v45, %v7109_v40  ;;  %v294_v41 = vld [vmem:[%s9732_s15 + $0x38] sm:$0xff]  ;;  %v8477_v40 = vadd.f32 %v10989_v12, %v10733_v54  ;;  %v8480_v54 = vadd.f32 %v10989_v12, %v10738_v3 }
 0x489   : > { %6708 = vst.msk [vmem:[%s9742_s30 + $0x28] sm:$0xff] %vm6702_vm1, %v11022_v63  ;;  %v6479_v32 = vpop.f32.mrb[140].mxu1 }
 0x48a   : > { %v6182_v49 = vpop.f32.mrb[12].mxu0  ;;  %v6481_v44 = vpop.f32.mrb[141].mxu1  ;;  %8395 = vmatpush3.bf16.msra.mxu1 %v11041_v23 }
 0x48b   : > { %v8463_v57 = vadd.f32 %v8462_v62, %v6182_v49  ;;  %v6184_v5 = vpop.f32.mrb[13].mxu0  ;;  %v6482_v43 = vpop.f32.mrb[142].mxu1  ;;  %8396 = vmatprep.subr.bf16.mxu1 %v11841_v24 }
 0x48c   : > { %v6185_v20 = vpop.f32.mrb[14].mxu0  ;;  %v6484_v10 = vpop.f32.mrb[143].mxu1  ;;  %v7697_v5 = vcombine.high %v294_v41, %v302_v6 }
 0x48d   : > { %v8466_v29 = vadd.f32 %v8465_v9, %v6185_v20  ;;  %v11039_v16 = vadd.f32 %v8463_v57, %v6471_v55  ;;  %v6187_v38 = vpop.f32.mrb[15].mxu0 }
 0x48e   : > { %6694 = vmatmul.mubr.bf16.gmra.mrb[248].mxu1 %v8192_v28  ;;  %v8190_v28 = vcombine.low %v789_v31, %v797_v59 }
 0x48f   : > { %6709 = vst.msk [vmem:[%s9742_s30 + $0x30] sm:$0xff] %vm6702_vm1, %v11039_v16  ;;  %v11046_v30 = vadd.f32 %v8466_v29, %v6474_v34  ;;  %6397 = vmatmul.mubr.bf16.gmra.mrb[120].mxu0 %v8174_v37  ;;  %v8471_v34 = vadd.f32 %v10989_v12, %v10725_v36  ;;  %v8474_v36 = vadd.f32 %v10989_v12, %v10729_v46 }
 0x490   : > { %6404 = vmatprep.mubr.bf16.mxu0 %v8191_v17 }
 0x491   : > { %6710 = vst.msk [vmem:[%s9742_s30 + $0x38] sm:$0xff] %vm6702_vm1, %v11046_v30  ;;  %v6487_v55 = vpop.f32.mrb[144].mxu1 }
 0x492   : > { %v6190_v51 = vpop.f32.mrb[16].mxu0  ;;  %v6489_v62 = vpop.f32.mrb[145].mxu1 }
 0x493   : > { %v8469_v49 = vadd.f32 %v8468_v56, %v6190_v51  ;;  %v6192_v44 = vpop.f32.mrb[17].mxu0  ;;  %v6490_v9 = vpop.f32.mrb[146].mxu1 }
 0x494   : > { %v6193_v57 = vpop.f32.mrb[18].mxu0  ;;  %v6492_v26 = vpop.f32.mrb[147].mxu1 }
 0x495   : > { %v8472_v37 = vadd.f32 %v8471_v34, %v6193_v57  ;;  %v11059_v20 = vadd.f32 %v8469_v49, %v6479_v32  ;;  %v6195_v17 = vpop.f32.mrb[19].mxu0 }
 0x497   : > { %6711 = vst.msk [vmem:[%s9742_s30 + $0x40] sm:$0xff] %vm6702_vm1, %v11059_v20  ;;  %v11064_v10 = vadd.f32 %v8472_v37, %v6482_v43  ;;  %6405 = vmatmul.mubr.bf16.gmra.mrb[124].mxu0 %v8190_v28  ;;  %v7696_v43 = vcombine.low %v294_v41, %v302_v6 }
 0x498   : > { %6445 = vmatprep.mubr.bf16.mxu0 %v7697_v5 }
 0x499   : > { %6712 = vst.msk [vmem:[%s9742_s30 + $0x48] sm:$0xff] %vm6702_vm1, %v11064_v10  ;;  %v6495_v31 = vpop.f32.mrb[148].mxu1 }
 0x49a   : > { %v6198_v59 = vpop.f32.mrb[20].mxu0  ;;  %v6497_v32 = vpop.f32.mrb[149].mxu1 }
 0x49b   : > { %v8475_v45 = vadd.f32 %v8474_v36, %v6198_v59  ;;  %v6200_v29 = vpop.f32.mrb[21].mxu0  ;;  %v6498_v38 = vpop.f32.mrb[150].mxu1  ;;  %v8486_v59 = vadd.f32 %v10989_v12, %v10750_v21 }
 0x49c   : > { %v6201_v56 = vpop.f32.mrb[22].mxu0  ;;  %v6500_v51 = vpop.f32.mrb[151].mxu1 }
 0x49d   : > { %v8478_v62 = vadd.f32 %v8477_v40, %v6201_v56  ;;  %v11073_v34 = vadd.f32 %v8475_v45, %v6487_v55  ;;  %v6203_v46 = vpop.f32.mrb[23].mxu0  ;;  %v8483_v55 = vadd.f32 %v10989_v12, %v10743_v11 }
 0x49f   : > { %6713 = vst.msk [vmem:[%s9742_s30 + $0x50] sm:$0xff] %vm6702_vm1, %v11073_v34  ;;  %v11078_v49 = vadd.f32 %v8478_v62, %v6490_v9  ;;  %6446 = vmatmul.mubr.bf16.vlgmr.msra.gmra.mrb[0].mxu0 %v7696_v43 }
 0x4a1   : > { %6714 = vst.msk [vmem:[%s9742_s30 + $0x58] sm:$0xff] %vm6702_vm1, %v11078_v49  ;;  %v6503_v41 = vpop.f32.mrb[152].mxu1 }
 0x4a2   : > { %v6206_v6 = vpop.f32.mrb[24].mxu0  ;;  %v6505_v44 = vpop.f32.mrb[153].mxu1 }
 0x4a3   : > { %v8481_v28 = vadd.f32 %v8480_v54, %v6206_v6  ;;  %v6208_v57 = vpop.f32.mrb[25].mxu0  ;;  %v6506_v5 = vpop.f32.mrb[154].mxu1  ;;  %v8492_v54 = vadd.f32 %v10989_v12, %v10762_v39 }
 0x4a4   : > { %v6209_v9 = vpop.f32.mrb[26].mxu0  ;;  %v6508_v26 = vpop.f32.mrb[155].mxu1 }
 0x4a5   : > { %v8484_v37 = vadd.f32 %v8483_v55, %v6209_v9  ;;  %v11087_v17 = vadd.f32 %v8481_v28, %v6495_v31  ;;  %v6211_v36 = vpop.f32.mrb[27].mxu0  ;;  %v8489_v31 = vadd.f32 %v10989_v12, %v10755_v27 }
 0x4a7   : > { %6715 = vst.msk [vmem:[%s9742_s30 + $0x60] sm:$0xff] %vm6702_vm1, %v11087_v17  ;;  %v11092_v3 = vadd.f32 %v8484_v37, %v6498_v38 }
 0x4a9   : > { %6716 = vst.msk [vmem:[%s9742_s30 + $0x68] sm:$0xff] %vm6702_vm1, %v11092_v3  ;;  %v6511_v11 = vpop.f32.mrb[156].mxu1 }
 0x4aa   : > { %v6214_v32 = vpop.f32.mrb[28].mxu0  ;;  %v6513_v40 = vpop.f32.mrb[157].mxu1 }
 0x4ab   : > { %v8487_v45 = vadd.f32 %v8486_v59, %v6214_v32  ;;  %v6216_v29 = vpop.f32.mrb[29].mxu0  ;;  %v6514_v43 = vpop.f32.mrb[158].mxu1  ;;  %v8498_v59 = vadd.f32 %v10989_v12, %v10774_v60 }
 0x4ac   : > { %v6217_v56 = vpop.f32.mrb[30].mxu0  ;;  %v6516_v51 = vpop.f32.mrb[159].mxu1 }
 0x4ad   : > { %v8490_v38 = vadd.f32 %v8489_v31, %v6217_v56  ;;  %v11101_v62 = vadd.f32 %v8487_v45, %v6503_v41  ;;  %v6219_v46 = vpop.f32.mrb[31].mxu0  ;;  %v8495_v41 = vadd.f32 %v10989_v12, %v10767_v48 }
 0x4af   : > { %6717 = vst.msk [vmem:[%s9742_s30 + $0x70] sm:$0xff] %vm6702_vm1, %v11101_v62  ;;  %v11106_v21 = vadd.f32 %v8490_v38, %v6506_v5 }
 0x4b1   : > { %6718 = vst.msk [vmem:[%s9742_s30 + $0x78] sm:$0xff] %vm6702_vm1, %v11106_v21  ;;  %v6519_v27 = vpop.f32.mrb[160].mxu1 }
 0x4b2   : > { %v6222_v6 = vpop.f32.mrb[32].mxu0  ;;  %v6521_v44 = vpop.f32.mrb[161].mxu1 }
 0x4b3   : > { %v8493_v55 = vadd.f32 %v8492_v54, %v6222_v6  ;;  %v6224_v28 = vpop.f32.mrb[33].mxu0  ;;  %v6522_v57 = vpop.f32.mrb[162].mxu1  ;;  %v8504_v54 = vadd.f32 %v10989_v12, %v10786_v58 }
 0x4b4   : > { %v6225_v9 = vpop.f32.mrb[34].mxu0  ;;  %v6524_v26 = vpop.f32.mrb[163].mxu1 }
 0x4b5   : > { %v8496_v5 = vadd.f32 %v8495_v41, %v6225_v9  ;;  %v11115_v37 = vadd.f32 %v8493_v55, %v6511_v11  ;;  %v6227_v36 = vpop.f32.mrb[35].mxu0  ;;  %v8501_v11 = vadd.f32 %v10989_v12, %v10779_v4 }
 0x4b7   : > { %6719 = vst.msk [vmem:[%s9742_s30 + $0x80] sm:$0xff] %vm6702_vm1, %v11115_v37  ;;  %v11120_v39 = vadd.f32 %v8496_v5, %v6514_v43 }
 0x4b9   : > { %6720 = vst.msk [vmem:[%s9742_s30 + $0x88] sm:$0xff] %vm6702_vm1, %v11120_v39  ;;  %v6527_v48 = vpop.f32.mrb[164].mxu1 }
 0x4ba   : > { %v6230_v32 = vpop.f32.mrb[36].mxu0  ;;  %v6529_v40 = vpop.f32.mrb[165].mxu1 }
 0x4bb   : > { %v8499_v31 = vadd.f32 %v8498_v59, %v6230_v32  ;;  %v6232_v45 = vpop.f32.mrb[37].mxu0  ;;  %v6530_v29 = vpop.f32.mrb[166].mxu1  ;;  %v8510_v59 = vadd.f32 %v10989_v12, %v10798_v35  ;;  %v7111_v35 = vld [vmem:[%s11794_s3 + $0x20] sm:$0xff] }
 0x4bc   : > { %v6233_v56 = vpop.f32.mrb[38].mxu0  ;;  %v6532_v51 = vpop.f32.mrb[167].mxu1 }
 0x4bd   : > { %v8502_v43 = vadd.f32 %v8501_v11, %v6233_v56  ;;  %v11129_v38 = vadd.f32 %v8499_v31, %v6519_v27  ;;  %v6235_v46 = vpop.f32.mrb[39].mxu0  ;;  %v8507_v27 = vadd.f32 %v10989_v12, %v10791_v22  ;;  %v7112_v51 = vld [vmem:[%s11794_s3 + $0x28] sm:$0xff] }
 0x4bf   : > { %6721 = vst.msk [vmem:[%s9742_s30 + $0x90] sm:$0xff] %vm6702_vm1, %v11129_v38  ;;  %v11134_v60 = vadd.f32 %v8502_v43, %v6522_v57 }
 0x4c1   : > { %6722 = vst.msk [vmem:[%s9742_s30 + $0x98] sm:$0xff] %vm6702_vm1, %v11134_v60  ;;  %v6535_v4 = vpop.f32.mrb[168].mxu1 }
 0x4c2   : > { %v6238_v6 = vpop.f32.mrb[40].mxu0  ;;  %v6537_v44 = vpop.f32.mrb[169].mxu1 }
 0x4c3   : > { %v8505_v41 = vadd.f32 %v8504_v54, %v6238_v6  ;;  %v6240_v55 = vpop.f32.mrb[41].mxu0  ;;  %v6538_v28 = vpop.f32.mrb[170].mxu1  ;;  %v11165_v6 = vpack.c.bf16 %v7112_v51, %v7111_v35  ;;  %v8516_v44 = vadd.f32 %v10989_v12, %v10810_v53 }
 0x4c4   : > { %v6241_v9 = vpop.f32.mrb[42].mxu0  ;;  %v6540_v26 = vpop.f32.mrb[171].mxu1  ;;  %v8519_v55 = vadd.f32 %v10989_v12, %v10815_v61 }
 0x4c5   : > { %v8508_v57 = vadd.f32 %v8507_v27, %v6241_v9  ;;  %v11143_v5 = vadd.f32 %v8505_v41, %v6527_v48  ;;  %v6243_v36 = vpop.f32.mrb[43].mxu0  ;;  %v8513_v48 = vadd.f32 %v10989_v12, %v10803_v42  ;;  %8398 = vmatpush3.bf16.msra.mxu1 %v11165_v6 }
 0x4c6   : > { %8399 = vmatprep.subr.bf16.mxu1 %v11841_v24 }
 0x4c7   : > { %6723 = vst.msk [vmem:[%s9742_s30 + $0xa0] sm:$0xff] %vm6702_vm1, %v11143_v5  ;;  %v11148_v58 = vadd.f32 %v8508_v57, %v6530_v29 }
 0x4c9   : > { %6724 = vst.msk [vmem:[%s9742_s30 + $0xa8] sm:$0xff] %vm6702_vm1, %v11148_v58  ;;  %v6543_v22 = vpop.f32.mrb[172].mxu1 }
 0x4ca   : > { %v6246_v32 = vpop.f32.mrb[44].mxu0  ;;  %v6545_v40 = vpop.f32.mrb[173].mxu1 }
 0x4cb   : > { %v8511_v11 = vadd.f32 %v8510_v59, %v6246_v32  ;;  %v6248_v31 = vpop.f32.mrb[45].mxu0  ;;  %v6546_v45 = vpop.f32.mrb[174].mxu1 }
 0x4cc   : > { %v6249_v56 = vpop.f32.mrb[46].mxu0  ;;  %v6548_v29 = vpop.f32.mrb[175].mxu1 }
 0x4cd   : > { %v8514_v43 = vadd.f32 %v8513_v48, %v6249_v56  ;;  %v11163_v46 = vadd.f32 %v8511_v11, %v6535_v4  ;;  %v6251_v54 = vpop.f32.mrb[47].mxu0  ;;  %v8522_v48 = vadd.f32 %v10989_v12, %v10822_v8 }
 0x4cf   : > { %6725 = vst.msk [vmem:[%s9742_s30 + $0xb0] sm:$0xff] %vm6702_vm1, %v11163_v46  ;;  %v11170_v42 = vadd.f32 %v8514_v43, %v6538_v28 }
 0x4d1   : > { %6726 = vst.msk [vmem:[%s9742_s30 + $0xb8] sm:$0xff] %vm6702_vm1, %v11170_v42  ;;  %v6551_v4 = vpop.f32.mrb[176].mxu1 }
 0x4d2   : > { %v6254_v27 = vpop.f32.mrb[48].mxu0  ;;  %v6553_v41 = vpop.f32.mrb[177].mxu1 }
 0x4d3   : > { %v8517_v28 = vadd.f32 %v8516_v44, %v6254_v27  ;;  %v6256_v9 = vpop.f32.mrb[49].mxu0  ;;  %v6554_v26 = vpop.f32.mrb[178].mxu1  ;;  %v8528_v27 = vadd.f32 %v10989_v12, %v10832_v2 }
 0x4d4   : > { %v6257_v57 = vpop.f32.mrb[50].mxu0  ;;  %v6556_v36 = vpop.f32.mrb[179].mxu1 }
 0x4d5   : > { %v8520_v59 = vadd.f32 %v8519_v55, %v6257_v57  ;;  %v11181_v32 = vadd.f32 %v8517_v28, %v6543_v22  ;;  %v6259_v40 = vpop.f32.mrb[51].mxu0  ;;  %v8525_v22 = vadd.f32 %v10989_v12, %v10827_v15 }
 0x4d7   : > { %6727 = vst.msk [vmem:[%s9742_s30 + $0xc0] sm:$0xff] %vm6702_vm1, %v11181_v32  ;;  %v11186_v53 = vadd.f32 %v8520_v59, %v6546_v45 }
 0x4d9   : > { %6728 = vst.msk [vmem:[%s9742_s30 + $0xc8] sm:$0xff] %vm6702_vm1, %v11186_v53  ;;  %v6559_v61 = vpop.f32.mrb[180].mxu1 }
 0x4da   : > { %v6262_v11 = vpop.f32.mrb[52].mxu0  ;;  %v6561_v31 = vpop.f32.mrb[181].mxu1 }
 0x4db   : > { %v8523_v56 = vadd.f32 %v8522_v48, %v6262_v11  ;;  %v6264_v29 = vpop.f32.mrb[53].mxu0  ;;  %v6562_v35 = vpop.f32.mrb[182].mxu1  ;;  %v8534_v11 = vadd.f32 %v10989_v12, %v10840_v13 }
 0x4dc   : > { %v6265_v51 = vpop.f32.mrb[54].mxu0  ;;  %v6564_v43 = vpop.f32.mrb[183].mxu1 }
 0x4dd   : > { %v8526_v45 = vadd.f32 %v8525_v22, %v6265_v51  ;;  %v11195_v54 = vadd.f32 %v8523_v56, %v6551_v4  ;;  %v6267_v44 = vpop.f32.mrb[55].mxu0  ;;  %v8531_v4 = vadd.f32 %v10989_v12, %v10836_v7 }
 0x4df   : > { %6729 = vst.msk [vmem:[%s9742_s30 + $0xd0] sm:$0xff] %vm6702_vm1, %v11195_v54  ;;  %v11200_v8 = vadd.f32 %v8526_v45, %v6554_v26 }
 0x4e1   : > { %6730 = vst.msk [vmem:[%s9742_s30 + $0xd8] sm:$0xff] %vm6702_vm1, %v11200_v8  ;;  %v6567_v15 = vpop.f32.mrb[184].mxu1 }
 0x4e2   : > { %v6270_v41 = vpop.f32.mrb[56].mxu0  ;;  %v6569_v55 = vpop.f32.mrb[185].mxu1 }
 0x4e3   : > { %v8529_v28 = vadd.f32 %v8528_v27, %v6270_v41  ;;  %v6272_v9 = vpop.f32.mrb[57].mxu0  ;;  %v6570_v57 = vpop.f32.mrb[186].mxu1  ;;  %v8540_v41 = vadd.f32 %v10989_v12, %v10848_v33 }
 0x4e4   : > { %v6273_v36 = vpop.f32.mrb[58].mxu0  ;;  %v6572_v59 = vpop.f32.mrb[187].mxu1 }
 0x4e5   : > { %v8532_v26 = vadd.f32 %v8531_v4, %v6273_v36  ;;  %v11209_v40 = vadd.f32 %v8529_v28, %v6559_v61  ;;  %v6275_v48 = vpop.f32.mrb[59].mxu0  ;;  %v8537_v61 = vadd.f32 %v10989_v12, %v10844_v19 }
 0x4e7   : > { %6731 = vst.msk [vmem:[%s9742_s30 + $0xe0] sm:$0xff] %vm6702_vm1, %v11209_v40  ;;  %v11214_v2 = vadd.f32 %v8532_v26, %v6562_v35 }
 0x4e9   : > { %6732 = vst.msk [vmem:[%s9742_s30 + $0xe8] sm:$0xff] %vm6702_vm1, %v11214_v2  ;;  %v6575_v7 = vpop.f32.mrb[188].mxu1 }
 0x4ea   : > { %v6278_v31 = vpop.f32.mrb[60].mxu0  ;;  %v6577_v22 = vpop.f32.mrb[189].mxu1 }
 0x4eb   : > { %v8535_v56 = vadd.f32 %v8534_v11, %v6278_v31  ;;  %v6280_v29 = vpop.f32.mrb[61].mxu0  ;;  %v6578_v51 = vpop.f32.mrb[190].mxu1  ;;  %v8546_v22 = vadd.f32 %v10989_v12, %v10856_v0 }
 0x4ec   : > { %v6281_v43 = vpop.f32.mrb[62].mxu0  ;;  %v6580_v45 = vpop.f32.mrb[191].mxu1 }
 0x4ed   : > { %v8538_v35 = vadd.f32 %v8537_v61, %v6281_v43  ;;  %v11223_v44 = vadd.f32 %v8535_v56, %v6567_v15  ;;  %v6283_v27 = vpop.f32.mrb[63].mxu0  ;;  %v8543_v15 = vadd.f32 %v10989_v12, %v10852_v14 }
 0x4ef   : > { %6733 = vst.msk [vmem:[%s9742_s30 + $0xf0] sm:$0xff] %vm6702_vm1, %v11223_v44  ;;  %v11228_v13 = vadd.f32 %v8538_v35, %v6570_v57  ;;  %v8549_v35 = vadd.f32 %v10989_v12, %v10860_v50 }
 0x4f1   : > { %6734 = vst.msk [vmem:[%s9742_s30 + $0xf8] sm:$0xff] %vm6702_vm1, %v11228_v13  ;;  %v6583_v19 = vpop.f32.mrb[192].mxu1 }
 0x4f2   : > { %v6286_v55 = vpop.f32.mrb[64].mxu0  ;;  %v6585_v4 = vpop.f32.mrb[193].mxu1 }
 0x4f3   : > { %v8541_v28 = vadd.f32 %v8540_v41, %v6286_v55  ;;  %v6288_v9 = vpop.f32.mrb[65].mxu0  ;;  %v6586_v36 = vpop.f32.mrb[194].mxu1 }
 0x4f4   : > { %v6289_v59 = vpop.f32.mrb[66].mxu0  ;;  %v6588_v26 = vpop.f32.mrb[195].mxu1 }
 0x4f5   : > { %v8544_v57 = vadd.f32 %v8543_v15, %v6289_v59  ;;  %v8542_v48 = vadd.f32 %v8541_v28, %v6575_v7  ;;  %v6291_v11 = vpop.f32.mrb[67].mxu0 }
 0x4f7   : > { %6735 = vst.msk [vmem:[%s9742_s30 + $0x100] sm:$0xff] %vm6702_vm1, %v8542_v48  ;;  %v6937_v33 = vmul.f32 %v8542_v48, %v8542_v48  ;;  %v8545_v31 = vadd.f32 %v8544_v57, %v6578_v51  ;;  %v6836_v61 = vsel %vm6702_vm1, %v8542_v48, 0.0 }
 0x4f9   : > { %6736 = vst.msk [vmem:[%s9742_s30 + $0x108] sm:$0xff] %vm6702_vm1, %v8545_v31  ;;  %v6837_v14 = vsel %vm6702_vm1, %v8545_v31, 0.0  ;;  %v6938_v56 = vmul.f32 %v8545_v31, %v8545_v31  ;;  %v6591_v29 = vpop.f32.mrb[196].mxu1  ;;  %v7038_v51 = vsel %vm6702_vm1, %v6937_v33, 0.0  ;;  %v8552_v33 = vadd.f32 %v10989_v12, %v10864_v52 }
 0x4fa   : > { %v6838_v43 = vadd.f32 %v6837_v14, %v6836_v61  ;;  %v6294_v45 = vpop.f32.mrb[68].mxu0  ;;  %v6593_v7 = vpop.f32.mrb[197].mxu1 }
 0x4fb   : > { %v7039_v27 = vsel %vm6702_vm1, %v6938_v56, 0.0  ;;  %v8547_v0 = vadd.f32 %v8546_v22, %v6294_v45  ;;  %v6296_v41 = vpop.f32.mrb[69].mxu0  ;;  %v6594_v55 = vpop.f32.mrb[198].mxu1 }
 0x4fc   : > { %v7040_v4 = vadd.f32 %v7039_v27, %v7038_v51  ;;  %v6297_v15 = vpop.f32.mrb[70].mxu0  ;;  %v6596_v28 = vpop.f32.mrb[199].mxu1 }
 0x4fd   : > { %v8550_v9 = vadd.f32 %v8549_v35, %v6297_v15  ;;  %v8548_v59 = vadd.f32 %v8547_v0, %v6583_v19  ;;  %v6299_v26 = vpop.f32.mrb[71].mxu0 }
 0x4ff   : > { %6737 = vst.msk [vmem:[%s9742_s30 + $0x110] sm:$0xff] %vm6702_vm1, %v8548_v59  ;;  %v6839_v57 = vsel %vm6702_vm1, %v8548_v59, 0.0  ;;  %v6939_v48 = vmul.f32 %v8548_v59, %v8548_v59  ;;  %v8551_v50 = vadd.f32 %v8550_v9, %v6586_v36  ;;  %v8555_v36 = vadd.f32 %v10989_v12, %v10868_v1 }
 0x500   : > { %v6840_v11 = vadd.f32 %v6839_v57, %v6838_v43  ;;  %v8558_v1 = vadd.f32 %v10989_v12, %v10872_v18 }
 0x501   : > { %v7041_v31 = vsel %vm6702_vm1, %v6939_v48, 0.0  ;;  %6738 = vst.msk [vmem:[%s9742_s30 + $0x118] sm:$0xff] %vm6702_vm1, %v8551_v50  ;;  %v6841_v22 = vsel %vm6702_vm1, %v8551_v50, 0.0  ;;  %v6940_v61 = vmul.f32 %v8551_v50, %v8551_v50  ;;  %v6599_v14 = vpop.f32.mrb[200].mxu1 }
 0x502   : > { %v7042_v19 = vadd.f32 %v7041_v31, %v7040_v4  ;;  %v6842_v56 = vadd.f32 %v6841_v22, %v6840_v11  ;;  %v6302_v45 = vpop.f32.mrb[72].mxu0  ;;  %v6601_v7 = vpop.f32.mrb[201].mxu1 }
 0x503   : > { %v7043_v43 = vsel %vm6702_vm1, %v6940_v61, 0.0  ;;  %v8553_v35 = vadd.f32 %v8552_v33, %v6302_v45  ;;  %v6304_v52 = vpop.f32.mrb[73].mxu0  ;;  %v6602_v51 = vpop.f32.mrb[202].mxu1 }
 0x504   : > { %v7044_v27 = vadd.f32 %v7043_v43, %v7042_v19  ;;  %v6305_v0 = vpop.f32.mrb[74].mxu0  ;;  %v6604_v41 = vpop.f32.mrb[203].mxu1 }
 0x505   : > { %v8556_v15 = vadd.f32 %v8555_v36, %v6305_v0  ;;  %v8554_v28 = vadd.f32 %v8553_v35, %v6591_v29  ;;  %v6307_v9 = vpop.f32.mrb[75].mxu0 }
 0x507   : > { %6739 = vst.msk [vmem:[%s9742_s30 + $0x120] sm:$0xff] %vm6702_vm1, %v8554_v28  ;;  %v6843_v4 = vsel %vm6702_vm1, %v8554_v28, 0.0  ;;  %v6941_v59 = vmul.f32 %v8554_v28, %v8554_v28  ;;  %v8557_v26 = vadd.f32 %v8556_v15, %v6594_v55  ;;  %v8561_v55 = vadd.f32 %v10989_v12, %v10876_v25  ;;  %v11850_v25 = vld [vmem:[#allocation17_spill] sm:$0xff] }
 0x508   : > { %v6844_v57 = vadd.f32 %v6843_v4, %v6842_v56  ;;  %v8564_v9 = vadd.f32 %v10989_v12, %v11850_v25 }
 0x509   : > { %v7045_v48 = vsel %vm6702_vm1, %v6941_v59, 0.0  ;;  %6740 = vst.msk [vmem:[%s9742_s30 + $0x128] sm:$0xff] %vm6702_vm1, %v8557_v26  ;;  %v6845_v50 = vsel %vm6702_vm1, %v8557_v26, 0.0  ;;  %v6942_v11 = vmul.f32 %v8557_v26, %v8557_v26  ;;  %v6607_v33 = vpop.f32.mrb[204].mxu1 }
 0x50a   : > { %v7046_v29 = vadd.f32 %v7045_v48, %v7044_v27  ;;  %v6846_v31 = vadd.f32 %v6845_v50, %v6844_v57  ;;  %v6310_v22 = vpop.f32.mrb[76].mxu0  ;;  %v6609_v61 = vpop.f32.mrb[205].mxu1 }
 0x50b   : > { %v7047_v19 = vsel %vm6702_vm1, %v6942_v11, 0.0  ;;  %v8559_v56 = vadd.f32 %v8558_v1, %v6310_v22  ;;  %v6312_v18 = vpop.f32.mrb[77].mxu0  ;;  %v6610_v45 = vpop.f32.mrb[206].mxu1  ;;  %v11851_v11 = vld [vmem:[#allocation18_spill] sm:$0xff] }
 0x50c   : > { %v7048_v7 = vadd.f32 %v7047_v19, %v7046_v29  ;;  %v6313_v36 = vpop.f32.mrb[78].mxu0  ;;  %v6612_v43 = vpop.f32.mrb[207].mxu1 }
 0x50d   : > { %v8562_v35 = vadd.f32 %v8561_v55, %v6313_v36  ;;  %v8560_v52 = vadd.f32 %v8559_v56, %v6599_v14  ;;  %v6315_v0 = vpop.f32.mrb[79].mxu0 }
 0x50f   : > { %6741 = vst.msk [vmem:[%s9742_s30 + $0x130] sm:$0xff] %vm6702_vm1, %v8560_v52  ;;  %v6847_v27 = vsel %vm6702_vm1, %v8560_v52, 0.0  ;;  %v6943_v41 = vmul.f32 %v8560_v52, %v8560_v52  ;;  %v8563_v15 = vadd.f32 %v8562_v35, %v6602_v51  ;;  %v8567_v51 = vadd.f32 %v10989_v12, %v11851_v11 }
 0x510   : > { %v6848_v28 = vadd.f32 %v6847_v27, %v6846_v31  ;;  %v11852_v27 = vld [vmem:[#allocation19_spill] sm:$0xff] }
 0x511   : > { %v7049_v4 = vsel %vm6702_vm1, %v6943_v41, 0.0  ;;  %6742 = vst.msk [vmem:[%s9742_s30 + $0x138] sm:$0xff] %vm6702_vm1, %v8563_v15  ;;  %v6849_v59 = vsel %vm6702_vm1, %v8563_v15, 0.0  ;;  %v6944_v26 = vmul.f32 %v8563_v15, %v8563_v15  ;;  %v6615_v57 = vpop.f32.mrb[208].mxu1  ;;  %v8570_v41 = vadd.f32 %v10989_v12, %v11852_v27 }
 0x512   : > { %v7050_v14 = vadd.f32 %v7049_v4, %v7048_v7  ;;  %v6850_v1 = vadd.f32 %v6849_v59, %v6848_v28  ;;  %v6318_v48 = vpop.f32.mrb[80].mxu0  ;;  %v6617_v50 = vpop.f32.mrb[209].mxu1 }
 0x513   : > { %v7051_v29 = vsel %vm6702_vm1, %v6944_v26, 0.0  ;;  %v8565_v31 = vadd.f32 %v8564_v9, %v6318_v48  ;;  %v6320_v22 = vpop.f32.mrb[81].mxu0  ;;  %v6618_v61 = vpop.f32.mrb[210].mxu1 }
 0x514   : > { %v7052_v55 = vadd.f32 %v7051_v29, %v7050_v14  ;;  %v6321_v19 = vpop.f32.mrb[82].mxu0  ;;  %v6620_v56 = vpop.f32.mrb[211].mxu1  ;;  %v11853_v14 = vld [vmem:[#allocation20_spill] sm:$0xff] }
 0x515   : > { %v8568_v18 = vadd.f32 %v8567_v51, %v6321_v19  ;;  %v8566_v36 = vadd.f32 %v8565_v31, %v6607_v33  ;;  %v6323_v43 = vpop.f32.mrb[83].mxu0  ;;  %v8573_v48 = vadd.f32 %v10989_v12, %v11853_v14  ;;  %v7113_v22 = vld [vmem:[%s11794_s3 + $0x30] sm:$0xff]  ;;  %v11855_v14 = vld [vmem:[#allocation22_spill] sm:$0xff] }
 0x516   : > { %v9590_v43 = vmov 0.0  }
 0x517   : > { %6743 = vst.msk [vmem:[%s9742_s30 + $0x140] sm:$0xff] %vm6702_vm1, %v8566_v36  ;;  %v6851_v7 = vsel %vm6702_vm1, %v8566_v36, 0.0  ;;  %v6945_v35 = vmul.f32 %v8566_v36, %v8566_v36  ;;  %v8569_v52 = vadd.f32 %v8568_v18, %v6610_v45  ;;  %8368 = vmatprep.mubr.msk.f32.mxu1 %vm9589_vm2, %v9590_v43 }
 0x518   : > { %v6852_v0 = vadd.f32 %v6851_v7, %v6850_v1 }
 0x519   : > { %v7053_v15 = vsel %vm6702_vm1, %v6945_v35, 0.0  ;;  %6744 = vst.msk [vmem:[%s9742_s30 + $0x148] sm:$0xff] %vm6702_vm1, %v8569_v52  ;;  %v6853_v28 = vsel %vm6702_vm1, %v8569_v52, 0.0  ;;  %v6946_v25 = vmul.f32 %v8569_v52, %v8569_v52  ;;  %v6623_v9 = vpop.f32.mrb[212].mxu1 }
 0x51a   : > { %v7054_v33 = vadd.f32 %v7053_v15, %v7052_v55  ;;  %v6854_v4 = vadd.f32 %v6853_v28, %v6852_v0  ;;  %v6326_v59 = vpop.f32.mrb[84].mxu0  ;;  %v6625_v26 = vpop.f32.mrb[213].mxu1  ;;  %v7114_v55 = vld [vmem:[%s11794_s3 + $0x38] sm:$0xff] }
 0x51b   : > { %v7055_v45 = vsel %vm6702_vm1, %v6946_v25, 0.0  ;;  %v8571_v1 = vadd.f32 %v8570_v41, %v6326_v59  ;;  %v6328_v50 = vpop.f32.mrb[85].mxu0  ;;  %v6626_v11 = vpop.f32.mrb[214].mxu1  ;;  %v11303_v36 = vpack.c.bf16 %v7114_v55, %v7113_v22 }
 0x51c   : > { %v7056_v51 = vadd.f32 %v7055_v45, %v7054_v33  ;;  %v6329_v29 = vpop.f32.mrb[86].mxu0  ;;  %v6628_v31 = vpop.f32.mrb[215].mxu1 }
 0x51d   : > { %v8574_v19 = vadd.f32 %v8573_v48, %v6329_v29  ;;  %v8572_v56 = vadd.f32 %v8571_v1, %v6615_v57  ;;  %v6331_v18 = vpop.f32.mrb[87].mxu0  ;;  %8401 = vmatpush3.bf16.msra.mxu1 %v11303_v36  ;;  %v11854_v57 = vld [vmem:[#allocation21_spill] sm:$0xff] }
 0x51e   : > { %8402 = vmatprep.subr.bf16.mxu1 %v11841_v24  ;;  %v8576_v27 = vadd.f32 %v10989_v12, %v11854_v57 }
 0x51f   : > { %6745 = vst.msk [vmem:[%s9742_s30 + $0x150] sm:$0xff] %vm6702_vm1, %v8572_v56  ;;  %v6855_v7 = vsel %vm6702_vm1, %v8572_v56, 0.0  ;;  %v6947_v35 = vmul.f32 %v8572_v56, %v8572_v56  ;;  %v8575_v52 = vadd.f32 %v8574_v19, %v6618_v61 }
 0x520   : > { %v6856_v0 = vadd.f32 %v6855_v7, %v6854_v4  ;;  %v8579_v4 = vadd.f32 %v10989_v12, %v11855_v14 }
 0x521   : > { %v7057_v41 = vsel %vm6702_vm1, %v6947_v35, 0.0  ;;  %6746 = vst.msk [vmem:[%s9742_s30 + $0x158] sm:$0xff] %vm6702_vm1, %v8575_v52  ;;  %v6857_v15 = vsel %vm6702_vm1, %v8575_v52, 0.0  ;;  %v6948_v28 = vmul.f32 %v8575_v52, %v8575_v52  ;;  %v6631_v25 = vpop.f32.mrb[216].mxu1  ;;  %v11856_v52 = vld [vmem:[#allocation23_spill] sm:$0xff] }
 0x522   : > { %v7058_v33 = vadd.f32 %v7057_v41, %v7056_v51  ;;  %v6858_v59 = vadd.f32 %v6857_v15, %v6856_v0  ;;  %v6334_v61 = vpop.f32.mrb[88].mxu0  ;;  %v6633_v26 = vpop.f32.mrb[217].mxu1  ;;  %v8582_v0 = vadd.f32 %v10989_v12, %v11856_v52 }
 0x523   : > { %v7059_v48 = vsel %vm6702_vm1, %v6948_v28, 0.0  ;;  %v8577_v45 = vadd.f32 %v8576_v27, %v6334_v61  ;;  %v6336_v1 = vpop.f32.mrb[89].mxu0  ;;  %v6634_v50 = vpop.f32.mrb[218].mxu1  ;;  %v11857_v26 = vld [vmem:[#allocation24_spill] sm:$0xff] }
 0x524   : > { %v7060_v29 = vadd.f32 %v7059_v48, %v7058_v33  ;;  %v6337_v31 = vpop.f32.mrb[90].mxu0  ;;  %v6636_v22 = vpop.f32.mrb[219].mxu1 }
 0x525   : > { %v8580_v55 = vadd.f32 %v8579_v4, %v6337_v31  ;;  %v8578_v19 = vadd.f32 %v8577_v45, %v6623_v9  ;;  %v6339_v56 = vpop.f32.mrb[91].mxu0 }
 0x527   : > { %6747 = vst.msk [vmem:[%s9742_s30 + $0x160] sm:$0xff] %vm6702_vm1, %v8578_v19  ;;  %v6859_v51 = vsel %vm6702_vm1, %v8578_v19, 0.0  ;;  %v6949_v18 = vmul.f32 %v8578_v19, %v8578_v19  ;;  %v8581_v7 = vadd.f32 %v8580_v55, %v6626_v11  ;;  %v8585_v11 = vadd.f32 %v10989_v12, %v11857_v26 }
 0x528   : > { %v6860_v35 = vadd.f32 %v6859_v51, %v6858_v59 }
 0x529   : > { %v7061_v57 = vsel %vm6702_vm1, %v6949_v18, 0.0  ;;  %6748 = vst.msk [vmem:[%s9742_s30 + $0x168] sm:$0xff] %vm6702_vm1, %v8581_v7  ;;  %v6861_v27 = vsel %vm6702_vm1, %v8581_v7, 0.0  ;;  %v6950_v41 = vmul.f32 %v8581_v7, %v8581_v7  ;;  %v6639_v15 = vpop.f32.mrb[220].mxu1  ;;  %v11858_v7 = vld [vmem:[#allocation25_spill] sm:$0xff] }
 0x52a   : > { %v7062_v9 = vadd.f32 %v7061_v57, %v7060_v29  ;;  %v6862_v28 = vadd.f32 %v6861_v27, %v6860_v35  ;;  %v6342_v33 = vpop.f32.mrb[92].mxu0  ;;  %v6641_v61 = vpop.f32.mrb[221].mxu1  ;;  %v8588_v35 = vadd.f32 %v10989_v12, %v11858_v7 }
 0x52b   : > { %v7063_v59 = vsel %vm6702_vm1, %v6950_v41, 0.0  ;;  %v8583_v14 = vadd.f32 %v8582_v0, %v6342_v33  ;;  %v6344_v4 = vpop.f32.mrb[93].mxu0  ;;  %v6642_v48 = vpop.f32.mrb[222].mxu1  ;;  %v11859_v61 = vld [vmem:[#allocation26_spill] sm:$0xff] }
 0x52c   : > { %v7064_v45 = vadd.f32 %v7063_v59, %v7062_v9  ;;  %v6345_v1 = vpop.f32.mrb[94].mxu0  ;;  %v6644_v31 = vpop.f32.mrb[223].mxu1 }
 0x52d   : > { %v8586_v22 = vadd.f32 %v8585_v11, %v6345_v1  ;;  %v8584_v55 = vadd.f32 %v8583_v14, %v6631_v25  ;;  %v6347_v19 = vpop.f32.mrb[95].mxu0 }
 0x52f   : > { %6749 = vst.msk [vmem:[%s9742_s30 + $0x170] sm:$0xff] %vm6702_vm1, %v8584_v55  ;;  %v6863_v29 = vsel %vm6702_vm1, %v8584_v55, 0.0  ;;  %v6951_v56 = vmul.f32 %v8584_v55, %v8584_v55  ;;  %v8587_v51 = vadd.f32 %v8586_v22, %v6634_v50  ;;  %v8591_v50 = vadd.f32 %v10989_v12, %v11859_v61  ;;  %v11348_v12 = vld [vmem:[#allocation5] ss:$0 sm:$0xff] }
 0x530   : > { %v6864_v18 = vadd.f32 %v6863_v29, %v6862_v28 }
 0x531   : > { %v7065_v52 = vsel %vm6702_vm1, %v6951_v56, 0.0  ;;  %6750 = vst.msk [vmem:[%s9742_s30 + $0x178] sm:$0xff] %vm6702_vm1, %v8587_v51  ;;  %v6865_v0 = vsel %vm6702_vm1, %v8587_v51, 0.0  ;;  %v6952_v57 = vmul.f32 %v8587_v51, %v8587_v51  ;;  %v6647_v27 = vpop.f32.mrb[224].mxu1  ;;  %v11860_v51 = vld [vmem:[#allocation27_spill] sm:$0xff] }
 0x532   : > { %v7066_v25 = vadd.f32 %v7065_v52, %v7064_v45  ;;  %v6866_v41 = vadd.f32 %v6865_v0, %v6864_v18  ;;  %v6350_v9 = vpop.f32.mrb[96].mxu0  ;;  %v6649_v33 = vpop.f32.mrb[225].mxu1  ;;  %v8594_v18 = vadd.f32 %v11348_v12, %v11860_v51 }
 0x533   : > { %v7067_v28 = vsel %vm6702_vm1, %v6952_v57, 0.0  ;;  %v8589_v26 = vadd.f32 %v8588_v35, %v6350_v9  ;;  %v6352_v11 = vpop.f32.mrb[97].mxu0  ;;  %v6650_v59 = vpop.f32.mrb[226].mxu1 }
 0x534   : > { %v7068_v14 = vadd.f32 %v7067_v28, %v7066_v25  ;;  %v6353_v4 = vpop.f32.mrb[98].mxu0  ;;  %v6652_v1 = vpop.f32.mrb[227].mxu1 }
 0x535   : > { %v8592_v31 = vadd.f32 %v8591_v50, %v6353_v4  ;;  %v8590_v22 = vadd.f32 %v8589_v26, %v6639_v15  ;;  %v6355_v55 = vpop.f32.mrb[99].mxu0 }
 0x537   : > { %6751 = vst.msk [vmem:[%s9742_s30 + $0x180] sm:$0xff] %vm6702_vm1, %v8590_v22  ;;  %v6867_v45 = vsel %vm6702_vm1, %v8590_v22, 0.0  ;;  %v6953_v19 = vmul.f32 %v8590_v22, %v8590_v22  ;;  %v8593_v29 = vadd.f32 %v8592_v31, %v6642_v48  ;;  %v11861_v48 = vld [vmem:[#allocation28_spill] sm:$0xff] }
 0x538   : > { %v6868_v56 = vadd.f32 %v6867_v45, %v6866_v41  ;;  %v8597_v41 = vadd.f32 %v11348_v12, %v11861_v48 }
 0x539   : > { %v7069_v7 = vsel %vm6702_vm1, %v6953_v19, 0.0  ;;  %6752 = vst.msk [vmem:[%s9742_s30 + $0x188] sm:$0xff] %vm6702_vm1, %v8593_v29  ;;  %v6869_v35 = vsel %vm6702_vm1, %v8593_v29, 0.0  ;;  %v6954_v15 = vmul.f32 %v8593_v29, %v8593_v29  ;;  %v6655_v52 = vpop.f32.mrb[228].mxu1  ;;  %v11862_v29 = vld [vmem:[#allocation29_spill] sm:$0xff] }
 0x53a   : > { %v7070_v0 = vadd.f32 %v7069_v7, %v7068_v14  ;;  %v6870_v57 = vadd.f32 %v6869_v35, %v6868_v56  ;;  %v6358_v25 = vpop.f32.mrb[100].mxu0  ;;  %v6657_v9 = vpop.f32.mrb[229].mxu1  ;;  %v8600_v56 = vadd.f32 %v11348_v12, %v11862_v29 }
 0x53b   : > { %v7071_v33 = vsel %vm6702_vm1, %v6954_v15, 0.0  ;;  %v8595_v61 = vadd.f32 %v8594_v18, %v6358_v25  ;;  %v6360_v50 = vpop.f32.mrb[101].mxu0  ;;  %v6658_v28 = vpop.f32.mrb[230].mxu1  ;;  %v11863_v9 = vld [vmem:[#allocation30_spill] sm:$0xff] }
 0x53c   : > { %v7072_v26 = vadd.f32 %v7071_v33, %v7070_v0  ;;  %v6361_v11 = vpop.f32.mrb[102].mxu0  ;;  %v6660_v4 = vpop.f32.mrb[231].mxu1 }
 0x53d   : > { %v8598_v1 = vadd.f32 %v8597_v41, %v6361_v11  ;;  %v8596_v31 = vadd.f32 %v8595_v61, %v6647_v27  ;;  %v6363_v22 = vpop.f32.mrb[103].mxu0 }
 0x53f   : > { %6753 = vst.msk [vmem:[%s9742_s30 + $0x190] sm:$0xff] %vm6702_vm1, %v8596_v31  ;;  %v6871_v14 = vsel %vm6702_vm1, %v8596_v31, 0.0  ;;  %v6955_v55 = vmul.f32 %v8596_v31, %v8596_v31  ;;  %v8599_v45 = vadd.f32 %v8598_v1, %v6650_v59  ;;  %v8603_v59 = vadd.f32 %v11348_v12, %v11863_v9 }
 0x540   : > { %v6872_v19 = vadd.f32 %v6871_v14, %v6870_v57 }
 0x541   : > { %v7073_v51 = vsel %vm6702_vm1, %v6955_v55, 0.0  ;;  %6754 = vst.msk [vmem:[%s9742_s30 + $0x198] sm:$0xff] %vm6702_vm1, %v8599_v45  ;;  %v6873_v18 = vsel %vm6702_vm1, %v8599_v45, 0.0  ;;  %v6956_v7 = vmul.f32 %v8599_v45, %v8599_v45  ;;  %v6663_v35 = vpop.f32.mrb[232].mxu1  ;;  %v11864_v45 = vld [vmem:[#allocation31_spill] sm:$0xff] }
 0x542   : > { %v7074_v27 = vadd.f32 %v7073_v51, %v7072_v26  ;;  %v6874_v15 = vadd.f32 %v6873_v18, %v6872_v19  ;;  %v6366_v0 = vpop.f32.mrb[104].mxu0  ;;  %v6665_v25 = vpop.f32.mrb[233].mxu1  ;;  %v8606_v19 = vadd.f32 %v11348_v12, %v11864_v45 }
 0x543   : > { %v7075_v57 = vsel %vm6702_vm1, %v6956_v7, 0.0  ;;  %v8601_v48 = vadd.f32 %v8600_v56, %v6366_v0  ;;  %v6368_v41 = vpop.f32.mrb[105].mxu0  ;;  %v6666_v33 = vpop.f32.mrb[234].mxu1  ;;  %v11865_v25 = vld [vmem:[#allocation32_spill] sm:$0xff] }
 0x544   : > { %v7076_v61 = vadd.f32 %v7075_v57, %v7074_v27  ;;  %v6369_v50 = vpop.f32.mrb[106].mxu0  ;;  %v6668_v11 = vpop.f32.mrb[235].mxu1 }
 0x545   : > { %v8604_v4 = vadd.f32 %v8603_v59, %v6369_v50  ;;  %v8602_v1 = vadd.f32 %v8601_v48, %v6655_v52  ;;  %v6371_v31 = vpop.f32.mrb[107].mxu0 }
 0x547   : > { %6755 = vst.msk [vmem:[%s9742_s30 + $0x1a0] sm:$0xff] %vm6702_vm1, %v8602_v1  ;;  %v6875_v26 = vsel %vm6702_vm1, %v8602_v1, 0.0  ;;  %v6957_v22 = vmul.f32 %v8602_v1, %v8602_v1  ;;  %v8605_v14 = vadd.f32 %v8604_v4, %v6658_v28  ;;  %v8609_v28 = vadd.f32 %v11348_v12, %v11865_v25 }
 0x548   : > { %v6876_v55 = vadd.f32 %v6875_v26, %v6874_v15 }
 0x549   : > { %v7077_v29 = vsel %vm6702_vm1, %v6957_v22, 0.0  ;;  %6756 = vst.msk [vmem:[%s9742_s30 + $0x1a8] sm:$0xff] %vm6702_vm1, %v8605_v14  ;;  %v6877_v56 = vsel %vm6702_vm1, %v8605_v14, 0.0  ;;  %v6958_v51 = vmul.f32 %v8605_v14, %v8605_v14  ;;  %v6671_v18 = vpop.f32.mrb[236].mxu1  ;;  %v11866_v14 = vld [vmem:[#allocation33_spill] sm:$0xff] }
 0x54a   : > { %v7078_v52 = vadd.f32 %v7077_v29, %v7076_v61  ;;  %v6878_v7 = vadd.f32 %v6877_v56, %v6876_v55  ;;  %v6374_v27 = vpop.f32.mrb[108].mxu0  ;;  %v6673_v0 = vpop.f32.mrb[237].mxu1  ;;  %v8612_v55 = vadd.f32 %v11348_v12, %v11866_v14 }
 0x54b   : > { %v7079_v15 = vsel %vm6702_vm1, %v6958_v51, 0.0  ;;  %v8607_v9 = vadd.f32 %v8606_v19, %v6374_v27  ;;  %v6376_v59 = vpop.f32.mrb[109].mxu0  ;;  %v6674_v57 = vpop.f32.mrb[238].mxu1  ;;  %v11867_v0 = vld [vmem:[#allocation35_spill] sm:$0xff] }
 0x54c   : > { %v7080_v48 = vadd.f32 %v7079_v15, %v7078_v52  ;;  %v6377_v41 = vpop.f32.mrb[110].mxu0  ;;  %v6676_v50 = vpop.f32.mrb[239].mxu1 }
 0x54d   : > { %v8610_v11 = vadd.f32 %v8609_v28, %v6377_v41  ;;  %v8608_v4 = vadd.f32 %v8607_v9, %v6663_v35  ;;  %v6379_v1 = vpop.f32.mrb[111].mxu0 }
 0x54f   : > { %6757 = vst.msk [vmem:[%s9742_s30 + $0x1b0] sm:$0xff] %vm6702_vm1, %v8608_v4  ;;  %v6879_v61 = vsel %vm6702_vm1, %v8608_v4, 0.0  ;;  %v6959_v31 = vmul.f32 %v8608_v4, %v8608_v4  ;;  %v8611_v26 = vadd.f32 %v8610_v11, %v6666_v33  ;;  %v8615_v33 = vadd.f32 %v11348_v12, %v11867_v0 }
 0x550   : > { %v6880_v22 = vadd.f32 %v6879_v61, %v6878_v7 }
 0x551   : > { %v7081_v45 = vsel %vm6702_vm1, %v6959_v31, 0.0  ;;  %6758 = vst.msk [vmem:[%s9742_s30 + $0x1b8] sm:$0xff] %vm6702_vm1, %v8611_v26  ;;  %v6881_v19 = vsel %vm6702_vm1, %v8611_v26, 0.0  ;;  %v6960_v29 = vmul.f32 %v8611_v26, %v8611_v26  ;;  %v6679_v56 = vpop.f32.mrb[240].mxu1  ;;  %v11868_v26 = vld [vmem:[#allocation36_spill] sm:$0xff] }
 0x552   : > { %v7082_v35 = vadd.f32 %v7081_v45, %v7080_v48  ;;  %v6882_v51 = vadd.f32 %v6881_v19, %v6880_v22  ;;  %v6382_v52 = vpop.f32.mrb[112].mxu0  ;;  %v6681_v27 = vpop.f32.mrb[241].mxu1  ;;  %v8618_v22 = vadd.f32 %v11348_v12, %v11868_v26 }
 0x553   : > { %v7083_v7 = vsel %vm6702_vm1, %v6960_v29, 0.0  ;;  %v8613_v25 = vadd.f32 %v8612_v55, %v6382_v52  ;;  %v6384_v28 = vpop.f32.mrb[113].mxu0  ;;  %v6682_v15 = vpop.f32.mrb[242].mxu1  ;;  %v11869_v27 = vld [vmem:[#allocation37_spill] sm:$0xff] }
 0x554   : > { %v7084_v9 = vadd.f32 %v7083_v7, %v7082_v35  ;;  %v6385_v59 = vpop.f32.mrb[114].mxu0  ;;  %v6684_v41 = vpop.f32.mrb[243].mxu1 }
 0x555   : > { %v8616_v50 = vadd.f32 %v8615_v33, %v6385_v59  ;;  %v8614_v11 = vadd.f32 %v8613_v25, %v6671_v18  ;;  %v6387_v4 = vpop.f32.mrb[115].mxu0 }
 0x557   : > { %6759 = vst.msk [vmem:[%s9742_s30 + $0x1c0] sm:$0xff] %vm6702_vm1, %v8614_v11  ;;  %v6883_v48 = vsel %vm6702_vm1, %v8614_v11, 0.0  ;;  %v6961_v1 = vmul.f32 %v8614_v11, %v8614_v11  ;;  %v8617_v61 = vadd.f32 %v8616_v50, %v6674_v57  ;;  %v8621_v57 = vadd.f32 %v11348_v12, %v11869_v27 }
 0x558   : > { %v6884_v31 = vadd.f32 %v6883_v48, %v6882_v51 }
 0x559   : > { %v7085_v14 = vsel %vm6702_vm1, %v6961_v1, 0.0  ;;  %6760 = vst.msk [vmem:[%s9742_s30 + $0x1c8] sm:$0xff] %vm6702_vm1, %v8617_v61  ;;  %v6885_v55 = vsel %vm6702_vm1, %v8617_v61, 0.0  ;;  %v6962_v45 = vmul.f32 %v8617_v61, %v8617_v61  ;;  %v6687_v19 = vpop.f32.mrb[244].mxu1  ;;  %v11870_v61 = vld [vmem:[#allocation38_spill] sm:$0xff] }
 0x55a   : > { %v7086_v18 = vadd.f32 %v7085_v14, %v7084_v9  ;;  %v6886_v29 = vadd.f32 %v6885_v55, %v6884_v31  ;;  %v6390_v35 = vpop.f32.mrb[116].mxu0  ;;  %v6689_v52 = vpop.f32.mrb[245].mxu1  ;;  %v8624_v31 = vadd.f32 %v11348_v12, %v11870_v61 }
 0x55b   : > { %v7087_v51 = vsel %vm6702_vm1, %v6962_v45, 0.0  ;;  %v8619_v0 = vadd.f32 %v8618_v22, %v6390_v35  ;;  %v6392_v33 = vpop.f32.mrb[117].mxu0  ;;  %v6690_v7 = vpop.f32.mrb[246].mxu1  ;;  %v11871_v52 = vld [vmem:[#allocation39_spill] sm:$0xff] }
 0x55c   : > { %v7088_v25 = vadd.f32 %v7087_v51, %v7086_v18  ;;  %v6393_v28 = vpop.f32.mrb[118].mxu0  ;;  %v6692_v59 = vpop.f32.mrb[247].mxu1 }
 0x55d   : > { %v8622_v41 = vadd.f32 %v8621_v57, %v6393_v28  ;;  %v8620_v50 = vadd.f32 %v8619_v0, %v6679_v56  ;;  %v6395_v11 = vpop.f32.mrb[119].mxu0 }
 0x55f   : > { %6761 = vst.msk [vmem:[%s9742_s30 + $0x1d0] sm:$0xff] %vm6702_vm1, %v8620_v50  ;;  %v6887_v9 = vsel %vm6702_vm1, %v8620_v50, 0.0  ;;  %v6963_v4 = vmul.f32 %v8620_v50, %v8620_v50  ;;  %v8623_v48 = vadd.f32 %v8622_v41, %v6682_v15  ;;  %v8627_v15 = vadd.f32 %v11348_v12, %v11871_v52 }
 0x560   : > { %v6888_v1 = vadd.f32 %v6887_v9, %v6886_v29 }
 0x561   : > { %v7089_v26 = vsel %vm6702_vm1, %v6963_v4, 0.0  ;;  %6762 = vst.msk [vmem:[%s9742_s30 + $0x1d8] sm:$0xff] %vm6702_vm1, %v8623_v48  ;;  %v6889_v22 = vsel %vm6702_vm1, %v8623_v48, 0.0  ;;  %v6964_v14 = vmul.f32 %v8623_v48, %v8623_v48  ;;  %v6695_v55 = vpop.f32.mrb[248].mxu1  ;;  %v11872_v48 = vld [vmem:[#allocation40_spill] sm:$0xff] }
 0x562   : > { %v7090_v56 = vadd.f32 %v7089_v26, %v7088_v25  ;;  %v6890_v45 = vadd.f32 %v6889_v22, %v6888_v1  ;;  %v6398_v18 = vpop.f32.mrb[120].mxu0  ;;  %v6697_v35 = vpop.f32.mrb[249].mxu1  ;;  %v8630_v1 = vadd.f32 %v11348_v12, %v11872_v48 }
 0x563   : > { %v7091_v29 = vsel %vm6702_vm1, %v6964_v14, 0.0  ;;  %v8625_v27 = vadd.f32 %v8624_v31, %v6398_v18  ;;  %v6400_v57 = vpop.f32.mrb[121].mxu0  ;;  %v6698_v51 = vpop.f32.mrb[250].mxu1 }
 0x564   : > { %v7092_v0 = vadd.f32 %v7091_v29, %v7090_v56  ;;  %v6401_v33 = vpop.f32.mrb[122].mxu0  ;;  %v6700_v28 = vpop.f32.mrb[251].mxu1  ;;  %v11873_v56 = vld [vmem:[#allocation41_spill] sm:$0xff] }
 0x565   : > { %v8628_v59 = vadd.f32 %v8627_v15, %v6401_v33  ;;  %v8626_v41 = vadd.f32 %v8625_v27, %v6687_v19  ;;  %v6403_v50 = vpop.f32.mrb[123].mxu0  ;;  %v8633_v18 = vadd.f32 %v11348_v12, %v11873_v56 }
 0x567   : > { %6763 = vst.msk [vmem:[%s9742_s30 + $0x1e0] sm:$0xff] %vm6702_vm1, %v8626_v41  ;;  %v6891_v25 = vsel %vm6702_vm1, %v8626_v41, 0.0  ;;  %v6965_v11 = vmul.f32 %v8626_v41, %v8626_v41  ;;  %v8629_v9 = vadd.f32 %v8628_v59, %v6690_v7  ;;  %v11874_v41 = vld [vmem:[#allocation15_spill] sm:$0xff] }
 0x568   : > { %v6892_v4 = vadd.f32 %v6891_v25, %v6890_v45  ;;  %v8446_v50 = vadd.f32 %v11348_v12, %v11874_v41 }
 0x569   : > { %v7093_v61 = vsel %vm6702_vm1, %v6965_v11, 0.0  ;;  %6764 = vst.msk [vmem:[%s9742_s30 + $0x1e8] sm:$0xff] %vm6702_vm1, %v8629_v9  ;;  %v6893_v31 = vsel %vm6702_vm1, %v8629_v9, 0.0  ;;  %v6966_v26 = vmul.f32 %v8629_v9, %v8629_v9 }
 0x56a   : > { %v7094_v19 = vadd.f32 %v7093_v61, %v7092_v0  ;;  %v6894_v22 = vadd.f32 %v6893_v31, %v6892_v4  ;;  %v6406_v14 = vpop.f32.mrb[124].mxu0 }
 0x56b   : > { %v7095_v7 = vsel %vm6702_vm1, %v6966_v26, 0.0  ;;  %v8631_v45 = vadd.f32 %v8630_v1, %v6406_v14  ;;  %v6408_v35 = vpop.f32.mrb[125].mxu0  ;;  %v11875_v1 = vld [vmem:[#allocation16_spill] sm:$0xff] }
 0x56c   : > { %v7096_v52 = vadd.f32 %v7095_v7, %v7094_v19  ;;  %v6409_v15 = vpop.f32.mrb[126].mxu0  ;;  %v11876_v7 = vld [vmem:[#allocation42_spill] sm:$0xff] }
 0x56d   : > { %v8634_v29 = vadd.f32 %v8633_v18, %v6409_v15  ;;  %v8632_v27 = vadd.f32 %v8631_v45, %v6695_v55  ;;  %v6411_v57 = vpop.f32.mrb[127].mxu0  ;;  %v6907_v45 = vmul.f32 %v11876_v7, %v11876_v7 }
 0x56f   : > { %6765 = vst.msk [vmem:[%s9742_s30 + $0x1f0] sm:$0xff] %vm6702_vm1, %v8632_v27  ;;  %v6895_v33 = vsel %vm6702_vm1, %v8632_v27, 0.0  ;;  %v6967_v0 = vmul.f32 %v8632_v27, %v8632_v27  ;;  %v8635_v28 = vadd.f32 %v8634_v29, %v6698_v51  ;;  %v8448_v51 = vadd.f32 %v11348_v12, %v11875_v1  ;;  %v11877_v27 = vld [vmem:[#allocation43_spill] sm:$0xff] }
 0x570   : > { %v6896_v59 = vadd.f32 %v6895_v33, %v6894_v22  ;;  %v6770_v29 = vsel %vm6702_vm1, %v11876_v7, 0.0  ;;  %v6908_v57 = vmul.f32 %v11877_v27, %v11877_v27  ;;  %v6972_v41 = vsel %vm6702_vm1, %v6907_v45, 0.0 }
 0x571   : > { %v7097_v25 = vsel %vm6702_vm1, %v6967_v0, 0.0  ;;  %6766 = vst.msk [vmem:[%s9742_s30 + $0x1f8] sm:$0xff] %vm6702_vm1, %v8635_v28  ;;  %v6897_v11 = vsel %vm6702_vm1, %v8635_v28, 0.0  ;;  %v6968_v9 = vmul.f32 %v8635_v28, %v8635_v28  ;;  %v6910_v1 = vmul.f32 %v11022_v63, %v11022_v63 }
 0x572   : > { %v7098_v55 = vadd.f32 %v7097_v25, %v7096_v52  ;;  %v11440_v4 = vadd.f32 %v6897_v11, %v6896_v59  ;;  %v6447_v48 = vpop.f32.mrb[0].mxu0  ;;  %v6909_v25 = vmul.f32 %v11017_v47, %v11017_v47  ;;  %v6912_v7 = vmul.f32 %v11046_v30, %v11046_v30 }
 0x573   : > { %v7099_v61 = vsel %vm6702_vm1, %v6968_v9, 0.0  ;;  %v8447_v31 = vadd.f32 %v8446_v50, %v6447_v48  ;;  %v6449_v26 = vpop.f32.mrb[1].mxu0  ;;  %v6772_v50 = vsel %vm6702_vm1, %v11877_v27, 0.0  ;;  %v6774_v48 = vsel %vm6702_vm1, %v11017_v47, 0.0 }
 0x574   : > { %v11445_v19 = vadd.f32 %v7099_v61, %v7098_v55  ;;  %v6450_v22 = vpop.f32.mrb[2].mxu0  ;;  %v6974_v55 = vsel %vm6702_vm1, %v6908_v57, 0.0  ;;  %v6776_v26 = vsel %vm6702_vm1, %v11022_v63, 0.0  ;;  %v6778_v47 = vsel %vm6702_vm1, %v11039_v16, 0.0 }
 0x575   : > { %6703 = vst.msk [vmem:[%s9742_s30] sm:$0xff] %vm6702_vm1, %v8447_v31  ;;  %v6905_v14 = vmul.f32 %v8447_v31, %v8447_v31  ;;  %v8449_v56 = vadd.f32 %v8448_v51, %v6450_v22  ;;  %v6452_v18 = vpop.f32.mrb[3].mxu0  ;;  %v6767_v35 = vsel %vm6702_vm1, %v8447_v31, 0.0  ;;  %v6976_v31 = vsel %vm6702_vm1, %v6909_v25, 0.0 }
 0x576   : > { %v6911_v22 = vmul.f32 %v11039_v16, %v11039_v16  ;;  %v6978_v18 = vsel %vm6702_vm1, %v6910_v1, 0.0  ;;  %v6780_v63 = vsel %vm6702_vm1, %v11046_v30, 0.0  ;;  %v6982_v27 = vsel %vm6702_vm1, %v6912_v7, 0.0 }
 0x577   : > { %6704 = vst.msk [vmem:[%s9742_s30 + $0x8] sm:$0xff] %vm6702_vm1, %v8449_v56  ;;  %v6768_v12 = vsel %vm6702_vm1, %v8449_v56, 0.0  ;;  %v6906_v52 = vmul.f32 %v8449_v56, %v8449_v56  ;;  %v6969_v33 = vsel %vm6702_vm1, %v6905_v14, 0.0  ;;  %v6782_v16 = vsel %vm6702_vm1, %v11059_v20, 0.0 }
 0x578   : > { %v6769_v15 = vadd.f32 %v6768_v12, %v6767_v35  ;;  %v6980_v12 = vsel %vm6702_vm1, %v6911_v22, 0.0  ;;  %v6914_v57 = vmul.f32 %v11064_v10, %v11064_v10  ;;  %v6784_v30 = vsel %vm6702_vm1, %v11064_v10, 0.0 }
 0x579   : > { %v6970_v0 = vsel %vm6702_vm1, %v6906_v52, 0.0  ;;  %v6913_v52 = vmul.f32 %v11059_v20, %v11059_v20  ;;  %v6786_v20 = vsel %vm6702_vm1, %v11073_v34, 0.0  ;;  %v6788_v10 = vsel %vm6702_vm1, %v11078_v49, 0.0 }
 0x57a   : > { %v6771_v28 = vadd.f32 %v6770_v29, %v6769_v15  ;;  %v6971_v59 = vadd.f32 %v6970_v0, %v6969_v33  ;;  %v6986_v25 = vsel %vm6702_vm1, %v6914_v57, 0.0  ;;  %v6917_v1 = vmul.f32 %v11087_v17, %v11087_v17 }
 0x57b   : > { %v6922_v57 = vmul.f32 %v11120_v39, %v11120_v39 }
 0x57c   : > { %v6773_v11 = vadd.f32 %v6772_v50, %v6771_v28  ;;  %v6973_v9 = vadd.f32 %v6972_v41, %v6971_v59  ;;  %v6984_v28 = vsel %vm6702_vm1, %v6913_v52, 0.0  ;;  %v6915_v59 = vmul.f32 %v11073_v34, %v11073_v34 }
 0x57d   : > { %v6790_v34 = vsel %vm6702_vm1, %v11087_v17, 0.0  ;;  %v6794_v17 = vsel %vm6702_vm1, %v11101_v62, 0.0 }
 0x57e   : > { %v6775_v51 = vadd.f32 %v6774_v48, %v6773_v11  ;;  %v6975_v61 = vadd.f32 %v6974_v55, %v6973_v9  ;;  %v6916_v11 = vmul.f32 %v11078_v49, %v11078_v49  ;;  %v6988_v48 = vsel %vm6702_vm1, %v6915_v59, 0.0 }
 0x57f   : > { %v6792_v49 = vsel %vm6702_vm1, %v11092_v3, 0.0 }
 0x580   : > { %v6777_v14 = vadd.f32 %v6776_v26, %v6775_v51  ;;  %v6977_v56 = vadd.f32 %v6976_v31, %v6975_v61  ;;  %v6990_v31 = vsel %vm6702_vm1, %v6916_v11, 0.0  ;;  %v6918_v26 = vmul.f32 %v11092_v3, %v11092_v3 }
 0x581   : > { %v6796_v3 = vsel %vm6702_vm1, %v11106_v21, 0.0 }
 0x582   : > { %v6779_v45 = vadd.f32 %v6778_v47, %v6777_v14  ;;  %v6979_v35 = vadd.f32 %v6978_v18, %v6977_v56  ;;  %v6992_v56 = vsel %vm6702_vm1, %v6917_v1, 0.0  ;;  %v6919_v18 = vmul.f32 %v11101_v62, %v11101_v62 }
 0x583   : > { %v6798_v62 = vsel %vm6702_vm1, %v11115_v37, 0.0 }
 0x584   : > { %v6781_v15 = vadd.f32 %v6780_v63, %v6779_v45  ;;  %v6981_v29 = vadd.f32 %v6980_v12, %v6979_v35  ;;  %v6994_v45 = vsel %vm6702_vm1, %v6918_v26, 0.0  ;;  %v6920_v35 = vmul.f32 %v11106_v21, %v11106_v21 }
 0x585   : > { %v6996_v52 = vsel %vm6702_vm1, %v6919_v18, 0.0  ;;  %v6800_v21 = vsel %vm6702_vm1, %v11120_v39, 0.0  ;;  %v6804_v39 = vsel %vm6702_vm1, %v11134_v60, 0.0  ;;  %v6927_v26 = vmul.f32 %v11163_v46, %v11163_v46 }
 0x586   : > { %v6783_v33 = vadd.f32 %v6782_v16, %v6781_v15  ;;  %v6983_v0 = vadd.f32 %v6982_v27, %v6981_v29  ;;  %v6921_v15 = vmul.f32 %v11115_v37, %v11115_v37  ;;  %v6998_v16 = vsel %vm6702_vm1, %v6920_v35, 0.0 }
 0x587   : > { %v6802_v37 = vsel %vm6702_vm1, %v11129_v38, 0.0 }
 0x588   : > { %v6785_v41 = vadd.f32 %v6784_v30, %v6783_v33  ;;  %v6985_v50 = vadd.f32 %v6984_v28, %v6983_v0  ;;  %v7000_v28 = vsel %vm6702_vm1, %v6921_v15, 0.0  ;;  %v6923_v30 = vmul.f32 %v11129_v38, %v11129_v38 }
 0x589   : > { %v6806_v38 = vsel %vm6702_vm1, %v11143_v5, 0.0 }
 0x58a   : > { %v6787_v9 = vadd.f32 %v6786_v20, %v6785_v41  ;;  %v6987_v55 = vadd.f32 %v6986_v25, %v6985_v50  ;;  %v7002_v50 = vsel %vm6702_vm1, %v6922_v57, 0.0  ;;  %v6924_v25 = vmul.f32 %v11134_v60, %v11134_v60 }
 0x58b   : > { %v6808_v60 = vsel %vm6702_vm1, %v11148_v58, 0.0  ;;  %v6932_v57 = vmul.f32 %v11200_v8, %v11200_v8 }
 0x58c   : > { %v6789_v51 = vadd.f32 %v6788_v10, %v6787_v9  ;;  %v6989_v61 = vadd.f32 %v6988_v48, %v6987_v55  ;;  %v7004_v9 = vsel %vm6702_vm1, %v6923_v30, 0.0  ;;  %v6925_v55 = vmul.f32 %v11143_v5, %v11143_v5 }
 0x58d   : > { %v7006_v1 = vsel %vm6702_vm1, %v6924_v25, 0.0  ;;  %v6810_v5 = vsel %vm6702_vm1, %v11163_v46, 0.0  ;;  %v6814_v46 = vsel %vm6702_vm1, %v11181_v32, 0.0  ;;  %v6899_v30 = vrot.slane %v11440_v4, 4 }
 0x58e   : > { %v6791_v22 = vadd.f32 %v6790_v34, %v6789_v51  ;;  %v6991_v14 = vadd.f32 %v6990_v31, %v6989_v61  ;;  %v6926_v51 = vmul.f32 %v11148_v58, %v11148_v58  ;;  %v7008_v34 = vsel %vm6702_vm1, %v6925_v55, 0.0 }
 0x58f   : > { %v6812_v58 = vsel %vm6702_vm1, %v11170_v42, 0.0  ;;  %v7101_v25 = vrot.slane %v11445_v19, 4  ;;  %v6900_v55 = vadd.f32 %v6899_v30, %v11440_v4  ;;  %v7449_v30 = vld [vmem:[%s9742_s30 + $0x30] sm:$0xff] (%p11879_p12) }
 0x590   : > { %v6793_v47 = vadd.f32 %v6792_v49, %v6791_v22  ;;  %v6993_v7 = vadd.f32 %v6992_v56, %v6991_v14  ;;  %v7010_v56 = vsel %vm6702_vm1, %v6926_v51, 0.0  ;;  %v6928_v49 = vmul.f32 %v11170_v42, %v11170_v42  ;;  %7450 = vst [vmem:[%s11629_s11 + $0x30] sm:$0xff] (%p11879_p12), %v7449_v30 }
 0x591   : > { %v6816_v42 = vsel %vm6702_vm1, %v11186_v53, 0.0  ;;  %v7102_v51 = vadd.f32 %v7101_v25, %v11445_v19  ;;  %v6901_v4 = vrot.slane %v6900_v55, 2  ;;  %v7461_v25 = vld [vmem:[%s9742_s30 + $0x60] sm:$0xff] (%p11879_p12) }
 0x592   : > { %v6795_v12 = vadd.f32 %v6794_v17, %v6793_v47  ;;  %v6995_v63 = vadd.f32 %v6994_v45, %v6993_v7  ;;  %v7012_v7 = vsel %vm6702_vm1, %v6927_v26, 0.0  ;;  %v6929_v45 = vmul.f32 %v11181_v32, %v11181_v32  ;;  %7462 = vst [vmem:[%s11629_s11 + $0x60] sm:$0xff] (%p11879_p12), %v7461_v25 }
 0x593   : > { %v6818_v32 = vsel %vm6702_vm1, %v11195_v54, 0.0 }
 0x594   : > { %v6797_v29 = vadd.f32 %v6796_v3, %v6795_v12  ;;  %v6997_v27 = vadd.f32 %v6996_v52, %v6995_v63  ;;  %v7014_v12 = vsel %vm6702_vm1, %v6928_v49, 0.0  ;;  %v6930_v63 = vmul.f32 %v11186_v53, %v11186_v53 }
 0x595   : > { %v7016_v15 = vsel %vm6702_vm1, %v6929_v45, 0.0  ;;  %v6820_v53 = vsel %vm6702_vm1, %v11200_v8, 0.0 }
 0x596   : > { %v6799_v33 = vadd.f32 %v6798_v62, %v6797_v29  ;;  %v6999_v0 = vadd.f32 %v6998_v16, %v6997_v27  ;;  %v6931_v29 = vmul.f32 %v11195_v54, %v11195_v54  ;;  %v7018_v62 = vsel %vm6702_vm1, %v6930_v63, 0.0 }
 0x597   : > { %v6822_v54 = vsel %vm6702_vm1, %v11209_v40, 0.0 }
 0x598   : > { %v6801_v59 = vadd.f32 %v6800_v21, %v6799_v33  ;;  %v7001_v41 = vadd.f32 %v7000_v28, %v6999_v0  ;;  %v7020_v28 = vsel %vm6702_vm1, %v6931_v29, 0.0  ;;  %v6933_v21 = vmul.f32 %v11209_v40, %v11209_v40  ;;  %v11878_v29 = vld [vmem:[#allocation34_spill] sm:$0xff] }
 0x59a   : > { %v6803_v20 = vadd.f32 %v6802_v37, %v6801_v59  ;;  %v7003_v11 = vadd.f32 %v7002_v50, %v7001_v41  ;;  %v7022_v50 = vsel %vm6702_vm1, %v6932_v57, 0.0  ;;  %v6934_v37 = vmul.f32 %v11214_v2, %v11214_v2  ;;  %v7196_v57 = vld [vmem:[#allocation8 + $0x2] sm:$0x3] }
 0x59b   : > { %v7024_v8 = vsel %vm6702_vm1, %v6933_v21, 0.0  ;;  %v7447_v21 = vld [vmem:[%s9742_s30 + $0x28] sm:$0xff] (%p11879_p12) }
 0x59c   : > { %v6805_v48 = vadd.f32 %v6804_v39, %v6803_v20  ;;  %v7005_v10 = vadd.f32 %v7004_v9, %v7003_v11  ;;  %v6824_v9 = vsel %vm6702_vm1, %v11214_v2, 0.0  ;;  %v6935_v39 = vmul.f32 %v11223_v44, %v11223_v44  ;;  %7448 = vst [vmem:[%s11629_s11 + $0x28] sm:$0xff] (%p11879_p12), %v7447_v21 }
 0x59d   : > { %v7026_v40 = vsel %vm6702_vm1, %v6934_v37, 0.0  ;;  %v7459_v37 = vld [vmem:[%s9742_s30 + $0x58] sm:$0xff] (%p11879_p12) }
 0x59e   : > { %v6807_v61 = vadd.f32 %v6806_v38, %v6805_v48  ;;  %v7007_v31 = vadd.f32 %v7006_v1, %v7005_v10  ;;  %v6826_v1 = vsel %vm6702_vm1, %v11223_v44, 0.0  ;;  %v6936_v38 = vmul.f32 %v11228_v13, %v11228_v13  ;;  %7460 = vst [vmem:[%s11629_s11 + $0x58] sm:$0xff] (%p11879_p12), %v7459_v37 }
 0x59f   : > { %v7028_v2 = vsel %vm6702_vm1, %v6935_v39, 0.0  ;;  %v7471_v39 = vld [vmem:[%s9742_s30 + $0x88] sm:$0xff] (%p11879_p12) }
 0x5a0   : > { %v6809_v22 = vadd.f32 %v6808_v60, %v6807_v61  ;;  %v7009_v14 = vadd.f32 %v7008_v34, %v7007_v31  ;;  %v6828_v34 = vsel %vm6702_vm1, %v11228_v13, 0.0  ;;  %7472 = vst [vmem:[%s11629_s11 + $0x88] sm:$0xff] (%p11879_p12), %v7471_v39 }
 0x5a2   : > { %v6811_v18 = vadd.f32 %v6810_v5, %v6809_v22  ;;  %v7011_v47 = vadd.f32 %v7010_v56, %v7009_v14  ;;  %v7030_v22 = vsel %vm6702_vm1, %v6936_v38, 0.0  ;;  %v7103_v14 = vrot.slane %v7102_v51, 2  ;;  %v7483_v38 = vld [vmem:[%s9742_s30 + $0xb8] sm:$0xff] (%p11879_p12) }
 0x5a3   : > { %v6902_v5 = vadd.f32 %v6901_v4, %v6900_v55  ;;  %v7473_v55 = vld [vmem:[%s9742_s30 + $0x90] sm:$0xff] (%p11879_p12)  ;;  %7484 = vst [vmem:[%s11629_s11 + $0xb8] sm:$0xff] (%p11879_p12), %v7483_v38  ;;  %v7495_v4 = vld [vmem:[%s9742_s30 + $0xe8] sm:$0xff] (%p11879_p12) }
 0x5a4   : > { %v6813_v17 = vadd.f32 %v6812_v58, %v6811_v18  ;;  %v7013_v35 = vadd.f32 %v7012_v7, %v7011_v47  ;;  %v7104_v47 = vadd.f32 %v7103_v14, %v7102_v51  ;;  %7474 = vst [vmem:[%s11629_s11 + $0x90] sm:$0xff] (%p11879_p12), %v7473_v55  ;;  %v7485_v51 = vld [vmem:[%s9742_s30 + $0xc0] sm:$0xff] (%p11879_p12)  ;;  %7496 = vst [vmem:[%s11629_s11 + $0xe8] sm:$0xff] (%p11879_p12), %v7495_v4  ;;  %v7503_v14 = vld [vmem:[%s9742_s30 + $0x108] sm:$0xff] (%p11879_p12) }
 0x5a5   : > { %v6903_v58 = vrot.slane %v6902_v5, 1  ;;  %7486 = vst [vmem:[%s11629_s11 + $0xc0] sm:$0xff] (%p11879_p12), %v7485_v51  ;;  %7504 = vst [vmem:[%s11629_s11 + $0x308] sm:$0xff] (%p11879_p12), %v7503_v14 }
 0x5a6   : > { %v6815_v52 = vadd.f32 %v6814_v46, %v6813_v17  ;;  %v7015_v3 = vadd.f32 %v7014_v12, %v7013_v35  ;;  %v7105_v13 = vrot.slane %v7104_v47, 1 }
 0x5a7   : > { %v6904_v46 = vadd.f32 %v6903_v58, %v6902_v5  ;;  %v7509_v5 = vld [vmem:[%s9742_s30 + $0x120] sm:$0xff] (%p11879_p12)  ;;  %v7521_v58 = vld [vmem:[%s9742_s30 + $0x150] sm:$0xff] (%p11879_p12) }
 0x5a8   : > { %v6817_v27 = vadd.f32 %v6816_v42, %v6815_v52  ;;  %v7017_v16 = vadd.f32 %v7016_v15, %v7015_v3  ;;  %v7106_v42 = vadd.f32 %v7105_v13, %v7104_v47  ;;  %7510 = vst [vmem:[%s11629_s11 + $0x320] sm:$0xff] (%p11879_p12), %v7509_v5  ;;  %v7515_v47 = vld [vmem:[%s9742_s30 + $0x138] sm:$0xff] (%p11879_p12)  ;;  %7522 = vst [vmem:[%s11629_s11 + $0x350] sm:$0xff] (%p11879_p12), %v7521_v58 }
 0x5a9   : > { %7516 = vst [vmem:[%s11629_s11 + $0x338] sm:$0xff] (%p11879_p12), %v7515_v47  ;;  %v7531_v13 = vld [vmem:[%s9742_s30 + $0x178] sm:$0xff] (%p11879_p12) }
 0x5aa   : > { %v6819_v33 = vadd.f32 %v6818_v32, %v6817_v27  ;;  %v7019_v0 = vadd.f32 %v7018_v62, %v7017_v16  ;;  %v7115_v16 = vld [vmem:[#allocation8] sm:$0x3]  ;;  %7532 = vst [vmem:[%s11629_s11 + $0x378] sm:$0xff] (%p11879_p12), %v7531_v13 }
 0x5ac   : > { %v6821_v59 = vadd.f32 %v6820_v53, %v6819_v33  ;;  %v7021_v41 = vadd.f32 %v7020_v28, %v7019_v0  ;;  %v7443_v28 = vld [vmem:[%s9742_s30 + $0x18] sm:$0xff] (%p11879_p12)  ;;  %v7445_v53 = vld [vmem:[%s9742_s30 + $0x20] sm:$0xff] (%p11879_p12) }
 0x5ad   : > { %7444 = vst [vmem:[%s11629_s11 + $0x18] sm:$0xff] (%p11879_p12), %v7443_v28  ;;  %7446 = vst [vmem:[%s11629_s11 + $0x20] sm:$0xff] (%p11879_p12), %v7445_v53 }
 0x5ae   : > { %v6823_v20 = vadd.f32 %v6822_v54, %v6821_v59  ;;  %v7023_v11 = vadd.f32 %v7022_v50, %v7021_v41  ;;  %v7451_v59 = vld [vmem:[%s9742_s30 + $0x38] sm:$0xff] (%p11879_p12)  ;;  %v7453_v41 = vld [vmem:[%s9742_s30 + $0x40] sm:$0xff] (%p11879_p12)  ;;  %v7455_v50 = vld [vmem:[%s9742_s30 + $0x48] sm:$0xff] (%p11879_p12) }
 0x5af   : > { %7452 = vst [vmem:[%s11629_s11 + $0x38] sm:$0xff] (%p11879_p12), %v7451_v59  ;;  %7454 = vst [vmem:[%s11629_s11 + $0x40] sm:$0xff] (%p11879_p12), %v7453_v41  ;;  %v7457_v54 = vld [vmem:[%s9742_s30 + $0x50] sm:$0xff] (%p11879_p12) }
 0x5b0   : > { %v6825_v48 = vadd.f32 %v6824_v9, %v6823_v20  ;;  %v7025_v10 = vadd.f32 %v7024_v8, %v7023_v11  ;;  %7456 = vst [vmem:[%s11629_s11 + $0x48] sm:$0xff] (%p11879_p12), %v7455_v50  ;;  %7458 = vst [vmem:[%s11629_s11 + $0x50] sm:$0xff] (%p11879_p12), %v7457_v54  ;;  %v7463_v20 = vld [vmem:[%s9742_s30 + $0x68] sm:$0xff] (%p11879_p12)  ;;  %v7465_v11 = vld [vmem:[%s9742_s30 + $0x70] sm:$0xff] (%p11879_p12) }
 0x5b1   : > { %7464 = vst [vmem:[%s11629_s11 + $0x68] sm:$0xff] (%p11879_p12), %v7463_v20  ;;  %7466 = vst [vmem:[%s11629_s11 + $0x70] sm:$0xff] (%p11879_p12), %v7465_v11  ;;  %v7467_v8 = vld [vmem:[%s9742_s30 + $0x78] sm:$0xff] (%p11879_p12)  ;;  %v7469_v9 = vld [vmem:[%s9742_s30 + $0x80] sm:$0xff] (%p11879_p12) }
 0x5b2   : > { %v6827_v61 = vadd.f32 %v6826_v1, %v6825_v48  ;;  %v7027_v31 = vadd.f32 %v7026_v40, %v7025_v10  ;;  %7468 = vst [vmem:[%s11629_s11 + $0x78] sm:$0xff] (%p11879_p12), %v7467_v8  ;;  %7470 = vst [vmem:[%s11629_s11 + $0x80] sm:$0xff] (%p11879_p12), %v7469_v9  ;;  %v7475_v48 = vld [vmem:[%s9742_s30 + $0x98] sm:$0xff] (%p11879_p12)  ;;  %v7477_v10 = vld [vmem:[%s9742_s30 + $0xa0] sm:$0xff] (%p11879_p12) }
 0x5b3   : > { %7476 = vst [vmem:[%s11629_s11 + $0x98] sm:$0xff] (%p11879_p12), %v7475_v48  ;;  %7478 = vst [vmem:[%s11629_s11 + $0xa0] sm:$0xff] (%p11879_p12), %v7477_v10  ;;  %v7479_v40 = vld [vmem:[%s9742_s30 + $0xa8] sm:$0xff] (%p11879_p12)  ;;  %v7481_v1 = vld [vmem:[%s9742_s30 + $0xb0] sm:$0xff] (%p11879_p12) }
 0x5b4   : > { %v6829_v60 = vadd.f32 %v6828_v34, %v6827_v61  ;;  %v7029_v26 = vadd.f32 %v7028_v2, %v7027_v31  ;;  %7480 = vst [vmem:[%s11629_s11 + $0xa8] sm:$0xff] (%p11879_p12), %v7479_v40  ;;  %7482 = vst [vmem:[%s11629_s11 + $0xb0] sm:$0xff] (%p11879_p12), %v7481_v1  ;;  %v7487_v61 = vld [vmem:[%s9742_s30 + $0xc8] sm:$0xff] (%p11879_p12)  ;;  %v7489_v31 = vld [vmem:[%s9742_s30 + $0xd0] sm:$0xff] (%p11879_p12) }
 0x5b5   : > { %7488 = vst [vmem:[%s11629_s11 + $0xc8] sm:$0xff] (%p11879_p12), %v7487_v61  ;;  %7490 = vst [vmem:[%s11629_s11 + $0xd0] sm:$0xff] (%p11879_p12), %v7489_v31  ;;  %v7491_v2 = vld [vmem:[%s9742_s30 + $0xd8] sm:$0xff] (%p11879_p12)  ;;  %v7493_v34 = vld [vmem:[%s9742_s30 + $0xe0] sm:$0xff] (%p11879_p12) }
 0x5b6   : > { %v6830_v56 = vrot.slane %v6829_v60, 4  ;;  %v7031_v44 = vadd.f32 %v7030_v22, %v7029_v26  ;;  %7492 = vst [vmem:[%s11629_s11 + $0xd8] sm:$0xff] (%p11879_p12), %v7491_v2  ;;  %7494 = vst [vmem:[%s11629_s11 + $0xe0] sm:$0xff] (%p11879_p12), %v7493_v34  ;;  %v7499_v26 = vld [vmem:[%s9742_s30 + $0xf8] sm:$0xff] (%p11879_p12)  ;;  %v7501_v22 = vld [vmem:[%s9742_s30 + $0x100] sm:$0xff] (%p11879_p12) }
 0x5b7   : > { %7500 = vst [vmem:[%s11629_s11 + $0xf8] sm:$0xff] (%p11879_p12), %v7499_v26  ;;  %7502 = vst [vmem:[%s11629_s11 + $0x300] sm:$0xff] (%p11879_p12), %v7501_v22 }
 0x5b8   : > { %v6831_v49 = vadd.f32 %v6830_v56, %v6829_v60  ;;  %v7032_v18 = vrot.slane %v7031_v44, 4  ;;  %v7497_v60 = vld [vmem:[%s9742_s30 + $0xf0] sm:$0xff] (%p11879_p12) }
 0x5b9   : > { %7498 = vst [vmem:[%s11629_s11 + $0xf0] sm:$0xff] (%p11879_p12), %v7497_v60  ;;  %v7505_v56 = vld [vmem:[%s9742_s30 + $0x110] sm:$0xff] (%p11879_p12) }
 0x5ba   : > { %v6832_v19 = vrot.slane %v6831_v49, 2  ;;  %v7033_v7 = vadd.f32 %v7032_v18, %v7031_v44  ;;  %v7507_v44 = vld [vmem:[%s9742_s30 + $0x118] sm:$0xff] (%p11879_p12)  ;;  %7506 = vst [vmem:[%s11629_s11 + $0x310] sm:$0xff] (%p11879_p12), %v7505_v56  ;;  %v7513_v18 = vld [vmem:[%s9742_s30 + $0x130] sm:$0xff] (%p11879_p12) }
 0x5bb   : > { %7508 = vst [vmem:[%s11629_s11 + $0x318] sm:$0xff] (%p11879_p12), %v7507_v44  ;;  %7514 = vst [vmem:[%s11629_s11 + $0x330] sm:$0xff] (%p11879_p12), %v7513_v18 }
 0x5bc   : > { %v6833_v45 = vadd.f32 %v6832_v19, %v6831_v49  ;;  %v7034_v17 = vrot.slane %v7033_v7, 2  ;;  %v7511_v49 = vld [vmem:[%s9742_s30 + $0x128] sm:$0xff] (%p11879_p12)  ;;  %v7517_v19 = vld [vmem:[%s9742_s30 + $0x140] sm:$0xff] (%p11879_p12) }
 0x5bd   : > { %7512 = vst [vmem:[%s11629_s11 + $0x328] sm:$0xff] (%p11879_p12), %v7511_v49  ;;  %7518 = vst [vmem:[%s11629_s11 + $0x340] sm:$0xff] (%p11879_p12), %v7517_v19 }
 0x5be   : > { %v6834_v35 = vrot.slane %v6833_v45, 1  ;;  %v7035_v12 = vadd.f32 %v7034_v17, %v7033_v7  ;;  %v7519_v7 = vld [vmem:[%s9742_s30 + $0x148] sm:$0xff] (%p11879_p12)  ;;  %v7525_v17 = vld [vmem:[%s9742_s30 + $0x160] sm:$0xff] (%p11879_p12) }
 0x5bf   : > { %7520 = vst [vmem:[%s11629_s11 + $0x348] sm:$0xff] (%p11879_p12), %v7519_v7  ;;  %7526 = vst [vmem:[%s11629_s11 + $0x360] sm:$0xff] (%p11879_p12), %v7525_v17 }
 0x5c0   : > { %v6835_v63 = vadd.f32 %v6834_v35, %v6833_v45  ;;  %v7036_v52 = vrot.slane %v7035_v12, 1  ;;  %v7523_v45 = vld [vmem:[%s9742_s30 + $0x158] sm:$0xff] (%p11879_p12)  ;;  %v7527_v35 = vld [vmem:[%s9742_s30 + $0x168] sm:$0xff] (%p11879_p12) }
 0x5c1   : > { %7524 = vst [vmem:[%s11629_s11 + $0x358] sm:$0xff] (%p11879_p12), %v7523_v45  ;;  %7528 = vst [vmem:[%s11629_s11 + $0x368] sm:$0xff] (%p11879_p12), %v7527_v35 }
 0x5c2   : > { %v7119_v3 = vsel %vm7118_vm3, %v6904_v46, %v6835_v63  ;;  %v7037_v15 = vadd.f32 %v7036_v52, %v7035_v12  ;;  %v7529_v12 = vld [vmem:[%s9742_s30 + $0x170] sm:$0xff] (%p11879_p12)  ;;  %v7533_v46 = vld [vmem:[%s9742_s30 + $0x180] sm:$0xff] (%p11879_p12)  ;;  %v7535_v63 = vld [vmem:[%s9742_s30 + $0x188] sm:$0xff] (%p11879_p12) }
 0x5c3   : > { %8369 = vmatmul.mubr.msk.f32.vlgmr.msra.gmra.mrb[252].mxu1 %vm6702_vm1, %v7119_v3  ;;  %7530 = vst [vmem:[%s11629_s11 + $0x370] sm:$0xff] (%p11879_p12), %v7529_v12  ;;  %v7537_v52 = vld [vmem:[%s9742_s30 + $0x190] sm:$0xff] (%p11879_p12)  ;;  %7534 = vst [vmem:[%s11629_s11 + $0x380] sm:$0xff] (%p11879_p12), %v7533_v46  ;;  %v7539_v3 = vld [vmem:[%s9742_s30 + $0x198] sm:$0xff] (%p11879_p12) }
 0x5c4   : > { %8404 = vmatpush3.bf16.msra.mxu1 %v11878_v29  ;;  %8387 = vmatprep.mubr.msk.f32.mxu1 %vm9589_vm2, %v9590_v43  ;;  %v7199_v27 = vsel %vm7118_vm3, %v7106_v42, %v7037_v15  ;;  %7536 = vst [vmem:[%s11629_s11 + $0x388] sm:$0xff] (%p11879_p12), %v7535_v63  ;;  %7538 = vst [vmem:[%s11629_s11 + $0x390] sm:$0xff] (%p11879_p12), %v7537_v52  ;;  %v7541_v15 = vld [vmem:[%s9742_s30 + $0x1a0] sm:$0xff] (%p11879_p12)  ;;  %v7543_v42 = vld [vmem:[%s9742_s30 + $0x1a8] sm:$0xff] (%p11879_p12) }
 0x5c5   : > { %8405 = vmatprep.subr.bf16.mxu1 %v11841_v24  ;;  %7540 = vst [vmem:[%s11629_s11 + $0x398] sm:$0xff] (%p11879_p12), %v7539_v3  ;;  %7542 = vst [vmem:[%s11629_s11 + $0x3a0] sm:$0xff] (%p11879_p12), %v7541_v15  ;;  %v7545_v29 = vld [vmem:[%s9742_s30 + $0x1b0] sm:$0xff] (%p11879_p12) }
 0x5c6   : > { %7544 = vst [vmem:[%s11629_s11 + $0x3a8] sm:$0xff] (%p11879_p12), %v7543_v42  ;;  %7546 = vst [vmem:[%s11629_s11 + $0x3b0] sm:$0xff] (%p11879_p12), %v7545_v29 }
 0x5c8   : > { %8407 = vmatpush3.bf16.msra.mxu1 %v11041_v23 }
 0x5c9   : > { %8408 = vmatprep.subr.bf16.mxu1 %v11841_v24 }
 0x5cc   : > { %8410 = vmatpush3.bf16.msra.mxu1 %v11165_v6  ;;  %v7439_v6 = vld [vmem:[%s9742_s30 + $0x8] sm:$0xff] (%p11879_p12) }
 0x5cd   : > { %8411 = vmatprep.subr.bf16.mxu1 %v11841_v24  ;;  %v7437_v24 = vld [vmem:[%s9742_s30] sm:$0xff] (%p11879_p12)  ;;  %7440 = vst [vmem:[%s11629_s11 + $0x8] sm:$0xff] (%p11879_p12), %v7439_v6 }
 0x5ce   : > { %7438 = vst [vmem:[%s11629_s11] sm:$0xff] (%p11879_p12), %v7437_v24 }
 0x5d0   : > { %8413 = vmatpush3.bf16.msra.mxu1 %v11303_v36  ;;  %v7441_v36 = vld [vmem:[%s9742_s30 + $0x10] sm:$0xff] (%p11879_p12) }
 0x5d1   : > { %7442 = vst [vmem:[%s11629_s11 + $0x10] sm:$0xff] (%p11879_p12), %v7441_v36 }
 0x5d3   : > { %8388 = vmatmul.mubr.msk.f32.vlgmr.msra.gmra.mrb[254].mxu1 %vm6702_vm1, %v7199_v27  ;;  %v7547_v27 = vld [vmem:[%s9742_s30 + $0x1b8] sm:$0xff] (%p11879_p12) }
 0x5d4   : > { %7548 = vst [vmem:[%s11629_s11 + $0x3b8] sm:$0xff] (%p11879_p12), %v7547_v27 }
 0x696   : > { %v7188_v62 = vpop.f32.mrb[252].mxu1 }
 0x697   : > { %v7192_v32 = vadd.f32 %v7188_v62, %v7115_v16  ;;  %v8370_v43 = vpop.f32.mrb[253].mxu1  ;;  %v7549_v16 = vld [vmem:[%s9742_s30 + $0x1c0] sm:$0xff] (%p11879_p12)  ;;  %v7551_v62 = vld [vmem:[%s9742_s30 + $0x1c8] sm:$0xff] (%p11879_p12) }
 0x698   : > { %7550 = vst [vmem:[%s11629_s11 + $0x3c0] sm:$0xff] (%p11879_p12), %v7549_v16  ;;  %v7555_v43 = vld [vmem:[%s9742_s30 + $0x1d8] sm:$0xff] (%p11879_p12)  ;;  %7552 = vst [vmem:[%s11629_s11 + $0x3c8] sm:$0xff] (%p11879_p12), %v7551_v62 }
 0x699   : > { %7194 = vst.msk [vmem:[#allocation8] sm:$0x3] %vm7193_vm4, %v7192_v32  ;;  %v7553_v32 = vld [vmem:[%s9742_s30 + $0x1d0] sm:$0xff] (%p11879_p12)  ;;  %7556 = vst [vmem:[%s11629_s11 + $0x3d8] sm:$0xff] (%p11879_p12), %v7555_v43 }
 0x69a   : > { %7554 = vst [vmem:[%s11629_s11 + $0x3d0] sm:$0xff] (%p11879_p12), %v7553_v32 }
 0x6a3   : > { %7280 = sbr.rel (!%p11879_p12) target bundleno = 1707 (0x6ab), region = 52 }
 0x6a6   : > { %v7268_v33 = vpop.f32.mrb[254].mxu1 }
 0x6a7   : > { %v7272_v0 = vadd.f32 %v7268_v33, %v7196_v57  ;;  %v8389_v23 = vpop.f32.mrb[255].mxu1  ;;  %v7557_v57 = vld [vmem:[%s9742_s30 + $0x1e0] sm:$0xff] (%p11879_p12)  ;;  %v7559_v33 = vld [vmem:[%s9742_s30 + $0x1e8] sm:$0xff] (%p11879_p12) }
 0x6a8   : > { %7558 = vst [vmem:[%s11629_s11 + $0x3e0] sm:$0xff] (%p11879_p12), %v7557_v57  ;;  %7560 = vst [vmem:[%s11629_s11 + $0x3e8] sm:$0xff] (%p11879_p12), %v7559_v33  ;;  %v7563_v23 = vld [vmem:[%s9742_s30 + $0x1f8] sm:$0xff] (%p11879_p12) }
 0x6a9   : > { %7273 = vst.msk [vmem:[#allocation8 + $0x2] sm:$0x3] %vm7193_vm4, %v7272_v0  ;;  %v7561_v0 = vld [vmem:[%s9742_s30 + $0x1f0] sm:$0xff] (%p11879_p12)  ;;  %7564 = vst [vmem:[%s11629_s11 + $0x3f8] sm:$0xff] (%p11879_p12), %v7563_v23 }
 0x6aa   : > { %7562 = vst [vmem:[%s11629_s11 + $0x3f0] sm:$0xff] %v7561_v0 }
 0x6ab PF: > { %s9591_s29 = smov [#allocation8]   ;;  %p11880_p2 = scmp.eq.s32.totalorder %s9643_s22, 2 }
 0x6ac   : > { %s7574_s13 = sshll.u32 %s9591_s29, 4  ;;  %s7575_s13 = int_to_ptr.vmem [resolvable:$true] %s7574_s13 }
 0x6ad   : > { %s9509_s14 = scalar_lea.vmem %s7575_s13, 64  ;;  %p9516_p9 = scmp.lt.s32.totalorder %s7575_s13, %s7575_s13 }
 0x6ae   : > { %p9510_p0 = scmp.ne.s32.totalorder %s7575_s13, %s9509_s14  ;;  %p9517_p13 = scmp.lt.s32.totalorder %s9509_s14, %s9509_s14 }
 0x6b0   : > { %p9511_p3 = pnand %p9510_p0, %p11880_p2  ;;  %p9518_p1 = por %p9517_p13, %p9516_p9 }
 0x6b2   : > { %p9512_p7 = pneg %p9511_p3 }
 0x6b4   : > { %p9519_p4 = pnand %p9518_p1, %p9512_p7 }
 0x6b6   : > { %9522 = shalt.err (!%p9519_p4)
}
 0x6b7   : > { %s9523_s30 = scalar_lea.hbm %s11796_s5, 64  ;;  %p11881_p6 = pmov %p11880_p2 }
 0x6b8   : > { %p9524_p5 = scmp.ne.s32.totalorder %s11796_s5, %s9523_s30  ;;  %p9529_p11 = scmp.lt.u32.totalorder %s9523_s30, %s11796_s5 }
 0x6ba   : > { %p9525_p8 = pnand %p9524_p5, %p11881_p6 }
 0x6bc   : > { %p9526_p10 = pneg %p9525_p8 }
 0x6be   : > { %p9531_p12 = pnand %p9529_p11, %p9526_p10 }
 0x6c0   : > { %9534 = shalt.err (!%p9531_p12)
}
 0x6c1   : > { %s9592_s6 = smov 32   ;;  %s9593_s9 = smov 2  }
 0x6c2   : > { %p11882_p0 = pmov %p11880_p2 }
 0x6c4   : > { %9294 = dma.vmem_to_hbm [thread:$0]  (%p11882_p0), %s7575_s13, 64, %s11796_s5, [#allocation4], %s9592_s6, %s9592_s6, %s9593_s9  }
 0x6c5   : > { %p11883_p2 = pmov %p11882_p0 }
 0x6c6   : > { %p11884_p3 = pmov %p11882_p0 }
 0x6c7   : > { %9560 = dma.done.wait (%p11883_p2), [#allocation4], 64  }
 0x6c8   : > { %9562 = vsyncadd (%p11884_p3), [#allocation4], 4294967232 }
 0x6c9 PF: > { %p18_p7 = scmp.ge.s32.totalorder %s9646_s23, 5   ;;  %s11885_s18 = smov %s9569_s19 }
 0x6ca   : > { %s11886_s19 = smov %s9573_s20  ;;  %s11887_s20 = smov %s9656_s26 }
 0x6cb   : > { %s11888_s21 = smov %s9646_s23  ;;  %20 = sbr.rel (!%p18_p7) target bundleno = 5 (0x5), region = 137 }
 0x6d2   :  { %7597 = vsyncpa [#allocation3], 1 }
 0x6d3   :  { %7599 = vsyncpa [#allocation3 + $0x1], 1 }
 0x6d4   :  { %7600 = vsyncpa [#allocation6], 1 }
 0x6d5   :  { %7601 = vsyncpa [#allocation4], 1 }
 0x6d6   :  { %7603 = vsyncpa [#allocation4 + $0x1], 1 }

</bundles_post_ra>
